<compile_context>
chip_gen: v6e
topology: v6e:2x2x1
jax: 0.10.0
libtpu: 0.0.40
codegen_flags: <defaults>
</compile_context>

<pallas_src>
import math

import jax
import jax.numpy as jnp
from jax.experimental import pallas as pl
from jax.experimental.pallas import tpu as pltpu

# ---------------- synthetic BERT config (small but TPU-friendly) ----------------
VOCAB = 100
MAX_POS = 32
HIDDEN = 128
NUM_LAYERS = 2
NUM_HEADS = 4
HEAD_DIM = HIDDEN // NUM_HEADS
INTERMEDIATE = 256
LN_EPS = 1e-12
SEQ = 8
SUB_BATCH = 2
MAX_SUB_BATCH_SIZE = 64


# --------------------------------- kernel ---------------------------------
def _layernorm(x, g, b):
    # keep stats/elementwise in f32 (v5e VPU/EUP have no bf16)
    mean = jnp.mean(x, axis=-1, keepdims=True)
    var = jnp.mean(jnp.square(x - mean), axis=-1, keepdims=True)
    return (x - mean) * jax.lax.rsqrt(var + LN_EPS) * g + b


def _make_fused_kernel(bt, seq):
    """Fused: embedding LN -> NUM_LAYERS encoder layers -> pooler, for bt sequences."""
    scale = 1.0 / math.sqrt(HEAD_DIM)

    def kernel(x_ref, bias_ref, emb_g_ref, emb_b_ref,
               wq_ref, bq_ref, wk_ref, bk_ref, wv_ref, bv_ref,
               wo_ref, bo_ref, ln1g_ref, ln1b_ref,
               w1_ref, b1_ref, w2_ref, b2_ref, ln2g_ref, ln2b_ref,
               pw_ref, pb_ref, out_ref, ctx_ref):
        # Embedding LayerNorm over all bt*seq rows at once.
        x = _layernorm(x_ref[...], emb_g_ref[...], emb_b_ref[...])     # (rows, H) f32
        bias = bias_ref[...]                                           # (bt, seq) f32

        for l in range(NUM_LAYERS):                                    # static unroll
            xb = x.astype(jnp.bfloat16)
            # batch*seq folded into the MXU M dimension: one matmul per weight.
            q = jnp.dot(xb, wq_ref[l], preferred_element_type=jnp.float32) + bq_ref[l]
            k = jnp.dot(xb, wk_ref[l], preferred_element_type=jnp.float32) + bk_ref[l]
            v = jnp.dot(xb, wv_ref[l], preferred_element_type=jnp.float32) + bv_ref[l]
            q16 = (q * scale).astype(jnp.bfloat16)
            k16 = k.astype(jnp.bfloat16)
            v16 = v.astype(jnp.bfloat16)

            # Attention per sequence / per head; head contexts are written directly
            # into a VMEM scratch at static lane offsets (no lane-axis concat).
            for b in range(bt):
                r0 = b * seq
                bias_b = bias[b:b + 1, :]                               # (1, seq)
                for h in range(NUM_HEADS):
                    lo = h * HEAD_DIM
                    qh = q16[r0:r0 + seq, lo:lo + HEAD_DIM]
                    kh = k16[r0:r0 + seq, lo:lo + HEAD_DIM]
                    vh = v16[r0:r0 + seq, lo:lo + HEAD_DIM]
                    s = jax.lax.dot_general(qh, kh, (((1,), (1,)), ((), ())),
                                            preferred_element_type=jnp.float32)
                    s = s + bias_b
                    m = jnp.max(s, axis=-1, keepdims=True)
                    p = jnp.exp(s - m)
                    denom = jnp.sum(p, axis=-1, keepdims=True)
                    p = p * pl.reciprocal(denom, approx=True)           # EUP divide
                    ctx_ref[r0:r0 + seq, lo:lo + HEAD_DIM] = jnp.dot(
                        p.astype(jnp.bfloat16), vh,
                        preferred_element_type=jnp.float32)

            ctx16 = ctx_ref[...].astype(jnp.bfloat16)
            attn_out = jnp.dot(ctx16, wo_ref[l],
                               preferred_element_type=jnp.float32) + bo_ref[l]
            x1 = _layernorm(x + attn_out, ln1g_ref[l], ln1b_ref[l])

            h1 = jnp.dot(x1.astype(jnp.bfloat16), w1_ref[l],
                         preferred_element_type=jnp.float32) + b1_ref[l]
            # tanh-approx GELU (EUP-friendly); synthetic weights, exact erf not required.
            h1 = jax.nn.gelu(h1, approximate=True)
            ffn = jnp.dot(h1.astype(jnp.bfloat16), w2_ref[l],
                          preferred_element_type=jnp.float32) + b2_ref[l]
            x = _layernorm(x1 + ffn, ln2g_ref[l], ln2b_ref[l])

        # Fused pooler: tanh(CLS @ Wp + bp); CLS = row 0 of each sequence.
        cls = jnp.concatenate([x[b * seq:b * seq + 1, :] for b in range(bt)], axis=0)
        pooled = jnp.dot(cls.astype(jnp.bfloat16), pw_ref[...],
                         preferred_element_type=jnp.float32) + pb_ref[...]
        out_ref[...] = jnp.tanh(pooled)

    return kernel


# ------------------------------ pallas wrapper ------------------------------
def bert_pooler_forward(params, input_ids, attention_mask):
    """BERT forward returning pooler_output, shape (sub_batch, HIDDEN)."""
    B, S = input_ids.shape
    # Embedding gathers are glue (plain JAX); everything else is ONE Pallas kernel.
    x = (params["word_emb"][input_ids]
         + params["pos_emb"][jnp.arange(S)][None, :, :]
         + params["type_emb"][0][None, None, :]).astype(jnp.float32)
    x = x.reshape(B * S, HIDDEN)
    bias = (1.0 - attention_mask.astype(jnp.float32)) * -10000.0        # (B, S)

    # Batch-tile grid: one resident step for small sub-batches; for large sub-batches
    # (B % 16 == 0) split into 2 'parallel' tiles so v7x's 2 TensorCores both get work.
    bt = B // 2 if (B % 16 == 0) else B
    n_tiles = B // bt
    rows = bt * S
    L = NUM_LAYERS

    def const(shape):
        return pl.BlockSpec(shape, lambda i: (0,) * len(shape))

    in_specs = [
        pl.BlockSpec((rows, HIDDEN), lambda i: (i, 0)),        # embeddings (bt*S, H)
        pl.BlockSpec((bt, S), lambda i: (i, 0)),               # additive attention bias
        const((1, HIDDEN)), const((1, HIDDEN)),                # emb LN gamma, beta
        const((L, HIDDEN, HIDDEN)), const((L, 1, HIDDEN)),     # Wq, bq
        const((L, HIDDEN, HIDDEN)), const((L, 1, HIDDEN)),     # Wk, bk
        const((L, HIDDEN, HIDDEN)), const((L, 1, HIDDEN)),     # Wv, bv
        const((L, HIDDEN, HIDDEN)), const((L, 1, HIDDEN)),     # Wo, bo
        const((L, 1, HIDDEN)), const((L, 1, HIDDEN)),          # LN1 gamma, beta
        const((L, HIDDEN, INTERMEDIATE)), const((L, 1, INTERMEDIATE)),  # FFN W1, b1
        const((L, INTERMEDIATE, HIDDEN)), const((L, 1, HIDDEN)),        # FFN W2, b2
        const((L, 1, HIDDEN)), const((L, 1, HIDDEN)),          # LN2 gamma, beta
        const((HIDDEN, HIDDEN)), const((1, HIDDEN)),           # pooler W, b
    ]

    return pl.pallas_call(
        _make_fused_kernel(bt, S),
        out_shape=jax.ShapeDtypeStruct((B, HIDDEN), jnp.float32),
        grid=(n_tiles,),
        in_specs=in_specs,
        out_specs=pl.BlockSpec((bt, HIDDEN), lambda i: (i, 0)),
        scratch_shapes=[pltpu.VMEM((rows, HIDDEN), jnp.float32)],   # head-context scratch
        compiler_params=pltpu.CompilerParams(
            dimension_semantics=("parallel",),
            vmem_limit_bytes=32 * 1024 * 1024),
    )(x, bias,
      params["emb_ln_g"], params["emb_ln_b"],
      params["wq"], params["bq"], params["wk"], params["bk"],
      params["wv"], params["bv"], params["wo"], params["bo"],
      params["ln1_g"], params["ln1_b"],
      params["w1"], params["b1"], params["w2"], params["b2"],
      params["ln2_g"], params["ln2_b"],
      params["pooler_w"], params["pooler_b"])


# ------------------------------ model assembly ------------------------------
def init_params(key):
    L = NUM_LAYERS

    def dense(k, shape):
        # matmul weights stored (in, out) and in bf16 for the MXU
        return (jax.random.normal(k, shape, jnp.float32) * 0.02).astype(jnp.bfloat16)

    ki = iter(jax.random.split(key, 16))
    params = {
        "word_emb": jax.random.normal(next(ki), (VOCAB, HIDDEN), jnp.float32) * 0.02,
        "pos_emb": jax.random.normal(next(ki), (MAX_POS, HIDDEN), jnp.float32) * 0.02,
        "type_emb": jax.random.normal(next(ki), (2, HIDDEN), jnp.float32) * 0.02,
        "emb_ln_g": jnp.ones((1, HIDDEN), jnp.float32),
        "emb_ln_b": jnp.zeros((1, HIDDEN), jnp.float32),
        # stacked per-layer weights (L, in, out) bf16; biases / LN params f32
        "wq": dense(next(ki), (L, HIDDEN, HIDDEN)),
        "wk": dense(next(ki), (L, HIDDEN, HIDDEN)),
        "wv": dense(next(ki), (L, HIDDEN, HIDDEN)),
        "wo": dense(next(ki), (L, HIDDEN, HIDDEN)),
        "w1": dense(next(ki), (L, HIDDEN, INTERMEDIATE)),
        "w2": dense(next(ki), (L, INTERMEDIATE, HIDDEN)),
        "bq": jnp.zeros((L, 1, HIDDEN), jnp.float32),
        "bk": jnp.zeros((L, 1, HIDDEN), jnp.float32),
        "bv": jnp.zeros((L, 1, HIDDEN), jnp.float32),
        "bo": jnp.zeros((L, 1, HIDDEN), jnp.float32),
        "b1": jnp.zeros((L, 1, INTERMEDIATE), jnp.float32),
        "b2": jnp.zeros((L, 1, HIDDEN), jnp.float32),
        "ln1_g": jnp.ones((L, 1, HIDDEN), jnp.float32),
        "ln1_b": jnp.zeros((L, 1, HIDDEN), jnp.float32),
        "ln2_g": jnp.ones((L, 1, HIDDEN), jnp.float32),
        "ln2_b": jnp.zeros((L, 1, HIDDEN), jnp.float32),
        "pooler_w": dense(next(ki), (HIDDEN, HIDDEN)),
        "pooler_b": jnp.zeros((1, HIDDEN), jnp.float32),
    }
    return params


def legal_bert_echr_forward(params, input_ids, attention_mask,
                            max_sub_batch_size=MAX_SUB_BATCH_SIZE):
    """Mirrors LegalBertECHRBase.forward: split sub-batch if needed, vstack pooler outs."""
    sub_batch = input_ids.shape[0]
    if sub_batch > max_sub_batch_size:
        outs = []
        for start in range(0, sub_batch, max_sub_batch_size):
            outs.append(bert_pooler_forward(
                params,
                input_ids[start:start + max_sub_batch_size],
                attention_mask[start:start + max_sub_batch_size]))
        return jnp.vstack(outs)
    return bert_pooler_forward(params, input_ids, attention_mask)


# ----------------------------------- main -----------------------------------
if __name__ == "__main__":
    root = jax.random.PRNGKey(0)
    k_params, k_ids = jax.random.split(root)

    params = init_params(k_params)

    input_ids = jax.random.randint(k_ids, (SUB_BATCH, SEQ), 0, VOCAB, dtype=jnp.int32)
    attention_mask = jnp.ones((SUB_BATCH, SEQ), jnp.int32)
    # pad the tail of the second sequence to exercise the mask path
    attention_mask = attention_mask.at[1, SEQ - 3:].set(0)

    out = legal_bert_echr_forward(params, input_ids, attention_mask)
    out = jax.block_until_ready(out)

    assert out.shape == (SUB_BATCH, HIDDEN)
    assert out.dtype == jnp.float32
    assert bool(jnp.all(jnp.isfinite(out)))
    print("KERNEL_OK")
</pallas_src>

<mosaic_0001>
module attributes {stable_mosaic.version = 11 : i64} {
  func.func @kernel(%arg0: i32, %arg1: memref<16x128xf32, #tpu.memory_space<vmem>>, %arg2: memref<2x8xf32, #tpu.memory_space<vmem>>, %arg3: memref<1x128xf32, #tpu.memory_space<vmem>>, %arg4: memref<1x128xf32, #tpu.memory_space<vmem>>, %arg5: memref<2x128x128xbf16, #tpu.memory_space<vmem>>, %arg6: memref<2x1x128xf32, #tpu.memory_space<vmem>>, %arg7: memref<2x128x128xbf16, #tpu.memory_space<vmem>>, %arg8: memref<2x1x128xf32, #tpu.memory_space<vmem>>, %arg9: memref<2x128x128xbf16, #tpu.memory_space<vmem>>, %arg10: memref<2x1x128xf32, #tpu.memory_space<vmem>>, %arg11: memref<2x128x128xbf16, #tpu.memory_space<vmem>>, %arg12: memref<2x1x128xf32, #tpu.memory_space<vmem>>, %arg13: memref<2x1x128xf32, #tpu.memory_space<vmem>>, %arg14: memref<2x1x128xf32, #tpu.memory_space<vmem>>, %arg15: memref<2x128x256xbf16, #tpu.memory_space<vmem>>, %arg16: memref<2x1x256xf32, #tpu.memory_space<vmem>>, %arg17: memref<2x256x128xbf16, #tpu.memory_space<vmem>>, %arg18: memref<2x1x128xf32, #tpu.memory_space<vmem>>, %arg19: memref<2x1x128xf32, #tpu.memory_space<vmem>>, %arg20: memref<2x1x128xf32, #tpu.memory_space<vmem>>, %arg21: memref<128x128xbf16, #tpu.memory_space<vmem>>, %arg22: memref<1x128xf32, #tpu.memory_space<vmem>>, %arg23: memref<2x128xf32, #tpu.memory_space<vmem>>, %arg24: memref<16x128xf32, #tpu.memory_space<vmem>>) attributes {dimension_semantics = [#tpu.dimension_semantics<parallel>], iteration_bounds = array<i64: 1>, scalar_prefetch = 0 : i64, scratch_operands = 1 : i64, tpu.core_type = #tpu.core_type<tc>, window_params = [{transform_indices = @transform_0, window_bounds = array<i64: 16, 128>}, {transform_indices = @transform_1, window_bounds = array<i64: 2, 8>}, {pipeline_mode = #tpu.pipeline_mode<synchronous>, transform_indices = @transform_2, window_bounds = array<i64: 1, 128>}, {pipeline_mode = #tpu.pipeline_mode<synchronous>, transform_indices = @transform_3, window_bounds = array<i64: 1, 128>}, {pipeline_mode = #tpu.pipeline_mode<synchronous>, transform_indices = @transform_4, window_bounds = array<i64: 2, 128, 128>}, {pipeline_mode = #tpu.pipeline_mode<synchronous>, transform_indices = @transform_5, window_bounds = array<i64: 2, 1, 128>}, {pipeline_mode = #tpu.pipeline_mode<synchronous>, transform_indices = @transform_6, window_bounds = array<i64: 2, 128, 128>}, {pipeline_mode = #tpu.pipeline_mode<synchronous>, transform_indices = @transform_7, window_bounds = array<i64: 2, 1, 128>}, {pipeline_mode = #tpu.pipeline_mode<synchronous>, transform_indices = @transform_8, window_bounds = array<i64: 2, 128, 128>}, {pipeline_mode = #tpu.pipeline_mode<synchronous>, transform_indices = @transform_9, window_bounds = array<i64: 2, 1, 128>}, {pipeline_mode = #tpu.pipeline_mode<synchronous>, transform_indices = @transform_10, window_bounds = array<i64: 2, 128, 128>}, {pipeline_mode = #tpu.pipeline_mode<synchronous>, transform_indices = @transform_11, window_bounds = array<i64: 2, 1, 128>}, {pipeline_mode = #tpu.pipeline_mode<synchronous>, transform_indices = @transform_12, window_bounds = array<i64: 2, 1, 128>}, {pipeline_mode = #tpu.pipeline_mode<synchronous>, transform_indices = @transform_13, window_bounds = array<i64: 2, 1, 128>}, {pipeline_mode = #tpu.pipeline_mode<synchronous>, transform_indices = @transform_14, window_bounds = array<i64: 2, 128, 256>}, {pipeline_mode = #tpu.pipeline_mode<synchronous>, transform_indices = @transform_15, window_bounds = array<i64: 2, 1, 256>}, {pipeline_mode = #tpu.pipeline_mode<synchronous>, transform_indices = @transform_16, window_bounds = array<i64: 2, 256, 128>}, {pipeline_mode = #tpu.pipeline_mode<synchronous>, transform_indices = @transform_17, window_bounds = array<i64: 2, 1, 128>}, {pipeline_mode = #tpu.pipeline_mode<synchronous>, transform_indices = @transform_18, window_bounds = array<i64: 2, 1, 128>}, {pipeline_mode = #tpu.pipeline_mode<synchronous>, transform_indices = @transform_19, window_bounds = array<i64: 2, 1, 128>}, {pipeline_mode = #tpu.pipeline_mode<synchronous>, transform_indices = @transform_20, window_bounds = array<i64: 128, 128>}, {pipeline_mode = #tpu.pipeline_mode<synchronous>, transform_indices = @transform_21, window_bounds = array<i64: 1, 128>}, {transform_indices = @transform_22, window_bounds = array<i64: 2, 128>}]} {
    %c0 = arith.constant 0 : index
    %c0_0 = arith.constant 0 : index
    %0 = vector.load %arg1[%c0, %c0_0] : memref<16x128xf32, #tpu.memory_space<vmem>>, vector<16x128xf32>
    %c0_1 = arith.constant 0 : index
    %c0_2 = arith.constant 0 : index
    %1 = vector.load %arg3[%c0_1, %c0_2] : memref<1x128xf32, #tpu.memory_space<vmem>>, vector<1x128xf32>
    %c0_3 = arith.constant 0 : index
    %c0_4 = arith.constant 0 : index
    %2 = vector.load %arg4[%c0_3, %c0_4] : memref<1x128xf32, #tpu.memory_space<vmem>>, vector<1x128xf32>
    %cst = arith.constant dense<0.000000e+00> : vector<16xf32>
    %3 = vector.multi_reduction <add>, %0, %cst [1] : vector<16x128xf32> to vector<16xf32>
    %4 = vector.shape_cast %3 : vector<16xf32> to vector<16x1xf32>
    %cst_5 = arith.constant 1.280000e+02 : f32
    %5 = vector.broadcast %cst_5 : f32 to vector<16x1xf32>
    %6 = arith.divf %4, %5 : vector<16x1xf32>
    %7 = vector.broadcast %6 : vector<16x1xf32> to vector<16x128xf32>
    %8 = arith.subf %0, %7 : vector<16x128xf32>
    %9 = arith.mulf %8, %8 : vector<16x128xf32>
    %cst_6 = arith.constant dense<0.000000e+00> : vector<16xf32>
    %10 = vector.multi_reduction <add>, %9, %cst_6 [1] : vector<16x128xf32> to vector<16xf32>
    %11 = vector.shape_cast %10 : vector<16xf32> to vector<16x1xf32>
    %cst_7 = arith.constant 1.280000e+02 : f32
    %12 = vector.broadcast %cst_7 : f32 to vector<16x1xf32>
    %13 = arith.divf %11, %12 : vector<16x1xf32>
    %14 = vector.broadcast %6 : vector<16x1xf32> to vector<16x128xf32>
    %15 = arith.subf %0, %14 : vector<16x128xf32>
    %cst_8 = arith.constant 9.99999996E-13 : f32
    %16 = vector.broadcast %cst_8 : f32 to vector<16x1xf32>
    %17 = arith.addf %13, %16 : vector<16x1xf32>
    %18 = math.rsqrt %17 : vector<16x1xf32>
    %19 = vector.broadcast %18 : vector<16x1xf32> to vector<16x128xf32>
    %20 = arith.mulf %15, %19 : vector<16x128xf32>
    %21 = vector.broadcast %1 : vector<1x128xf32> to vector<16x128xf32>
    %22 = arith.mulf %20, %21 : vector<16x128xf32>
    %23 = vector.broadcast %2 : vector<1x128xf32> to vector<16x128xf32>
    %24 = arith.addf %22, %23 : vector<16x128xf32>
    %c0_9 = arith.constant 0 : index
    %c0_10 = arith.constant 0 : index
    %25 = vector.load %arg2[%c0_9, %c0_10] : memref<2x8xf32, #tpu.memory_space<vmem>>, vector<2x8xf32>
    %26 = arith.truncf %24 : vector<16x128xf32> to vector<16x128xbf16>
    %c0_11 = arith.constant 0 : index
    %c0_12 = arith.constant 0 : index
    %c0_13 = arith.constant 0 : index
    %27 = vector.load %arg5[%c0_11, %c0_12, %c0_13] : memref<2x128x128xbf16, #tpu.memory_space<vmem>>, vector<1x128x128xbf16>
    %28 = vector.shape_cast %27 : vector<1x128x128xbf16> to vector<128x128xbf16>
    %cst_14 = arith.constant dense<0.000000e+00> : vector<16x128xf32>
    %29 = tpu.matmul %26, %28, %cst_14 {dimension_numbers = #tpu.dot_dimension_numbers<[1], [0], [0], [1], [0, 0, 1, 1], [], []>} : vector<16x128xbf16>, vector<128x128xbf16>, vector<16x128xf32> -> vector<16x128xf32>
    %c0_15 = arith.constant 0 : index
    %c0_16 = arith.constant 0 : index
    %c0_17 = arith.constant 0 : index
    %30 = vector.load %arg6[%c0_15, %c0_16, %c0_17] : memref<2x1x128xf32, #tpu.memory_space<vmem>>, vector<1x1x128xf32>
    %31 = vector.shape_cast %30 : vector<1x1x128xf32> to vector<1x128xf32>
    %32 = vector.broadcast %31 : vector<1x128xf32> to vector<16x128xf32>
    %33 = arith.addf %29, %32 : vector<16x128xf32>
    %c0_18 = arith.constant 0 : index
    %c0_19 = arith.constant 0 : index
    %c0_20 = arith.constant 0 : index
    %34 = vector.load %arg7[%c0_18, %c0_19, %c0_20] : memref<2x128x128xbf16, #tpu.memory_space<vmem>>, vector<1x128x128xbf16>
    %35 = vector.shape_cast %34 : vector<1x128x128xbf16> to vector<128x128xbf16>
    %cst_21 = arith.constant dense<0.000000e+00> : vector<16x128xf32>
    %36 = tpu.matmul %26, %35, %cst_21 {dimension_numbers = #tpu.dot_dimension_numbers<[1], [0], [0], [1], [0, 0, 1, 1], [], []>} : vector<16x128xbf16>, vector<128x128xbf16>, vector<16x128xf32> -> vector<16x128xf32>
    %c0_22 = arith.constant 0 : index
    %c0_23 = arith.constant 0 : index
    %c0_24 = arith.constant 0 : index
    %37 = vector.load %arg8[%c0_22, %c0_23, %c0_24] : memref<2x1x128xf32, #tpu.memory_space<vmem>>, vector<1x1x128xf32>
    %38 = vector.shape_cast %37 : vector<1x1x128xf32> to vector<1x128xf32>
    %39 = vector.broadcast %38 : vector<1x128xf32> to vector<16x128xf32>
    %40 = arith.addf %36, %39 : vector<16x128xf32>
    %c0_25 = arith.constant 0 : index
    %c0_26 = arith.constant 0 : index
    %c0_27 = arith.constant 0 : index
    %41 = vector.load %arg9[%c0_25, %c0_26, %c0_27] : memref<2x128x128xbf16, #tpu.memory_space<vmem>>, vector<1x128x128xbf16>
    %42 = vector.shape_cast %41 : vector<1x128x128xbf16> to vector<128x128xbf16>
    %cst_28 = arith.constant dense<0.000000e+00> : vector<16x128xf32>
    %43 = tpu.matmul %26, %42, %cst_28 {dimension_numbers = #tpu.dot_dimension_numbers<[1], [0], [0], [1], [0, 0, 1, 1], [], []>} : vector<16x128xbf16>, vector<128x128xbf16>, vector<16x128xf32> -> vector<16x128xf32>
    %c0_29 = arith.constant 0 : index
    %c0_30 = arith.constant 0 : index
    %c0_31 = arith.constant 0 : index
    %44 = vector.load %arg10[%c0_29, %c0_30, %c0_31] : memref<2x1x128xf32, #tpu.memory_space<vmem>>, vector<1x1x128xf32>
    %45 = vector.shape_cast %44 : vector<1x1x128xf32> to vector<1x128xf32>
    %46 = vector.broadcast %45 : vector<1x128xf32> to vector<16x128xf32>
    %47 = arith.addf %43, %46 : vector<16x128xf32>
    %cst_32 = arith.constant 0.176776692 : f32
    %48 = vector.broadcast %cst_32 : f32 to vector<16x128xf32>
    %49 = arith.mulf %33, %48 : vector<16x128xf32>
    %50 = arith.truncf %49 : vector<16x128xf32> to vector<16x128xbf16>
    %51 = arith.truncf %40 : vector<16x128xf32> to vector<16x128xbf16>
    %52 = arith.truncf %47 : vector<16x128xf32> to vector<16x128xbf16>
    %53 = vector.extract_strided_slice %25 {offsets = [0, 0], sizes = [1, 8], strides = [1, 1]} : vector<2x8xf32> to vector<1x8xf32>
    %54 = vector.extract_strided_slice %50 {offsets = [0, 0], sizes = [8, 32], strides = [1, 1]} : vector<16x128xbf16> to vector<8x32xbf16>
    %55 = vector.extract_strided_slice %51 {offsets = [0, 0], sizes = [8, 32], strides = [1, 1]} : vector<16x128xbf16> to vector<8x32xbf16>
    %56 = vector.extract_strided_slice %52 {offsets = [0, 0], sizes = [8, 32], strides = [1, 1]} : vector<16x128xbf16> to vector<8x32xbf16>
    %cst_33 = arith.constant dense<0.000000e+00> : vector<8x8xf32>
    %57 = tpu.matmul %54, %55, %cst_33 {dimension_numbers = #tpu.dot_dimension_numbers<[1], [1], [0], [0], [0, 0, 1, 0], [], []>} : vector<8x32xbf16>, vector<8x32xbf16>, vector<8x8xf32> -> vector<8x8xf32>
    %58 = vector.broadcast %53 : vector<1x8xf32> to vector<8x8xf32>
    %59 = arith.addf %57, %58 : vector<8x8xf32>
    %cst_34 = arith.constant dense<0xFF800000> : vector<8xf32>
    %60 = vector.multi_reduction <maximumf>, %59, %cst_34 [1] : vector<8x8xf32> to vector<8xf32>
    %61 = vector.shape_cast %60 : vector<8xf32> to vector<8x1xf32>
    %62 = vector.broadcast %61 : vector<8x1xf32> to vector<8x8xf32>
    %63 = arith.subf %59, %62 : vector<8x8xf32>
    %64 = math.exp %63 : vector<8x8xf32>
    %cst_35 = arith.constant dense<0.000000e+00> : vector<8xf32>
    %65 = vector.multi_reduction <add>, %64, %cst_35 [1] : vector<8x8xf32> to vector<8xf32>
    %66 = vector.shape_cast %65 : vector<8xf32> to vector<8x1xf32>
    %67 = tpu.reciprocal %66 {approx = true} : vector<8x1xf32> -> vector<8x1xf32>
    %68 = vector.broadcast %67 : vector<8x1xf32> to vector<8x8xf32>
    %69 = arith.mulf %64, %68 : vector<8x8xf32>
    %70 = arith.truncf %69 : vector<8x8xf32> to vector<8x8xbf16>
    %cst_36 = arith.constant dense<0.000000e+00> : vector<8x32xf32>
    %71 = tpu.matmul %70, %56, %cst_36 {dimension_numbers = #tpu.dot_dimension_numbers<[1], [0], [0], [1], [0, 0, 1, 1], [], []>} : vector<8x8xbf16>, vector<8x32xbf16>, vector<8x32xf32> -> vector<8x32xf32>
    %c0_37 = arith.constant 0 : index
    %c0_38 = arith.constant 0 : index
    %72 = vector.load %arg24[%c0_37, %c0_38] : memref<16x128xf32, #tpu.memory_space<vmem>>, vector<8x32xf32>
    tpu.vector_store %arg24[%c0_37, %c0_38], %71 {strides = array<i32>} : memref<16x128xf32, #tpu.memory_space<vmem>>, vector<8x32xf32>,
    %73 = vector.extract_strided_slice %50 {offsets = [0, 32], sizes = [8, 32], strides = [1, 1]} : vector<16x128xbf16> to vector<8x32xbf16>
    %74 = vector.extract_strided_slice %51 {offsets = [0, 32], sizes = [8, 32], strides = [1, 1]} : vector<16x128xbf16> to vector<8x32xbf16>
    %75 = vector.extract_strided_slice %52 {offsets = [0, 32], sizes = [8, 32], strides = [1, 1]} : vector<16x128xbf16> to vector<8x32xbf16>
    %cst_39 = arith.constant dense<0.000000e+00> : vector<8x8xf32>
    %76 = tpu.matmul %73, %74, %cst_39 {dimension_numbers = #tpu.dot_dimension_numbers<[1], [1], [0], [0], [0, 0, 1, 0], [], []>} : vector<8x32xbf16>, vector<8x32xbf16>, vector<8x8xf32> -> vector<8x8xf32>
    %77 = vector.broadcast %53 : vector<1x8xf32> to vector<8x8xf32>
    %78 = arith.addf %76, %77 : vector<8x8xf32>
    %cst_40 = arith.constant dense<0xFF800000> : vector<8xf32>
    %79 = vector.multi_reduction <maximumf>, %78, %cst_40 [1] : vector<8x8xf32> to vector<8xf32>
    %80 = vector.shape_cast %79 : vector<8xf32> to vector<8x1xf32>
    %81 = vector.broadcast %80 : vector<8x1xf32> to vector<8x8xf32>
    %82 = arith.subf %78, %81 : vector<8x8xf32>
    %83 = math.exp %82 : vector<8x8xf32>
    %cst_41 = arith.constant dense<0.000000e+00> : vector<8xf32>
    %84 = vector.multi_reduction <add>, %83, %cst_41 [1] : vector<8x8xf32> to vector<8xf32>
    %85 = vector.shape_cast %84 : vector<8xf32> to vector<8x1xf32>
    %86 = tpu.reciprocal %85 {approx = true} : vector<8x1xf32> -> vector<8x1xf32>
    %87 = vector.broadcast %86 : vector<8x1xf32> to vector<8x8xf32>
    %88 = arith.mulf %83, %87 : vector<8x8xf32>
    %89 = arith.truncf %88 : vector<8x8xf32> to vector<8x8xbf16>
    %cst_42 = arith.constant dense<0.000000e+00> : vector<8x32xf32>
    %90 = tpu.matmul %89, %75, %cst_42 {dimension_numbers = #tpu.dot_dimension_numbers<[1], [0], [0], [1], [0, 0, 1, 1], [], []>} : vector<8x8xbf16>, vector<8x32xbf16>, vector<8x32xf32> -> vector<8x32xf32>
    %c0_43 = arith.constant 0 : index
    %c32 = arith.constant 32 : index
    %91 = vector.load %arg24[%c0_43, %c32] : memref<16x128xf32, #tpu.memory_space<vmem>>, vector<8x32xf32>
    tpu.vector_store %arg24[%c0_43, %c32], %90 {strides = array<i32>} : memref<16x128xf32, #tpu.memory_space<vmem>>, vector<8x32xf32>,
    %92 = vector.extract_strided_slice %50 {offsets = [0, 64], sizes = [8, 32], strides = [1, 1]} : vector<16x128xbf16> to vector<8x32xbf16>
    %93 = vector.extract_strided_slice %51 {offsets = [0, 64], sizes = [8, 32], strides = [1, 1]} : vector<16x128xbf16> to vector<8x32xbf16>
    %94 = vector.extract_strided_slice %52 {offsets = [0, 64], sizes = [8, 32], strides = [1, 1]} : vector<16x128xbf16> to vector<8x32xbf16>
    %cst_44 = arith.constant dense<0.000000e+00> : vector<8x8xf32>
    %95 = tpu.matmul %92, %93, %cst_44 {dimension_numbers = #tpu.dot_dimension_numbers<[1], [1], [0], [0], [0, 0, 1, 0], [], []>} : vector<8x32xbf16>, vector<8x32xbf16>, vector<8x8xf32> -> vector<8x8xf32>
    %96 = vector.broadcast %53 : vector<1x8xf32> to vector<8x8xf32>
    %97 = arith.addf %95, %96 : vector<8x8xf32>
    %cst_45 = arith.constant dense<0xFF800000> : vector<8xf32>
    %98 = vector.multi_reduction <maximumf>, %97, %cst_45 [1] : vector<8x8xf32> to vector<8xf32>
    %99 = vector.shape_cast %98 : vector<8xf32> to vector<8x1xf32>
    %100 = vector.broadcast %99 : vector<8x1xf32> to vector<8x8xf32>
    %101 = arith.subf %97, %100 : vector<8x8xf32>
    %102 = math.exp %101 : vector<8x8xf32>
    %cst_46 = arith.constant dense<0.000000e+00> : vector<8xf32>
    %103 = vector.multi_reduction <add>, %102, %cst_46 [1] : vector<8x8xf32> to vector<8xf32>
    %104 = vector.shape_cast %103 : vector<8xf32> to vector<8x1xf32>
    %105 = tpu.reciprocal %104 {approx = true} : vector<8x1xf32> -> vector<8x1xf32>
    %106 = vector.broadcast %105 : vector<8x1xf32> to vector<8x8xf32>
    %107 = arith.mulf %102, %106 : vector<8x8xf32>
    %108 = arith.truncf %107 : vector<8x8xf32> to vector<8x8xbf16>
    %cst_47 = arith.constant dense<0.000000e+00> : vector<8x32xf32>
    %109 = tpu.matmul %108, %94, %cst_47 {dimension_numbers = #tpu.dot_dimension_numbers<[1], [0], [0], [1], [0, 0, 1, 1], [], []>} : vector<8x8xbf16>, vector<8x32xbf16>, vector<8x32xf32> -> vector<8x32xf32>
    %c0_48 = arith.constant 0 : index
    %c64 = arith.constant 64 : index
    %110 = vector.load %arg24[%c0_48, %c64] : memref<16x128xf32, #tpu.memory_space<vmem>>, vector<8x32xf32>
    tpu.vector_store %arg24[%c0_48, %c64], %109 {strides = array<i32>} : memref<16x128xf32, #tpu.memory_space<vmem>>, vector<8x32xf32>,
    %111 = vector.extract_strided_slice %50 {offsets = [0, 96], sizes = [8, 32], strides = [1, 1]} : vector<16x128xbf16> to vector<8x32xbf16>
    %112 = vector.extract_strided_slice %51 {offsets = [0, 96], sizes = [8, 32], strides = [1, 1]} : vector<16x128xbf16> to vector<8x32xbf16>
    %113 = vector.extract_strided_slice %52 {offsets = [0, 96], sizes = [8, 32], strides = [1, 1]} : vector<16x128xbf16> to vector<8x32xbf16>
    %cst_49 = arith.constant dense<0.000000e+00> : vector<8x8xf32>
    %114 = tpu.matmul %111, %112, %cst_49 {dimension_numbers = #tpu.dot_dimension_numbers<[1], [1], [0], [0], [0, 0, 1, 0], [], []>} : vector<8x32xbf16>, vector<8x32xbf16>, vector<8x8xf32> -> vector<8x8xf32>
    %115 = vector.broadcast %53 : vector<1x8xf32> to vector<8x8xf32>
    %116 = arith.addf %114, %115 : vector<8x8xf32>
    %cst_50 = arith.constant dense<0xFF800000> : vector<8xf32>
    %117 = vector.multi_reduction <maximumf>, %116, %cst_50 [1] : vector<8x8xf32> to vector<8xf32>
    %118 = vector.shape_cast %117 : vector<8xf32> to vector<8x1xf32>
    %119 = vector.broadcast %118 : vector<8x1xf32> to vector<8x8xf32>
    %120 = arith.subf %116, %119 : vector<8x8xf32>
    %121 = math.exp %120 : vector<8x8xf32>
    %cst_51 = arith.constant dense<0.000000e+00> : vector<8xf32>
    %122 = vector.multi_reduction <add>, %121, %cst_51 [1] : vector<8x8xf32> to vector<8xf32>
    %123 = vector.shape_cast %122 : vector<8xf32> to vector<8x1xf32>
    %124 = tpu.reciprocal %123 {approx = true} : vector<8x1xf32> -> vector<8x1xf32>
    %125 = vector.broadcast %124 : vector<8x1xf32> to vector<8x8xf32>
    %126 = arith.mulf %121, %125 : vector<8x8xf32>
    %127 = arith.truncf %126 : vector<8x8xf32> to vector<8x8xbf16>
    %cst_52 = arith.constant dense<0.000000e+00> : vector<8x32xf32>
    %128 = tpu.matmul %127, %113, %cst_52 {dimension_numbers = #tpu.dot_dimension_numbers<[1], [0], [0], [1], [0, 0, 1, 1], [], []>} : vector<8x8xbf16>, vector<8x32xbf16>, vector<8x32xf32> -> vector<8x32xf32>
    %c0_53 = arith.constant 0 : index
    %c96 = arith.constant 96 : index
    %129 = vector.load %arg24[%c0_53, %c96] : memref<16x128xf32, #tpu.memory_space<vmem>>, vector<8x32xf32>
    tpu.vector_store %arg24[%c0_53, %c96], %128 {strides = array<i32>} : memref<16x128xf32, #tpu.memory_space<vmem>>, vector<8x32xf32>,
    %130 = vector.extract_strided_slice %25 {offsets = [1, 0], sizes = [1, 8], strides = [1, 1]} : vector<2x8xf32> to vector<1x8xf32>
    %131 = vector.extract_strided_slice %50 {offsets = [8, 0], sizes = [8, 32], strides = [1, 1]} : vector<16x128xbf16> to vector<8x32xbf16>
    %132 = vector.extract_strided_slice %51 {offsets = [8, 0], sizes = [8, 32], strides = [1, 1]} : vector<16x128xbf16> to vector<8x32xbf16>
    %133 = vector.extract_strided_slice %52 {offsets = [8, 0], sizes = [8, 32], strides = [1, 1]} : vector<16x128xbf16> to vector<8x32xbf16>
    %cst_54 = arith.constant dense<0.000000e+00> : vector<8x8xf32>
    %134 = tpu.matmul %131, %132, %cst_54 {dimension_numbers = #tpu.dot_dimension_numbers<[1], [1], [0], [0], [0, 0, 1, 0], [], []>} : vector<8x32xbf16>, vector<8x32xbf16>, vector<8x8xf32> -> vector<8x8xf32>
    %135 = vector.broadcast %130 : vector<1x8xf32> to vector<8x8xf32>
    %136 = arith.addf %134, %135 : vector<8x8xf32>
    %cst_55 = arith.constant dense<0xFF800000> : vector<8xf32>
    %137 = vector.multi_reduction <maximumf>, %136, %cst_55 [1] : vector<8x8xf32> to vector<8xf32>
    %138 = vector.shape_cast %137 : vector<8xf32> to vector<8x1xf32>
    %139 = vector.broadcast %138 : vector<8x1xf32> to vector<8x8xf32>
    %140 = arith.subf %136, %139 : vector<8x8xf32>
    %141 = math.exp %140 : vector<8x8xf32>
    %cst_56 = arith.constant dense<0.000000e+00> : vector<8xf32>
    %142 = vector.multi_reduction <add>, %141, %cst_56 [1] : vector<8x8xf32> to vector<8xf32>
    %143 = vector.shape_cast %142 : vector<8xf32> to vector<8x1xf32>
    %144 = tpu.reciprocal %143 {approx = true} : vector<8x1xf32> -> vector<8x1xf32>
    %145 = vector.broadcast %144 : vector<8x1xf32> to vector<8x8xf32>
    %146 = arith.mulf %141, %145 : vector<8x8xf32>
    %147 = arith.truncf %146 : vector<8x8xf32> to vector<8x8xbf16>
    %cst_57 = arith.constant dense<0.000000e+00> : vector<8x32xf32>
    %148 = tpu.matmul %147, %133, %cst_57 {dimension_numbers = #tpu.dot_dimension_numbers<[1], [0], [0], [1], [0, 0, 1, 1], [], []>} : vector<8x8xbf16>, vector<8x32xbf16>, vector<8x32xf32> -> vector<8x32xf32>
    %c8 = arith.constant 8 : index
    %c0_58 = arith.constant 0 : index
    %149 = vector.load %arg24[%c8, %c0_58] : memref<16x128xf32, #tpu.memory_space<vmem>>, vector<8x32xf32>
    tpu.vector_store %arg24[%c8, %c0_58], %148 {strides = array<i32>} : memref<16x128xf32, #tpu.memory_space<vmem>>, vector<8x32xf32>,
    %150 = vector.extract_strided_slice %50 {offsets = [8, 32], sizes = [8, 32], strides = [1, 1]} : vector<16x128xbf16> to vector<8x32xbf16>
    %151 = vector.extract_strided_slice %51 {offsets = [8, 32], sizes = [8, 32], strides = [1, 1]} : vector<16x128xbf16> to vector<8x32xbf16>
    %152 = vector.extract_strided_slice %52 {offsets = [8, 32], sizes = [8, 32], strides = [1, 1]} : vector<16x128xbf16> to vector<8x32xbf16>
    %cst_59 = arith.constant dense<0.000000e+00> : vector<8x8xf32>
    %153 = tpu.matmul %150, %151, %cst_59 {dimension_numbers = #tpu.dot_dimension_numbers<[1], [1], [0], [0], [0, 0, 1, 0], [], []>} : vector<8x32xbf16>, vector<8x32xbf16>, vector<8x8xf32> -> vector<8x8xf32>
    %154 = vector.broadcast %130 : vector<1x8xf32> to vector<8x8xf32>
    %155 = arith.addf %153, %154 : vector<8x8xf32>
    %cst_60 = arith.constant dense<0xFF800000> : vector<8xf32>
    %156 = vector.multi_reduction <maximumf>, %155, %cst_60 [1] : vector<8x8xf32> to vector<8xf32>
    %157 = vector.shape_cast %156 : vector<8xf32> to vector<8x1xf32>
    %158 = vector.broadcast %157 : vector<8x1xf32> to vector<8x8xf32>
    %159 = arith.subf %155, %158 : vector<8x8xf32>
    %160 = math.exp %159 : vector<8x8xf32>
    %cst_61 = arith.constant dense<0.000000e+00> : vector<8xf32>
    %161 = vector.multi_reduction <add>, %160, %cst_61 [1] : vector<8x8xf32> to vector<8xf32>
    %162 = vector.shape_cast %161 : vector<8xf32> to vector<8x1xf32>
    %163 = tpu.reciprocal %162 {approx = true} : vector<8x1xf32> -> vector<8x1xf32>
    %164 = vector.broadcast %163 : vector<8x1xf32> to vector<8x8xf32>
    %165 = arith.mulf %160, %164 : vector<8x8xf32>
    %166 = arith.truncf %165 : vector<8x8xf32> to vector<8x8xbf16>
    %cst_62 = arith.constant dense<0.000000e+00> : vector<8x32xf32>
    %167 = tpu.matmul %166, %152, %cst_62 {dimension_numbers = #tpu.dot_dimension_numbers<[1], [0], [0], [1], [0, 0, 1, 1], [], []>} : vector<8x8xbf16>, vector<8x32xbf16>, vector<8x32xf32> -> vector<8x32xf32>
    %c8_63 = arith.constant 8 : index
    %c32_64 = arith.constant 32 : index
    %168 = vector.load %arg24[%c8_63, %c32_64] : memref<16x128xf32, #tpu.memory_space<vmem>>, vector<8x32xf32>
    tpu.vector_store %arg24[%c8_63, %c32_64], %167 {strides = array<i32>} : memref<16x128xf32, #tpu.memory_space<vmem>>, vector<8x32xf32>,
    %169 = vector.extract_strided_slice %50 {offsets = [8, 64], sizes = [8, 32], strides = [1, 1]} : vector<16x128xbf16> to vector<8x32xbf16>
    %170 = vector.extract_strided_slice %51 {offsets = [8, 64], sizes = [8, 32], strides = [1, 1]} : vector<16x128xbf16> to vector<8x32xbf16>
    %171 = vector.extract_strided_slice %52 {offsets = [8, 64], sizes = [8, 32], strides = [1, 1]} : vector<16x128xbf16> to vector<8x32xbf16>
    %cst_65 = arith.constant dense<0.000000e+00> : vector<8x8xf32>
    %172 = tpu.matmul %169, %170, %cst_65 {dimension_numbers = #tpu.dot_dimension_numbers<[1], [1], [0], [0], [0, 0, 1, 0], [], []>} : vector<8x32xbf16>, vector<8x32xbf16>, vector<8x8xf32> -> vector<8x8xf32>
    %173 = vector.broadcast %130 : vector<1x8xf32> to vector<8x8xf32>
    %174 = arith.addf %172, %173 : vector<8x8xf32>
    %cst_66 = arith.constant dense<0xFF800000> : vector<8xf32>
    %175 = vector.multi_reduction <maximumf>, %174, %cst_66 [1] : vector<8x8xf32> to vector<8xf32>
    %176 = vector.shape_cast %175 : vector<8xf32> to vector<8x1xf32>
    %177 = vector.broadcast %176 : vector<8x1xf32> to vector<8x8xf32>
    %178 = arith.subf %174, %177 : vector<8x8xf32>
    %179 = math.exp %178 : vector<8x8xf32>
    %cst_67 = arith.constant dense<0.000000e+00> : vector<8xf32>
    %180 = vector.multi_reduction <add>, %179, %cst_67 [1] : vector<8x8xf32> to vector<8xf32>
    %181 = vector.shape_cast %180 : vector<8xf32> to vector<8x1xf32>
    %182 = tpu.reciprocal %181 {approx = true} : vector<8x1xf32> -> vector<8x1xf32>
    %183 = vector.broadcast %182 : vector<8x1xf32> to vector<8x8xf32>
    %184 = arith.mulf %179, %183 : vector<8x8xf32>
    %185 = arith.truncf %184 : vector<8x8xf32> to vector<8x8xbf16>
    %cst_68 = arith.constant dense<0.000000e+00> : vector<8x32xf32>
    %186 = tpu.matmul %185, %171, %cst_68 {dimension_numbers = #tpu.dot_dimension_numbers<[1], [0], [0], [1], [0, 0, 1, 1], [], []>} : vector<8x8xbf16>, vector<8x32xbf16>, vector<8x32xf32> -> vector<8x32xf32>
    %c8_69 = arith.constant 8 : index
    %c64_70 = arith.constant 64 : index
    %187 = vector.load %arg24[%c8_69, %c64_70] : memref<16x128xf32, #tpu.memory_space<vmem>>, vector<8x32xf32>
    tpu.vector_store %arg24[%c8_69, %c64_70], %186 {strides = array<i32>} : memref<16x128xf32, #tpu.memory_space<vmem>>, vector<8x32xf32>,
    %188 = vector.extract_strided_slice %50 {offsets = [8, 96], sizes = [8, 32], strides = [1, 1]} : vector<16x128xbf16> to vector<8x32xbf16>
    %189 = vector.extract_strided_slice %51 {offsets = [8, 96], sizes = [8, 32], strides = [1, 1]} : vector<16x128xbf16> to vector<8x32xbf16>
    %190 = vector.extract_strided_slice %52 {offsets = [8, 96], sizes = [8, 32], strides = [1, 1]} : vector<16x128xbf16> to vector<8x32xbf16>
    %cst_71 = arith.constant dense<0.000000e+00> : vector<8x8xf32>
    %191 = tpu.matmul %188, %189, %cst_71 {dimension_numbers = #tpu.dot_dimension_numbers<[1], [1], [0], [0], [0, 0, 1, 0], [], []>} : vector<8x32xbf16>, vector<8x32xbf16>, vector<8x8xf32> -> vector<8x8xf32>
    %192 = vector.broadcast %130 : vector<1x8xf32> to vector<8x8xf32>
    %193 = arith.addf %191, %192 : vector<8x8xf32>
    %cst_72 = arith.constant dense<0xFF800000> : vector<8xf32>
    %194 = vector.multi_reduction <maximumf>, %193, %cst_72 [1] : vector<8x8xf32> to vector<8xf32>
    %195 = vector.shape_cast %194 : vector<8xf32> to vector<8x1xf32>
    %196 = vector.broadcast %195 : vector<8x1xf32> to vector<8x8xf32>
    %197 = arith.subf %193, %196 : vector<8x8xf32>
    %198 = math.exp %197 : vector<8x8xf32>
    %cst_73 = arith.constant dense<0.000000e+00> : vector<8xf32>
    %199 = vector.multi_reduction <add>, %198, %cst_73 [1] : vector<8x8xf32> to vector<8xf32>
    %200 = vector.shape_cast %199 : vector<8xf32> to vector<8x1xf32>
    %201 = tpu.reciprocal %200 {approx = true} : vector<8x1xf32> -> vector<8x1xf32>
    %202 = vector.broadcast %201 : vector<8x1xf32> to vector<8x8xf32>
    %203 = arith.mulf %198, %202 : vector<8x8xf32>
    %204 = arith.truncf %203 : vector<8x8xf32> to vector<8x8xbf16>
    %cst_74 = arith.constant dense<0.000000e+00> : vector<8x32xf32>
    %205 = tpu.matmul %204, %190, %cst_74 {dimension_numbers = #tpu.dot_dimension_numbers<[1], [0], [0], [1], [0, 0, 1, 1], [], []>} : vector<8x8xbf16>, vector<8x32xbf16>, vector<8x32xf32> -> vector<8x32xf32>
    %c8_75 = arith.constant 8 : index
    %c96_76 = arith.constant 96 : index
    %206 = vector.load %arg24[%c8_75, %c96_76] : memref<16x128xf32, #tpu.memory_space<vmem>>, vector<8x32xf32>
    tpu.vector_store %arg24[%c8_75, %c96_76], %205 {strides = array<i32>} : memref<16x128xf32, #tpu.memory_space<vmem>>, vector<8x32xf32>,
    %c0_77 = arith.constant 0 : index
    %c0_78 = arith.constant 0 : index
    %207 = vector.load %arg24[%c0_77, %c0_78] : memref<16x128xf32, #tpu.memory_space<vmem>>, vector<16x128xf32>
    %208 = arith.truncf %207 : vector<16x128xf32> to vector<16x128xbf16>
    %c0_79 = arith.constant 0 : index
    %c0_80 = arith.constant 0 : index
    %c0_81 = arith.constant 0 : index
    %209 = vector.load %arg11[%c0_79, %c0_80, %c0_81] : memref<2x128x128xbf16, #tpu.memory_space<vmem>>, vector<1x128x128xbf16>
    %210 = vector.shape_cast %209 : vector<1x128x128xbf16> to vector<128x128xbf16>
    %cst_82 = arith.constant dense<0.000000e+00> : vector<16x128xf32>
    %211 = tpu.matmul %208, %210, %cst_82 {dimension_numbers = #tpu.dot_dimension_numbers<[1], [0], [0], [1], [0, 0, 1, 1], [], []>} : vector<16x128xbf16>, vector<128x128xbf16>, vector<16x128xf32> -> vector<16x128xf32>
    %c0_83 = arith.constant 0 : index
    %c0_84 = arith.constant 0 : index
    %c0_85 = arith.constant 0 : index
    %212 = vector.load %arg12[%c0_83, %c0_84, %c0_85] : memref<2x1x128xf32, #tpu.memory_space<vmem>>, vector<1x1x128xf32>
    %213 = vector.shape_cast %212 : vector<1x1x128xf32> to vector<1x128xf32>
    %214 = vector.broadcast %213 : vector<1x128xf32> to vector<16x128xf32>
    %215 = arith.addf %211, %214 : vector<16x128xf32>
    %216 = arith.addf %24, %215 : vector<16x128xf32>
    %c0_86 = arith.constant 0 : index
    %c0_87 = arith.constant 0 : index
    %c0_88 = arith.constant 0 : index
    %217 = vector.load %arg13[%c0_86, %c0_87, %c0_88] : memref<2x1x128xf32, #tpu.memory_space<vmem>>, vector<1x1x128xf32>
    %218 = vector.shape_cast %217 : vector<1x1x128xf32> to vector<1x128xf32>
    %c0_89 = arith.constant 0 : index
    %c0_90 = arith.constant 0 : index
    %c0_91 = arith.constant 0 : index
    %219 = vector.load %arg14[%c0_89, %c0_90, %c0_91] : memref<2x1x128xf32, #tpu.memory_space<vmem>>, vector<1x1x128xf32>
    %220 = vector.shape_cast %219 : vector<1x1x128xf32> to vector<1x128xf32>
    %cst_92 = arith.constant dense<0.000000e+00> : vector<16xf32>
    %221 = vector.multi_reduction <add>, %216, %cst_92 [1] : vector<16x128xf32> to vector<16xf32>
    %222 = vector.shape_cast %221 : vector<16xf32> to vector<16x1xf32>
    %cst_93 = arith.constant 1.280000e+02 : f32
    %223 = vector.broadcast %cst_93 : f32 to vector<16x1xf32>
    %224 = arith.divf %222, %223 : vector<16x1xf32>
    %225 = vector.broadcast %224 : vector<16x1xf32> to vector<16x128xf32>
    %226 = arith.subf %216, %225 : vector<16x128xf32>
    %227 = arith.mulf %226, %226 : vector<16x128xf32>
    %cst_94 = arith.constant dense<0.000000e+00> : vector<16xf32>
    %228 = vector.multi_reduction <add>, %227, %cst_94 [1] : vector<16x128xf32> to vector<16xf32>
    %229 = vector.shape_cast %228 : vector<16xf32> to vector<16x1xf32>
    %cst_95 = arith.constant 1.280000e+02 : f32
    %230 = vector.broadcast %cst_95 : f32 to vector<16x1xf32>
    %231 = arith.divf %229, %230 : vector<16x1xf32>
    %232 = vector.broadcast %224 : vector<16x1xf32> to vector<16x128xf32>
    %233 = arith.subf %216, %232 : vector<16x128xf32>
    %cst_96 = arith.constant 9.99999996E-13 : f32
    %234 = vector.broadcast %cst_96 : f32 to vector<16x1xf32>
    %235 = arith.addf %231, %234 : vector<16x1xf32>
    %236 = math.rsqrt %235 : vector<16x1xf32>
    %237 = vector.broadcast %236 : vector<16x1xf32> to vector<16x128xf32>
    %238 = arith.mulf %233, %237 : vector<16x128xf32>
    %239 = vector.broadcast %218 : vector<1x128xf32> to vector<16x128xf32>
    %240 = arith.mulf %238, %239 : vector<16x128xf32>
    %241 = vector.broadcast %220 : vector<1x128xf32> to vector<16x128xf32>
    %242 = arith.addf %240, %241 : vector<16x128xf32>
    %243 = arith.truncf %242 : vector<16x128xf32> to vector<16x128xbf16>
    %c0_97 = arith.constant 0 : index
    %c0_98 = arith.constant 0 : index
    %c0_99 = arith.constant 0 : index
    %244 = vector.load %arg15[%c0_97, %c0_98, %c0_99] : memref<2x128x256xbf16, #tpu.memory_space<vmem>>, vector<1x128x256xbf16>
    %245 = vector.shape_cast %244 : vector<1x128x256xbf16> to vector<128x256xbf16>
    %cst_100 = arith.constant dense<0.000000e+00> : vector<16x256xf32>
    %246 = tpu.matmul %243, %245, %cst_100 {dimension_numbers = #tpu.dot_dimension_numbers<[1], [0], [0], [1], [0, 0, 1, 1], [], []>} : vector<16x128xbf16>, vector<128x256xbf16>, vector<16x256xf32> -> vector<16x256xf32>
    %c0_101 = arith.constant 0 : index
    %c0_102 = arith.constant 0 : index
    %c0_103 = arith.constant 0 : index
    %247 = vector.load %arg16[%c0_101, %c0_102, %c0_103] : memref<2x1x256xf32, #tpu.memory_space<vmem>>, vector<1x1x256xf32>
    %248 = vector.shape_cast %247 : vector<1x1x256xf32> to vector<1x256xf32>
    %249 = vector.broadcast %248 : vector<1x256xf32> to vector<16x256xf32>
    %250 = arith.addf %246, %249 : vector<16x256xf32>
    %251 = arith.mulf %250, %250 : vector<16x256xf32>
    %252 = arith.mulf %250, %251 : vector<16x256xf32>
    %cst_104 = arith.constant 4.471500e-02 : f32
    %253 = vector.broadcast %cst_104 : f32 to vector<16x256xf32>
    %254 = arith.mulf %253, %252 : vector<16x256xf32>
    %255 = arith.addf %250, %254 : vector<16x256xf32>
    %cst_105 = arith.constant 0.797884583 : f32
    %256 = vector.broadcast %cst_105 : f32 to vector<16x256xf32>
    %257 = arith.mulf %256, %255 : vector<16x256xf32>
    %258 = math.tanh %257 : vector<16x256xf32>
    %cst_106 = arith.constant 1.000000e+00 : f32
    %259 = vector.broadcast %cst_106 : f32 to vector<16x256xf32>
    %260 = arith.addf %259, %258 : vector<16x256xf32>
    %cst_107 = arith.constant 5.000000e-01 : f32
    %261 = vector.broadcast %cst_107 : f32 to vector<16x256xf32>
    %262 = arith.mulf %261, %260 : vector<16x256xf32>
    %263 = arith.mulf %250, %262 : vector<16x256xf32>
    %264 = arith.truncf %263 : vector<16x256xf32> to vector<16x256xbf16>
    %c0_108 = arith.constant 0 : index
    %c0_109 = arith.constant 0 : index
    %c0_110 = arith.constant 0 : index
    %265 = vector.load %arg17[%c0_108, %c0_109, %c0_110] : memref<2x256x128xbf16, #tpu.memory_space<vmem>>, vector<1x256x128xbf16>
    %266 = vector.shape_cast %265 : vector<1x256x128xbf16> to vector<256x128xbf16>
    %cst_111 = arith.constant dense<0.000000e+00> : vector<16x128xf32>
    %267 = tpu.matmul %264, %266, %cst_111 {dimension_numbers = #tpu.dot_dimension_numbers<[1], [0], [0], [1], [0, 0, 1, 1], [], []>} : vector<16x256xbf16>, vector<256x128xbf16>, vector<16x128xf32> -> vector<16x128xf32>
    %c0_112 = arith.constant 0 : index
    %c0_113 = arith.constant 0 : index
    %c0_114 = arith.constant 0 : index
    %268 = vector.load %arg18[%c0_112, %c0_113, %c0_114] : memref<2x1x128xf32, #tpu.memory_space<vmem>>, vector<1x1x128xf32>
    %269 = vector.shape_cast %268 : vector<1x1x128xf32> to vector<1x128xf32>
    %270 = vector.broadcast %269 : vector<1x128xf32> to vector<16x128xf32>
    %271 = arith.addf %267, %270 : vector<16x128xf32>
    %272 = arith.addf %242, %271 : vector<16x128xf32>
    %c0_115 = arith.constant 0 : index
    %c0_116 = arith.constant 0 : index
    %c0_117 = arith.constant 0 : index
    %273 = vector.load %arg19[%c0_115, %c0_116, %c0_117] : memref<2x1x128xf32, #tpu.memory_space<vmem>>, vector<1x1x128xf32>
    %274 = vector.shape_cast %273 : vector<1x1x128xf32> to vector<1x128xf32>
    %c0_118 = arith.constant 0 : index
    %c0_119 = arith.constant 0 : index
    %c0_120 = arith.constant 0 : index
    %275 = vector.load %arg20[%c0_118, %c0_119, %c0_120] : memref<2x1x128xf32, #tpu.memory_space<vmem>>, vector<1x1x128xf32>
    %276 = vector.shape_cast %275 : vector<1x1x128xf32> to vector<1x128xf32>
    %cst_121 = arith.constant dense<0.000000e+00> : vector<16xf32>
    %277 = vector.multi_reduction <add>, %272, %cst_121 [1] : vector<16x128xf32> to vector<16xf32>
    %278 = vector.shape_cast %277 : vector<16xf32> to vector<16x1xf32>
    %cst_122 = arith.constant 1.280000e+02 : f32
    %279 = vector.broadcast %cst_122 : f32 to vector<16x1xf32>
    %280 = arith.divf %278, %279 : vector<16x1xf32>
    %281 = vector.broadcast %280 : vector<16x1xf32> to vector<16x128xf32>
    %282 = arith.subf %272, %281 : vector<16x128xf32>
    %283 = arith.mulf %282, %282 : vector<16x128xf32>
    %cst_123 = arith.constant dense<0.000000e+00> : vector<16xf32>
    %284 = vector.multi_reduction <add>, %283, %cst_123 [1] : vector<16x128xf32> to vector<16xf32>
    %285 = vector.shape_cast %284 : vector<16xf32> to vector<16x1xf32>
    %cst_124 = arith.constant 1.280000e+02 : f32
    %286 = vector.broadcast %cst_124 : f32 to vector<16x1xf32>
    %287 = arith.divf %285, %286 : vector<16x1xf32>
    %288 = vector.broadcast %280 : vector<16x1xf32> to vector<16x128xf32>
    %289 = arith.subf %272, %288 : vector<16x128xf32>
    %cst_125 = arith.constant 9.99999996E-13 : f32
    %290 = vector.broadcast %cst_125 : f32 to vector<16x1xf32>
    %291 = arith.addf %287, %290 : vector<16x1xf32>
    %292 = math.rsqrt %291 : vector<16x1xf32>
    %293 = vector.broadcast %292 : vector<16x1xf32> to vector<16x128xf32>
    %294 = arith.mulf %289, %293 : vector<16x128xf32>
    %295 = vector.broadcast %274 : vector<1x128xf32> to vector<16x128xf32>
    %296 = arith.mulf %294, %295 : vector<16x128xf32>
    %297 = vector.broadcast %276 : vector<1x128xf32> to vector<16x128xf32>
    %298 = arith.addf %296, %297 : vector<16x128xf32>
    %299 = arith.truncf %298 : vector<16x128xf32> to vector<16x128xbf16>
    %c1 = arith.constant 1 : index
    %c0_126 = arith.constant 0 : index
    %c0_127 = arith.constant 0 : index
    %300 = vector.load %arg5[%c1, %c0_126, %c0_127] : memref<2x128x128xbf16, #tpu.memory_space<vmem>>, vector<1x128x128xbf16>
    %301 = vector.shape_cast %300 : vector<1x128x128xbf16> to vector<128x128xbf16>
    %cst_128 = arith.constant dense<0.000000e+00> : vector<16x128xf32>
    %302 = tpu.matmul %299, %301, %cst_128 {dimension_numbers = #tpu.dot_dimension_numbers<[1], [0], [0], [1], [0, 0, 1, 1], [], []>} : vector<16x128xbf16>, vector<128x128xbf16>, vector<16x128xf32> -> vector<16x128xf32>
    %c1_129 = arith.constant 1 : index
    %c0_130 = arith.constant 0 : index
    %c0_131 = arith.constant 0 : index
    %303 = vector.load %arg6[%c1_129, %c0_130, %c0_131] : memref<2x1x128xf32, #tpu.memory_space<vmem>>, vector<1x1x128xf32>
    %304 = vector.shape_cast %303 : vector<1x1x128xf32> to vector<1x128xf32>
    %305 = vector.broadcast %304 : vector<1x128xf32> to vector<16x128xf32>
    %306 = arith.addf %302, %305 : vector<16x128xf32>
    %c1_132 = arith.constant 1 : index
    %c0_133 = arith.constant 0 : index
    %c0_134 = arith.constant 0 : index
    %307 = vector.load %arg7[%c1_132, %c0_133, %c0_134] : memref<2x128x128xbf16, #tpu.memory_space<vmem>>, vector<1x128x128xbf16>
    %308 = vector.shape_cast %307 : vector<1x128x128xbf16> to vector<128x128xbf16>
    %cst_135 = arith.constant dense<0.000000e+00> : vector<16x128xf32>
    %309 = tpu.matmul %299, %308, %cst_135 {dimension_numbers = #tpu.dot_dimension_numbers<[1], [0], [0], [1], [0, 0, 1, 1], [], []>} : vector<16x128xbf16>, vector<128x128xbf16>, vector<16x128xf32> -> vector<16x128xf32>
    %c1_136 = arith.constant 1 : index
    %c0_137 = arith.constant 0 : index
    %c0_138 = arith.constant 0 : index
    %310 = vector.load %arg8[%c1_136, %c0_137, %c0_138] : memref<2x1x128xf32, #tpu.memory_space<vmem>>, vector<1x1x128xf32>
    %311 = vector.shape_cast %310 : vector<1x1x128xf32> to vector<1x128xf32>
    %312 = vector.broadcast %311 : vector<1x128xf32> to vector<16x128xf32>
    %313 = arith.addf %309, %312 : vector<16x128xf32>
    %c1_139 = arith.constant 1 : index
    %c0_140 = arith.constant 0 : index
    %c0_141 = arith.constant 0 : index
    %314 = vector.load %arg9[%c1_139, %c0_140, %c0_141] : memref<2x128x128xbf16, #tpu.memory_space<vmem>>, vector<1x128x128xbf16>
    %315 = vector.shape_cast %314 : vector<1x128x128xbf16> to vector<128x128xbf16>
    %cst_142 = arith.constant dense<0.000000e+00> : vector<16x128xf32>
    %316 = tpu.matmul %299, %315, %cst_142 {dimension_numbers = #tpu.dot_dimension_numbers<[1], [0], [0], [1], [0, 0, 1, 1], [], []>} : vector<16x128xbf16>, vector<128x128xbf16>, vector<16x128xf32> -> vector<16x128xf32>
    %c1_143 = arith.constant 1 : index
    %c0_144 = arith.constant 0 : index
    %c0_145 = arith.constant 0 : index
    %317 = vector.load %arg10[%c1_143, %c0_144, %c0_145] : memref<2x1x128xf32, #tpu.memory_space<vmem>>, vector<1x1x128xf32>
    %318 = vector.shape_cast %317 : vector<1x1x128xf32> to vector<1x128xf32>
    %319 = vector.broadcast %318 : vector<1x128xf32> to vector<16x128xf32>
    %320 = arith.addf %316, %319 : vector<16x128xf32>
    %cst_146 = arith.constant 0.176776692 : f32
    %321 = vector.broadcast %cst_146 : f32 to vector<16x128xf32>
    %322 = arith.mulf %306, %321 : vector<16x128xf32>
    %323 = arith.truncf %322 : vector<16x128xf32> to vector<16x128xbf16>
    %324 = arith.truncf %313 : vector<16x128xf32> to vector<16x128xbf16>
    %325 = arith.truncf %320 : vector<16x128xf32> to vector<16x128xbf16>
    %326 = vector.extract_strided_slice %25 {offsets = [0, 0], sizes = [1, 8], strides = [1, 1]} : vector<2x8xf32> to vector<1x8xf32>
    %327 = vector.extract_strided_slice %323 {offsets = [0, 0], sizes = [8, 32], strides = [1, 1]} : vector<16x128xbf16> to vector<8x32xbf16>
    %328 = vector.extract_strided_slice %324 {offsets = [0, 0], sizes = [8, 32], strides = [1, 1]} : vector<16x128xbf16> to vector<8x32xbf16>
    %329 = vector.extract_strided_slice %325 {offsets = [0, 0], sizes = [8, 32], strides = [1, 1]} : vector<16x128xbf16> to vector<8x32xbf16>
    %cst_147 = arith.constant dense<0.000000e+00> : vector<8x8xf32>
    %330 = tpu.matmul %327, %328, %cst_147 {dimension_numbers = #tpu.dot_dimension_numbers<[1], [1], [0], [0], [0, 0, 1, 0], [], []>} : vector<8x32xbf16>, vector<8x32xbf16>, vector<8x8xf32> -> vector<8x8xf32>
    %331 = vector.broadcast %326 : vector<1x8xf32> to vector<8x8xf32>
    %332 = arith.addf %330, %331 : vector<8x8xf32>
    %cst_148 = arith.constant dense<0xFF800000> : vector<8xf32>
    %333 = vector.multi_reduction <maximumf>, %332, %cst_148 [1] : vector<8x8xf32> to vector<8xf32>
    %334 = vector.shape_cast %333 : vector<8xf32> to vector<8x1xf32>
    %335 = vector.broadcast %334 : vector<8x1xf32> to vector<8x8xf32>
    %336 = arith.subf %332, %335 : vector<8x8xf32>
    %337 = math.exp %336 : vector<8x8xf32>
    %cst_149 = arith.constant dense<0.000000e+00> : vector<8xf32>
    %338 = vector.multi_reduction <add>, %337, %cst_149 [1] : vector<8x8xf32> to vector<8xf32>
    %339 = vector.shape_cast %338 : vector<8xf32> to vector<8x1xf32>
    %340 = tpu.reciprocal %339 {approx = true} : vector<8x1xf32> -> vector<8x1xf32>
    %341 = vector.broadcast %340 : vector<8x1xf32> to vector<8x8xf32>
    %342 = arith.mulf %337, %341 : vector<8x8xf32>
    %343 = arith.truncf %342 : vector<8x8xf32> to vector<8x8xbf16>
    %cst_150 = arith.constant dense<0.000000e+00> : vector<8x32xf32>
    %344 = tpu.matmul %343, %329, %cst_150 {dimension_numbers = #tpu.dot_dimension_numbers<[1], [0], [0], [1], [0, 0, 1, 1], [], []>} : vector<8x8xbf16>, vector<8x32xbf16>, vector<8x32xf32> -> vector<8x32xf32>
    %c0_151 = arith.constant 0 : index
    %c0_152 = arith.constant 0 : index
    %345 = vector.load %arg24[%c0_151, %c0_152] : memref<16x128xf32, #tpu.memory_space<vmem>>, vector<8x32xf32>
    tpu.vector_store %arg24[%c0_151, %c0_152], %344 {strides = array<i32>} : memref<16x128xf32, #tpu.memory_space<vmem>>, vector<8x32xf32>,
    %346 = vector.extract_strided_slice %323 {offsets = [0, 32], sizes = [8, 32], strides = [1, 1]} : vector<16x128xbf16> to vector<8x32xbf16>
    %347 = vector.extract_strided_slice %324 {offsets = [0, 32], sizes = [8, 32], strides = [1, 1]} : vector<16x128xbf16> to vector<8x32xbf16>
    %348 = vector.extract_strided_slice %325 {offsets = [0, 32], sizes = [8, 32], strides = [1, 1]} : vector<16x128xbf16> to vector<8x32xbf16>
    %cst_153 = arith.constant dense<0.000000e+00> : vector<8x8xf32>
    %349 = tpu.matmul %346, %347, %cst_153 {dimension_numbers = #tpu.dot_dimension_numbers<[1], [1], [0], [0], [0, 0, 1, 0], [], []>} : vector<8x32xbf16>, vector<8x32xbf16>, vector<8x8xf32> -> vector<8x8xf32>
    %350 = vector.broadcast %326 : vector<1x8xf32> to vector<8x8xf32>
    %351 = arith.addf %349, %350 : vector<8x8xf32>
    %cst_154 = arith.constant dense<0xFF800000> : vector<8xf32>
    %352 = vector.multi_reduction <maximumf>, %351, %cst_154 [1] : vector<8x8xf32> to vector<8xf32>
    %353 = vector.shape_cast %352 : vector<8xf32> to vector<8x1xf32>
    %354 = vector.broadcast %353 : vector<8x1xf32> to vector<8x8xf32>
    %355 = arith.subf %351, %354 : vector<8x8xf32>
    %356 = math.exp %355 : vector<8x8xf32>
    %cst_155 = arith.constant dense<0.000000e+00> : vector<8xf32>
    %357 = vector.multi_reduction <add>, %356, %cst_155 [1] : vector<8x8xf32> to vector<8xf32>
    %358 = vector.shape_cast %357 : vector<8xf32> to vector<8x1xf32>
    %359 = tpu.reciprocal %358 {approx = true} : vector<8x1xf32> -> vector<8x1xf32>
    %360 = vector.broadcast %359 : vector<8x1xf32> to vector<8x8xf32>
    %361 = arith.mulf %356, %360 : vector<8x8xf32>
    %362 = arith.truncf %361 : vector<8x8xf32> to vector<8x8xbf16>
    %cst_156 = arith.constant dense<0.000000e+00> : vector<8x32xf32>
    %363 = tpu.matmul %362, %348, %cst_156 {dimension_numbers = #tpu.dot_dimension_numbers<[1], [0], [0], [1], [0, 0, 1, 1], [], []>} : vector<8x8xbf16>, vector<8x32xbf16>, vector<8x32xf32> -> vector<8x32xf32>
    %c0_157 = arith.constant 0 : index
    %c32_158 = arith.constant 32 : index
    %364 = vector.load %arg24[%c0_157, %c32_158] : memref<16x128xf32, #tpu.memory_space<vmem>>, vector<8x32xf32>
    tpu.vector_store %arg24[%c0_157, %c32_158], %363 {strides = array<i32>} : memref<16x128xf32, #tpu.memory_space<vmem>>, vector<8x32xf32>,
    %365 = vector.extract_strided_slice %323 {offsets = [0, 64], sizes = [8, 32], strides = [1, 1]} : vector<16x128xbf16> to vector<8x32xbf16>
    %366 = vector.extract_strided_slice %324 {offsets = [0, 64], sizes = [8, 32], strides = [1, 1]} : vector<16x128xbf16> to vector<8x32xbf16>
    %367 = vector.extract_strided_slice %325 {offsets = [0, 64], sizes = [8, 32], strides = [1, 1]} : vector<16x128xbf16> to vector<8x32xbf16>
    %cst_159 = arith.constant dense<0.000000e+00> : vector<8x8xf32>
    %368 = tpu.matmul %365, %366, %cst_159 {dimension_numbers = #tpu.dot_dimension_numbers<[1], [1], [0], [0], [0, 0, 1, 0], [], []>} : vector<8x32xbf16>, vector<8x32xbf16>, vector<8x8xf32> -> vector<8x8xf32>
    %369 = vector.broadcast %326 : vector<1x8xf32> to vector<8x8xf32>
    %370 = arith.addf %368, %369 : vector<8x8xf32>
    %cst_160 = arith.constant dense<0xFF800000> : vector<8xf32>
    %371 = vector.multi_reduction <maximumf>, %370, %cst_160 [1] : vector<8x8xf32> to vector<8xf32>
    %372 = vector.shape_cast %371 : vector<8xf32> to vector<8x1xf32>
    %373 = vector.broadcast %372 : vector<8x1xf32> to vector<8x8xf32>
    %374 = arith.subf %370, %373 : vector<8x8xf32>
    %375 = math.exp %374 : vector<8x8xf32>
    %cst_161 = arith.constant dense<0.000000e+00> : vector<8xf32>
    %376 = vector.multi_reduction <add>, %375, %cst_161 [1] : vector<8x8xf32> to vector<8xf32>
    %377 = vector.shape_cast %376 : vector<8xf32> to vector<8x1xf32>
    %378 = tpu.reciprocal %377 {approx = true} : vector<8x1xf32> -> vector<8x1xf32>
    %379 = vector.broadcast %378 : vector<8x1xf32> to vector<8x8xf32>
    %380 = arith.mulf %375, %379 : vector<8x8xf32>
    %381 = arith.truncf %380 : vector<8x8xf32> to vector<8x8xbf16>
    %cst_162 = arith.constant dense<0.000000e+00> : vector<8x32xf32>
    %382 = tpu.matmul %381, %367, %cst_162 {dimension_numbers = #tpu.dot_dimension_numbers<[1], [0], [0], [1], [0, 0, 1, 1], [], []>} : vector<8x8xbf16>, vector<8x32xbf16>, vector<8x32xf32> -> vector<8x32xf32>
    %c0_163 = arith.constant 0 : index
    %c64_164 = arith.constant 64 : index
    %383 = vector.load %arg24[%c0_163, %c64_164] : memref<16x128xf32, #tpu.memory_space<vmem>>, vector<8x32xf32>
    tpu.vector_store %arg24[%c0_163, %c64_164], %382 {strides = array<i32>} : memref<16x128xf32, #tpu.memory_space<vmem>>, vector<8x32xf32>,
    %384 = vector.extract_strided_slice %323 {offsets = [0, 96], sizes = [8, 32], strides = [1, 1]} : vector<16x128xbf16> to vector<8x32xbf16>
    %385 = vector.extract_strided_slice %324 {offsets = [0, 96], sizes = [8, 32], strides = [1, 1]} : vector<16x128xbf16> to vector<8x32xbf16>
    %386 = vector.extract_strided_slice %325 {offsets = [0, 96], sizes = [8, 32], strides = [1, 1]} : vector<16x128xbf16> to vector<8x32xbf16>
    %cst_165 = arith.constant dense<0.000000e+00> : vector<8x8xf32>
    %387 = tpu.matmul %384, %385, %cst_165 {dimension_numbers = #tpu.dot_dimension_numbers<[1], [1], [0], [0], [0, 0, 1, 0], [], []>} : vector<8x32xbf16>, vector<8x32xbf16>, vector<8x8xf32> -> vector<8x8xf32>
    %388 = vector.broadcast %326 : vector<1x8xf32> to vector<8x8xf32>
    %389 = arith.addf %387, %388 : vector<8x8xf32>
    %cst_166 = arith.constant dense<0xFF800000> : vector<8xf32>
    %390 = vector.multi_reduction <maximumf>, %389, %cst_166 [1] : vector<8x8xf32> to vector<8xf32>
    %391 = vector.shape_cast %390 : vector<8xf32> to vector<8x1xf32>
    %392 = vector.broadcast %391 : vector<8x1xf32> to vector<8x8xf32>
    %393 = arith.subf %389, %392 : vector<8x8xf32>
    %394 = math.exp %393 : vector<8x8xf32>
    %cst_167 = arith.constant dense<0.000000e+00> : vector<8xf32>
    %395 = vector.multi_reduction <add>, %394, %cst_167 [1] : vector<8x8xf32> to vector<8xf32>
    %396 = vector.shape_cast %395 : vector<8xf32> to vector<8x1xf32>
    %397 = tpu.reciprocal %396 {approx = true} : vector<8x1xf32> -> vector<8x1xf32>
    %398 = vector.broadcast %397 : vector<8x1xf32> to vector<8x8xf32>
    %399 = arith.mulf %394, %398 : vector<8x8xf32>
    %400 = arith.truncf %399 : vector<8x8xf32> to vector<8x8xbf16>
    %cst_168 = arith.constant dense<0.000000e+00> : vector<8x32xf32>
    %401 = tpu.matmul %400, %386, %cst_168 {dimension_numbers = #tpu.dot_dimension_numbers<[1], [0], [0], [1], [0, 0, 1, 1], [], []>} : vector<8x8xbf16>, vector<8x32xbf16>, vector<8x32xf32> -> vector<8x32xf32>
    %c0_169 = arith.constant 0 : index
    %c96_170 = arith.constant 96 : index
    %402 = vector.load %arg24[%c0_169, %c96_170] : memref<16x128xf32, #tpu.memory_space<vmem>>, vector<8x32xf32>
    tpu.vector_store %arg24[%c0_169, %c96_170], %401 {strides = array<i32>} : memref<16x128xf32, #tpu.memory_space<vmem>>, vector<8x32xf32>,
    %403 = vector.extract_strided_slice %25 {offsets = [1, 0], sizes = [1, 8], strides = [1, 1]} : vector<2x8xf32> to vector<1x8xf32>
    %404 = vector.extract_strided_slice %323 {offsets = [8, 0], sizes = [8, 32], strides = [1, 1]} : vector<16x128xbf16> to vector<8x32xbf16>
    %405 = vector.extract_strided_slice %324 {offsets = [8, 0], sizes = [8, 32], strides = [1, 1]} : vector<16x128xbf16> to vector<8x32xbf16>
    %406 = vector.extract_strided_slice %325 {offsets = [8, 0], sizes = [8, 32], strides = [1, 1]} : vector<16x128xbf16> to vector<8x32xbf16>
    %cst_171 = arith.constant dense<0.000000e+00> : vector<8x8xf32>
    %407 = tpu.matmul %404, %405, %cst_171 {dimension_numbers = #tpu.dot_dimension_numbers<[1], [1], [0], [0], [0, 0, 1, 0], [], []>} : vector<8x32xbf16>, vector<8x32xbf16>, vector<8x8xf32> -> vector<8x8xf32>
    %408 = vector.broadcast %403 : vector<1x8xf32> to vector<8x8xf32>
    %409 = arith.addf %407, %408 : vector<8x8xf32>
    %cst_172 = arith.constant dense<0xFF800000> : vector<8xf32>
    %410 = vector.multi_reduction <maximumf>, %409, %cst_172 [1] : vector<8x8xf32> to vector<8xf32>
    %411 = vector.shape_cast %410 : vector<8xf32> to vector<8x1xf32>
    %412 = vector.broadcast %411 : vector<8x1xf32> to vector<8x8xf32>
    %413 = arith.subf %409, %412 : vector<8x8xf32>
    %414 = math.exp %413 : vector<8x8xf32>
    %cst_173 = arith.constant dense<0.000000e+00> : vector<8xf32>
    %415 = vector.multi_reduction <add>, %414, %cst_173 [1] : vector<8x8xf32> to vector<8xf32>
    %416 = vector.shape_cast %415 : vector<8xf32> to vector<8x1xf32>
    %417 = tpu.reciprocal %416 {approx = true} : vector<8x1xf32> -> vector<8x1xf32>
    %418 = vector.broadcast %417 : vector<8x1xf32> to vector<8x8xf32>
    %419 = arith.mulf %414, %418 : vector<8x8xf32>
    %420 = arith.truncf %419 : vector<8x8xf32> to vector<8x8xbf16>
    %cst_174 = arith.constant dense<0.000000e+00> : vector<8x32xf32>
    %421 = tpu.matmul %420, %406, %cst_174 {dimension_numbers = #tpu.dot_dimension_numbers<[1], [0], [0], [1], [0, 0, 1, 1], [], []>} : vector<8x8xbf16>, vector<8x32xbf16>, vector<8x32xf32> -> vector<8x32xf32>
    %c8_175 = arith.constant 8 : index
    %c0_176 = arith.constant 0 : index
    %422 = vector.load %arg24[%c8_175, %c0_176] : memref<16x128xf32, #tpu.memory_space<vmem>>, vector<8x32xf32>
    tpu.vector_store %arg24[%c8_175, %c0_176], %421 {strides = array<i32>} : memref<16x128xf32, #tpu.memory_space<vmem>>, vector<8x32xf32>,
    %423 = vector.extract_strided_slice %323 {offsets = [8, 32], sizes = [8, 32], strides = [1, 1]} : vector<16x128xbf16> to vector<8x32xbf16>
    %424 = vector.extract_strided_slice %324 {offsets = [8, 32], sizes = [8, 32], strides = [1, 1]} : vector<16x128xbf16> to vector<8x32xbf16>
    %425 = vector.extract_strided_slice %325 {offsets = [8, 32], sizes = [8, 32], strides = [1, 1]} : vector<16x128xbf16> to vector<8x32xbf16>
    %cst_177 = arith.constant dense<0.000000e+00> : vector<8x8xf32>
    %426 = tpu.matmul %423, %424, %cst_177 {dimension_numbers = #tpu.dot_dimension_numbers<[1], [1], [0], [0], [0, 0, 1, 0], [], []>} : vector<8x32xbf16>, vector<8x32xbf16>, vector<8x8xf32> -> vector<8x8xf32>
    %427 = vector.broadcast %403 : vector<1x8xf32> to vector<8x8xf32>
    %428 = arith.addf %426, %427 : vector<8x8xf32>
    %cst_178 = arith.constant dense<0xFF800000> : vector<8xf32>
    %429 = vector.multi_reduction <maximumf>, %428, %cst_178 [1] : vector<8x8xf32> to vector<8xf32>
    %430 = vector.shape_cast %429 : vector<8xf32> to vector<8x1xf32>
    %431 = vector.broadcast %430 : vector<8x1xf32> to vector<8x8xf32>
    %432 = arith.subf %428, %431 : vector<8x8xf32>
    %433 = math.exp %432 : vector<8x8xf32>
    %cst_179 = arith.constant dense<0.000000e+00> : vector<8xf32>
    %434 = vector.multi_reduction <add>, %433, %cst_179 [1] : vector<8x8xf32> to vector<8xf32>
    %435 = vector.shape_cast %434 : vector<8xf32> to vector<8x1xf32>
    %436 = tpu.reciprocal %435 {approx = true} : vector<8x1xf32> -> vector<8x1xf32>
    %437 = vector.broadcast %436 : vector<8x1xf32> to vector<8x8xf32>
    %438 = arith.mulf %433, %437 : vector<8x8xf32>
    %439 = arith.truncf %438 : vector<8x8xf32> to vector<8x8xbf16>
    %cst_180 = arith.constant dense<0.000000e+00> : vector<8x32xf32>
    %440 = tpu.matmul %439, %425, %cst_180 {dimension_numbers = #tpu.dot_dimension_numbers<[1], [0], [0], [1], [0, 0, 1, 1], [], []>} : vector<8x8xbf16>, vector<8x32xbf16>, vector<8x32xf32> -> vector<8x32xf32>
    %c8_181 = arith.constant 8 : index
    %c32_182 = arith.constant 32 : index
    %441 = vector.load %arg24[%c8_181, %c32_182] : memref<16x128xf32, #tpu.memory_space<vmem>>, vector<8x32xf32>
    tpu.vector_store %arg24[%c8_181, %c32_182], %440 {strides = array<i32>} : memref<16x128xf32, #tpu.memory_space<vmem>>, vector<8x32xf32>,
    %442 = vector.extract_strided_slice %323 {offsets = [8, 64], sizes = [8, 32], strides = [1, 1]} : vector<16x128xbf16> to vector<8x32xbf16>
    %443 = vector.extract_strided_slice %324 {offsets = [8, 64], sizes = [8, 32], strides = [1, 1]} : vector<16x128xbf16> to vector<8x32xbf16>
    %444 = vector.extract_strided_slice %325 {offsets = [8, 64], sizes = [8, 32], strides = [1, 1]} : vector<16x128xbf16> to vector<8x32xbf16>
    %cst_183 = arith.constant dense<0.000000e+00> : vector<8x8xf32>
    %445 = tpu.matmul %442, %443, %cst_183 {dimension_numbers = #tpu.dot_dimension_numbers<[1], [1], [0], [0], [0, 0, 1, 0], [], []>} : vector<8x32xbf16>, vector<8x32xbf16>, vector<8x8xf32> -> vector<8x8xf32>
    %446 = vector.broadcast %403 : vector<1x8xf32> to vector<8x8xf32>
    %447 = arith.addf %445, %446 : vector<8x8xf32>
    %cst_184 = arith.constant dense<0xFF800000> : vector<8xf32>
    %448 = vector.multi_reduction <maximumf>, %447, %cst_184 [1] : vector<8x8xf32> to vector<8xf32>
    %449 = vector.shape_cast %448 : vector<8xf32> to vector<8x1xf32>
    %450 = vector.broadcast %449 : vector<8x1xf32> to vector<8x8xf32>
    %451 = arith.subf %447, %450 : vector<8x8xf32>
    %452 = math.exp %451 : vector<8x8xf32>
    %cst_185 = arith.constant dense<0.000000e+00> : vector<8xf32>
    %453 = vector.multi_reduction <add>, %452, %cst_185 [1] : vector<8x8xf32> to vector<8xf32>
    %454 = vector.shape_cast %453 : vector<8xf32> to vector<8x1xf32>
    %455 = tpu.reciprocal %454 {approx = true} : vector<8x1xf32> -> vector<8x1xf32>
    %456 = vector.broadcast %455 : vector<8x1xf32> to vector<8x8xf32>
    %457 = arith.mulf %452, %456 : vector<8x8xf32>
    %458 = arith.truncf %457 : vector<8x8xf32> to vector<8x8xbf16>
    %cst_186 = arith.constant dense<0.000000e+00> : vector<8x32xf32>
    %459 = tpu.matmul %458, %444, %cst_186 {dimension_numbers = #tpu.dot_dimension_numbers<[1], [0], [0], [1], [0, 0, 1, 1], [], []>} : vector<8x8xbf16>, vector<8x32xbf16>, vector<8x32xf32> -> vector<8x32xf32>
    %c8_187 = arith.constant 8 : index
    %c64_188 = arith.constant 64 : index
    %460 = vector.load %arg24[%c8_187, %c64_188] : memref<16x128xf32, #tpu.memory_space<vmem>>, vector<8x32xf32>
    tpu.vector_store %arg24[%c8_187, %c64_188], %459 {strides = array<i32>} : memref<16x128xf32, #tpu.memory_space<vmem>>, vector<8x32xf32>,
    %461 = vector.extract_strided_slice %323 {offsets = [8, 96], sizes = [8, 32], strides = [1, 1]} : vector<16x128xbf16> to vector<8x32xbf16>
    %462 = vector.extract_strided_slice %324 {offsets = [8, 96], sizes = [8, 32], strides = [1, 1]} : vector<16x128xbf16> to vector<8x32xbf16>
    %463 = vector.extract_strided_slice %325 {offsets = [8, 96], sizes = [8, 32], strides = [1, 1]} : vector<16x128xbf16> to vector<8x32xbf16>
    %cst_189 = arith.constant dense<0.000000e+00> : vector<8x8xf32>
    %464 = tpu.matmul %461, %462, %cst_189 {dimension_numbers = #tpu.dot_dimension_numbers<[1], [1], [0], [0], [0, 0, 1, 0], [], []>} : vector<8x32xbf16>, vector<8x32xbf16>, vector<8x8xf32> -> vector<8x8xf32>
    %465 = vector.broadcast %403 : vector<1x8xf32> to vector<8x8xf32>
    %466 = arith.addf %464, %465 : vector<8x8xf32>
    %cst_190 = arith.constant dense<0xFF800000> : vector<8xf32>
    %467 = vector.multi_reduction <maximumf>, %466, %cst_190 [1] : vector<8x8xf32> to vector<8xf32>
    %468 = vector.shape_cast %467 : vector<8xf32> to vector<8x1xf32>
    %469 = vector.broadcast %468 : vector<8x1xf32> to vector<8x8xf32>
    %470 = arith.subf %466, %469 : vector<8x8xf32>
    %471 = math.exp %470 : vector<8x8xf32>
    %cst_191 = arith.constant dense<0.000000e+00> : vector<8xf32>
    %472 = vector.multi_reduction <add>, %471, %cst_191 [1] : vector<8x8xf32> to vector<8xf32>
    %473 = vector.shape_cast %472 : vector<8xf32> to vector<8x1xf32>
    %474 = tpu.reciprocal %473 {approx = true} : vector<8x1xf32> -> vector<8x1xf32>
    %475 = vector.broadcast %474 : vector<8x1xf32> to vector<8x8xf32>
    %476 = arith.mulf %471, %475 : vector<8x8xf32>
    %477 = arith.truncf %476 : vector<8x8xf32> to vector<8x8xbf16>
    %cst_192 = arith.constant dense<0.000000e+00> : vector<8x32xf32>
    %478 = tpu.matmul %477, %463, %cst_192 {dimension_numbers = #tpu.dot_dimension_numbers<[1], [0], [0], [1], [0, 0, 1, 1], [], []>} : vector<8x8xbf16>, vector<8x32xbf16>, vector<8x32xf32> -> vector<8x32xf32>
    %c8_193 = arith.constant 8 : index
    %c96_194 = arith.constant 96 : index
    %479 = vector.load %arg24[%c8_193, %c96_194] : memref<16x128xf32, #tpu.memory_space<vmem>>, vector<8x32xf32>
    tpu.vector_store %arg24[%c8_193, %c96_194], %478 {strides = array<i32>} : memref<16x128xf32, #tpu.memory_space<vmem>>, vector<8x32xf32>,
    %c0_195 = arith.constant 0 : index
    %c0_196 = arith.constant 0 : index
    %480 = vector.load %arg24[%c0_195, %c0_196] : memref<16x128xf32, #tpu.memory_space<vmem>>, vector<16x128xf32>
    %481 = arith.truncf %480 : vector<16x128xf32> to vector<16x128xbf16>
    %c1_197 = arith.constant 1 : index
    %c0_198 = arith.constant 0 : index
    %c0_199 = arith.constant 0 : index
    %482 = vector.load %arg11[%c1_197, %c0_198, %c0_199] : memref<2x128x128xbf16, #tpu.memory_space<vmem>>, vector<1x128x128xbf16>
    %483 = vector.shape_cast %482 : vector<1x128x128xbf16> to vector<128x128xbf16>
    %cst_200 = arith.constant dense<0.000000e+00> : vector<16x128xf32>
    %484 = tpu.matmul %481, %483, %cst_200 {dimension_numbers = #tpu.dot_dimension_numbers<[1], [0], [0], [1], [0, 0, 1, 1], [], []>} : vector<16x128xbf16>, vector<128x128xbf16>, vector<16x128xf32> -> vector<16x128xf32>
    %c1_201 = arith.constant 1 : index
    %c0_202 = arith.constant 0 : index
    %c0_203 = arith.constant 0 : index
    %485 = vector.load %arg12[%c1_201, %c0_202, %c0_203] : memref<2x1x128xf32, #tpu.memory_space<vmem>>, vector<1x1x128xf32>
    %486 = vector.shape_cast %485 : vector<1x1x128xf32> to vector<1x128xf32>
    %487 = vector.broadcast %486 : vector<1x128xf32> to vector<16x128xf32>
    %488 = arith.addf %484, %487 : vector<16x128xf32>
    %489 = arith.addf %298, %488 : vector<16x128xf32>
    %c1_204 = arith.constant 1 : index
    %c0_205 = arith.constant 0 : index
    %c0_206 = arith.constant 0 : index
    %490 = vector.load %arg13[%c1_204, %c0_205, %c0_206] : memref<2x1x128xf32, #tpu.memory_space<vmem>>, vector<1x1x128xf32>
    %491 = vector.shape_cast %490 : vector<1x1x128xf32> to vector<1x128xf32>
    %c1_207 = arith.constant 1 : index
    %c0_208 = arith.constant 0 : index
    %c0_209 = arith.constant 0 : index
    %492 = vector.load %arg14[%c1_207, %c0_208, %c0_209] : memref<2x1x128xf32, #tpu.memory_space<vmem>>, vector<1x1x128xf32>
    %493 = vector.shape_cast %492 : vector<1x1x128xf32> to vector<1x128xf32>
    %cst_210 = arith.constant dense<0.000000e+00> : vector<16xf32>
    %494 = vector.multi_reduction <add>, %489, %cst_210 [1] : vector<16x128xf32> to vector<16xf32>
    %495 = vector.shape_cast %494 : vector<16xf32> to vector<16x1xf32>
    %cst_211 = arith.constant 1.280000e+02 : f32
    %496 = vector.broadcast %cst_211 : f32 to vector<16x1xf32>
    %497 = arith.divf %495, %496 : vector<16x1xf32>
    %498 = vector.broadcast %497 : vector<16x1xf32> to vector<16x128xf32>
    %499 = arith.subf %489, %498 : vector<16x128xf32>
    %500 = arith.mulf %499, %499 : vector<16x128xf32>
    %cst_212 = arith.constant dense<0.000000e+00> : vector<16xf32>
    %501 = vector.multi_reduction <add>, %500, %cst_212 [1] : vector<16x128xf32> to vector<16xf32>
    %502 = vector.shape_cast %501 : vector<16xf32> to vector<16x1xf32>
    %cst_213 = arith.constant 1.280000e+02 : f32
    %503 = vector.broadcast %cst_213 : f32 to vector<16x1xf32>
    %504 = arith.divf %502, %503 : vector<16x1xf32>
    %505 = vector.broadcast %497 : vector<16x1xf32> to vector<16x128xf32>
    %506 = arith.subf %489, %505 : vector<16x128xf32>
    %cst_214 = arith.constant 9.99999996E-13 : f32
    %507 = vector.broadcast %cst_214 : f32 to vector<16x1xf32>
    %508 = arith.addf %504, %507 : vector<16x1xf32>
    %509 = math.rsqrt %508 : vector<16x1xf32>
    %510 = vector.broadcast %509 : vector<16x1xf32> to vector<16x128xf32>
    %511 = arith.mulf %506, %510 : vector<16x128xf32>
    %512 = vector.broadcast %491 : vector<1x128xf32> to vector<16x128xf32>
    %513 = arith.mulf %511, %512 : vector<16x128xf32>
    %514 = vector.broadcast %493 : vector<1x128xf32> to vector<16x128xf32>
    %515 = arith.addf %513, %514 : vector<16x128xf32>
    %516 = arith.truncf %515 : vector<16x128xf32> to vector<16x128xbf16>
    %c1_215 = arith.constant 1 : index
    %c0_216 = arith.constant 0 : index
    %c0_217 = arith.constant 0 : index
    %517 = vector.load %arg15[%c1_215, %c0_216, %c0_217] : memref<2x128x256xbf16, #tpu.memory_space<vmem>>, vector<1x128x256xbf16>
    %518 = vector.shape_cast %517 : vector<1x128x256xbf16> to vector<128x256xbf16>
    %cst_218 = arith.constant dense<0.000000e+00> : vector<16x256xf32>
    %519 = tpu.matmul %516, %518, %cst_218 {dimension_numbers = #tpu.dot_dimension_numbers<[1], [0], [0], [1], [0, 0, 1, 1], [], []>} : vector<16x128xbf16>, vector<128x256xbf16>, vector<16x256xf32> -> vector<16x256xf32>
    %c1_219 = arith.constant 1 : index
    %c0_220 = arith.constant 0 : index
    %c0_221 = arith.constant 0 : index
    %520 = vector.load %arg16[%c1_219, %c0_220, %c0_221] : memref<2x1x256xf32, #tpu.memory_space<vmem>>, vector<1x1x256xf32>
    %521 = vector.shape_cast %520 : vector<1x1x256xf32> to vector<1x256xf32>
    %522 = vector.broadcast %521 : vector<1x256xf32> to vector<16x256xf32>
    %523 = arith.addf %519, %522 : vector<16x256xf32>
    %524 = arith.mulf %523, %523 : vector<16x256xf32>
    %525 = arith.mulf %523, %524 : vector<16x256xf32>
    %cst_222 = arith.constant 4.471500e-02 : f32
    %526 = vector.broadcast %cst_222 : f32 to vector<16x256xf32>
    %527 = arith.mulf %526, %525 : vector<16x256xf32>
    %528 = arith.addf %523, %527 : vector<16x256xf32>
    %cst_223 = arith.constant 0.797884583 : f32
    %529 = vector.broadcast %cst_223 : f32 to vector<16x256xf32>
    %530 = arith.mulf %529, %528 : vector<16x256xf32>
    %531 = math.tanh %530 : vector<16x256xf32>
    %cst_224 = arith.constant 1.000000e+00 : f32
    %532 = vector.broadcast %cst_224 : f32 to vector<16x256xf32>
    %533 = arith.addf %532, %531 : vector<16x256xf32>
    %cst_225 = arith.constant 5.000000e-01 : f32
    %534 = vector.broadcast %cst_225 : f32 to vector<16x256xf32>
    %535 = arith.mulf %534, %533 : vector<16x256xf32>
    %536 = arith.mulf %523, %535 : vector<16x256xf32>
    %537 = arith.truncf %536 : vector<16x256xf32> to vector<16x256xbf16>
    %c1_226 = arith.constant 1 : index
    %c0_227 = arith.constant 0 : index
    %c0_228 = arith.constant 0 : index
    %538 = vector.load %arg17[%c1_226, %c0_227, %c0_228] : memref<2x256x128xbf16, #tpu.memory_space<vmem>>, vector<1x256x128xbf16>
    %539 = vector.shape_cast %538 : vector<1x256x128xbf16> to vector<256x128xbf16>
    %cst_229 = arith.constant dense<0.000000e+00> : vector<16x128xf32>
    %540 = tpu.matmul %537, %539, %cst_229 {dimension_numbers = #tpu.dot_dimension_numbers<[1], [0], [0], [1], [0, 0, 1, 1], [], []>} : vector<16x256xbf16>, vector<256x128xbf16>, vector<16x128xf32> -> vector<16x128xf32>
    %c1_230 = arith.constant 1 : index
    %c0_231 = arith.constant 0 : index
    %c0_232 = arith.constant 0 : index
    %541 = vector.load %arg18[%c1_230, %c0_231, %c0_232] : memref<2x1x128xf32, #tpu.memory_space<vmem>>, vector<1x1x128xf32>
    %542 = vector.shape_cast %541 : vector<1x1x128xf32> to vector<1x128xf32>
    %543 = vector.broadcast %542 : vector<1x128xf32> to vector<16x128xf32>
    %544 = arith.addf %540, %543 : vector<16x128xf32>
    %545 = arith.addf %515, %544 : vector<16x128xf32>
    %c1_233 = arith.constant 1 : index
    %c0_234 = arith.constant 0 : index
    %c0_235 = arith.constant 0 : index
    %546 = vector.load %arg19[%c1_233, %c0_234, %c0_235] : memref<2x1x128xf32, #tpu.memory_space<vmem>>, vector<1x1x128xf32>
    %547 = vector.shape_cast %546 : vector<1x1x128xf32> to vector<1x128xf32>
    %c1_236 = arith.constant 1 : index
    %c0_237 = arith.constant 0 : index
    %c0_238 = arith.constant 0 : index
    %548 = vector.load %arg20[%c1_236, %c0_237, %c0_238] : memref<2x1x128xf32, #tpu.memory_space<vmem>>, vector<1x1x128xf32>
    %549 = vector.shape_cast %548 : vector<1x1x128xf32> to vector<1x128xf32>
    %cst_239 = arith.constant dense<0.000000e+00> : vector<16xf32>
    %550 = vector.multi_reduction <add>, %545, %cst_239 [1] : vector<16x128xf32> to vector<16xf32>
    %551 = vector.shape_cast %550 : vector<16xf32> to vector<16x1xf32>
    %cst_240 = arith.constant 1.280000e+02 : f32
    %552 = vector.broadcast %cst_240 : f32 to vector<16x1xf32>
    %553 = arith.divf %551, %552 : vector<16x1xf32>
    %554 = vector.broadcast %553 : vector<16x1xf32> to vector<16x128xf32>
    %555 = arith.subf %545, %554 : vector<16x128xf32>
    %556 = arith.mulf %555, %555 : vector<16x128xf32>
    %cst_241 = arith.constant dense<0.000000e+00> : vector<16xf32>
    %557 = vector.multi_reduction <add>, %556, %cst_241 [1] : vector<16x128xf32> to vector<16xf32>
    %558 = vector.shape_cast %557 : vector<16xf32> to vector<16x1xf32>
    %cst_242 = arith.constant 1.280000e+02 : f32
    %559 = vector.broadcast %cst_242 : f32 to vector<16x1xf32>
    %560 = arith.divf %558, %559 : vector<16x1xf32>
    %561 = vector.broadcast %553 : vector<16x1xf32> to vector<16x128xf32>
    %562 = arith.subf %545, %561 : vector<16x128xf32>
    %cst_243 = arith.constant 9.99999996E-13 : f32
    %563 = vector.broadcast %cst_243 : f32 to vector<16x1xf32>
    %564 = arith.addf %560, %563 : vector<16x1xf32>
    %565 = math.rsqrt %564 : vector<16x1xf32>
    %566 = vector.broadcast %565 : vector<16x1xf32> to vector<16x128xf32>
    %567 = arith.mulf %562, %566 : vector<16x128xf32>
    %568 = vector.broadcast %547 : vector<1x128xf32> to vector<16x128xf32>
    %569 = arith.mulf %567, %568 : vector<16x128xf32>
    %570 = vector.broadcast %549 : vector<1x128xf32> to vector<16x128xf32>
    %571 = arith.addf %569, %570 : vector<16x128xf32>
    %572 = vector.extract_strided_slice %571 {offsets = [0, 0], sizes = [1, 128], strides = [1, 1]} : vector<16x128xf32> to vector<1x128xf32>
    %573 = vector.extract_strided_slice %571 {offsets = [8, 0], sizes = [1, 128], strides = [1, 1]} : vector<16x128xf32> to vector<1x128xf32>
    %574 = tpu.concatenate %572, %573 in 0 : vector<1x128xf32>, vector<1x128xf32> -> vector<2x128xf32>
    %575 = arith.truncf %574 : vector<2x128xf32> to vector<2x128xbf16>
    %c0_244 = arith.constant 0 : index
    %c0_245 = arith.constant 0 : index
    %576 = vector.load %arg21[%c0_244, %c0_245] : memref<128x128xbf16, #tpu.memory_space<vmem>>, vector<128x128xbf16>
    %cst_246 = arith.constant dense<0.000000e+00> : vector<2x128xf32>
    %577 = tpu.matmul %575, %576, %cst_246 {dimension_numbers = #tpu.dot_dimension_numbers<[1], [0], [0], [1], [0, 0, 1, 1], [], []>} : vector<2x128xbf16>, vector<128x128xbf16>, vector<2x128xf32> -> vector<2x128xf32>
    %c0_247 = arith.constant 0 : index
    %c0_248 = arith.constant 0 : index
    %578 = vector.load %arg22[%c0_247, %c0_248] : memref<1x128xf32, #tpu.memory_space<vmem>>, vector<1x128xf32>
    %579 = vector.broadcast %578 : vector<1x128xf32> to vector<2x128xf32>
    %580 = arith.addf %577, %579 : vector<2x128xf32>
    %581 = math.tanh %580 : vector<2x128xf32>
    %c0_249 = arith.constant 0 : index
    %c0_250 = arith.constant 0 : index
    %582 = vector.load %arg23[%c0_249, %c0_250] : memref<2x128xf32, #tpu.memory_space<vmem>>, vector<2x128xf32>
    tpu.vector_store %arg23[%c0_249, %c0_250], %581 {strides = array<i32>} : memref<2x128xf32, #tpu.memory_space<vmem>>, vector<2x128xf32>,
    return
  }
  func.func @transform_0(%arg0: i32) -> (i32, i32) {
    %c0_i32 = arith.constant 0 : i32
    %c0_i32_0 = arith.constant 0 : i32
    return %arg0, %c0_i32 : i32, i32
  }
  func.func @transform_1(%arg0: i32) -> (i32, i32) {
    %c0_i32 = arith.constant 0 : i32
    %c0_i32_0 = arith.constant 0 : i32
    return %arg0, %c0_i32 : i32, i32
  }
  func.func @transform_2(%arg0: i32) -> (i32, i32) {
    %c0_i32 = arith.constant 0 : i32
    %c0_i32_0 = arith.constant 0 : i32
    %c0_i32_1 = arith.constant 0 : i32
    return %c0_i32, %c0_i32_0 : i32, i32
  }
  func.func @transform_3(%arg0: i32) -> (i32, i32) {
    %c0_i32 = arith.constant 0 : i32
    %c0_i32_0 = arith.constant 0 : i32
    %c0_i32_1 = arith.constant 0 : i32
    return %c0_i32, %c0_i32_0 : i32, i32
  }
  func.func @transform_4(%arg0: i32) -> (i32, i32, i32) {
    %c0_i32 = arith.constant 0 : i32
    %c0_i32_0 = arith.constant 0 : i32
    %c0_i32_1 = arith.constant 0 : i32
    %c0_i32_2 = arith.constant 0 : i32
    return %c0_i32, %c0_i32_0, %c0_i32_1 : i32, i32, i32
  }
  func.func @transform_5(%arg0: i32) -> (i32, i32, i32) {
    %c0_i32 = arith.constant 0 : i32
    %c0_i32_0 = arith.constant 0 : i32
    %c0_i32_1 = arith.constant 0 : i32
    %c0_i32_2 = arith.constant 0 : i32
    return %c0_i32, %c0_i32_0, %c0_i32_1 : i32, i32, i32
  }
  func.func @transform_6(%arg0: i32) -> (i32, i32, i32) {
    %c0_i32 = arith.constant 0 : i32
    %c0_i32_0 = arith.constant 0 : i32
    %c0_i32_1 = arith.constant 0 : i32
    %c0_i32_2 = arith.constant 0 : i32
    return %c0_i32, %c0_i32_0, %c0_i32_1 : i32, i32, i32
  }
  func.func @transform_7(%arg0: i32) -> (i32, i32, i32) {
    %c0_i32 = arith.constant 0 : i32
    %c0_i32_0 = arith.constant 0 : i32
    %c0_i32_1 = arith.constant 0 : i32
    %c0_i32_2 = arith.constant 0 : i32
    return %c0_i32, %c0_i32_0, %c0_i32_1 : i32, i32, i32
  }
  func.func @transform_8(%arg0: i32) -> (i32, i32, i32) {
    %c0_i32 = arith.constant 0 : i32
    %c0_i32_0 = arith.constant 0 : i32
    %c0_i32_1 = arith.constant 0 : i32
    %c0_i32_2 = arith.constant 0 : i32
    return %c0_i32, %c0_i32_0, %c0_i32_1 : i32, i32, i32
  }
  func.func @transform_9(%arg0: i32) -> (i32, i32, i32) {
    %c0_i32 = arith.constant 0 : i32
    %c0_i32_0 = arith.constant 0 : i32
    %c0_i32_1 = arith.constant 0 : i32
    %c0_i32_2 = arith.constant 0 : i32
    return %c0_i32, %c0_i32_0, %c0_i32_1 : i32, i32, i32
  }
  func.func @transform_10(%arg0: i32) -> (i32, i32, i32) {
    %c0_i32 = arith.constant 0 : i32
    %c0_i32_0 = arith.constant 0 : i32
    %c0_i32_1 = arith.constant 0 : i32
    %c0_i32_2 = arith.constant 0 : i32
    return %c0_i32, %c0_i32_0, %c0_i32_1 : i32, i32, i32
  }
  func.func @transform_11(%arg0: i32) -> (i32, i32, i32) {
    %c0_i32 = arith.constant 0 : i32
    %c0_i32_0 = arith.constant 0 : i32
    %c0_i32_1 = arith.constant 0 : i32
    %c0_i32_2 = arith.constant 0 : i32
    return %c0_i32, %c0_i32_0, %c0_i32_1 : i32, i32, i32
  }
  func.func @transform_12(%arg0: i32) -> (i32, i32, i32) {
    %c0_i32 = arith.constant 0 : i32
    %c0_i32_0 = arith.constant 0 : i32
    %c0_i32_1 = arith.constant 0 : i32
    %c0_i32_2 = arith.constant 0 : i32
    return %c0_i32, %c0_i32_0, %c0_i32_1 : i32, i32, i32
  }
  func.func @transform_13(%arg0: i32) -> (i32, i32, i32) {
    %c0_i32 = arith.constant 0 : i32
    %c0_i32_0 = arith.constant 0 : i32
    %c0_i32_1 = arith.constant 0 : i32
    %c0_i32_2 = arith.constant 0 : i32
    return %c0_i32, %c0_i32_0, %c0_i32_1 : i32, i32, i32
  }
  func.func @transform_14(%arg0: i32) -> (i32, i32, i32) {
    %c0_i32 = arith.constant 0 : i32
    %c0_i32_0 = arith.constant 0 : i32
    %c0_i32_1 = arith.constant 0 : i32
    %c0_i32_2 = arith.constant 0 : i32
    return %c0_i32, %c0_i32_0, %c0_i32_1 : i32, i32, i32
  }
  func.func @transform_15(%arg0: i32) -> (i32, i32, i32) {
    %c0_i32 = arith.constant 0 : i32
    %c0_i32_0 = arith.constant 0 : i32
    %c0_i32_1 = arith.constant 0 : i32
    %c0_i32_2 = arith.constant 0 : i32
    return %c0_i32, %c0_i32_0, %c0_i32_1 : i32, i32, i32
  }
  func.func @transform_16(%arg0: i32) -> (i32, i32, i32) {
    %c0_i32 = arith.constant 0 : i32
    %c0_i32_0 = arith.constant 0 : i32
    %c0_i32_1 = arith.constant 0 : i32
    %c0_i32_2 = arith.constant 0 : i32
    return %c0_i32, %c0_i32_0, %c0_i32_1 : i32, i32, i32
  }
  func.func @transform_17(%arg0: i32) -> (i32, i32, i32) {
    %c0_i32 = arith.constant 0 : i32
    %c0_i32_0 = arith.constant 0 : i32
    %c0_i32_1 = arith.constant 0 : i32
    %c0_i32_2 = arith.constant 0 : i32
    return %c0_i32, %c0_i32_0, %c0_i32_1 : i32, i32, i32
  }
  func.func @transform_18(%arg0: i32) -> (i32, i32, i32) {
    %c0_i32 = arith.constant 0 : i32
    %c0_i32_0 = arith.constant 0 : i32
    %c0_i32_1 = arith.constant 0 : i32
    %c0_i32_2 = arith.constant 0 : i32
    return %c0_i32, %c0_i32_0, %c0_i32_1 : i32, i32, i32
  }
  func.func @transform_19(%arg0: i32) -> (i32, i32, i32) {
    %c0_i32 = arith.constant 0 : i32
    %c0_i32_0 = arith.constant 0 : i32
    %c0_i32_1 = arith.constant 0 : i32
    %c0_i32_2 = arith.constant 0 : i32
    return %c0_i32, %c0_i32_0, %c0_i32_1 : i32, i32, i32
  }
  func.func @transform_20(%arg0: i32) -> (i32, i32) {
    %c0_i32 = arith.constant 0 : i32
    %c0_i32_0 = arith.constant 0 : i32
    %c0_i32_1 = arith.constant 0 : i32
    return %c0_i32, %c0_i32_0 : i32, i32
  }
  func.func @transform_21(%arg0: i32) -> (i32, i32) {
    %c0_i32 = arith.constant 0 : i32
    %c0_i32_0 = arith.constant 0 : i32
    %c0_i32_1 = arith.constant 0 : i32
    return %c0_i32, %c0_i32_0 : i32, i32
  }
  func.func @transform_22(%arg0: i32) -> (i32, i32) {
    %c0_i32 = arith.constant 0 : i32
    %c0_i32_0 = arith.constant 0 : i32
    return %arg0, %c0_i32 : i32, i32
  }
}

</mosaic_0001>

<bundles_post_ra>
// kernel: tpu_custom_call.1
= control target key start
LH: loop header
LB: loop body
LE: loop exit
PB: predicated region body
PF: predicated region fallthrough
CT: control target
= control target key end

     0   :  { %s6093_s0 = inlined_call_operand.hbm [shape: f32[16,128], index: 0, kind: input, shape index: {}]   ;;  %s6094_s1 = inlined_call_operand.hbm [shape: f32[2,8], index: 1, kind: input, shape index: {}]   ;;  %s6095_s2 = inlined_call_operand.hbm [shape: f32[1,128], index: 2, kind: input, shape index: {}]   ;;  %s6096_s3 = inlined_call_operand.hbm [shape: f32[1,128], index: 3, kind: input, shape index: {}]   ;;  %s6097_s4 = inlined_call_operand.hbm [shape: bf16[2,128,128], index: 4, kind: input, shape index: {}]   ;;  %s6098_s5 = inlined_call_operand.vmem [shape: f32[2,1,128], index: 5, kind: input, shape index: {}]   ;;  %s6099_s6 = inlined_call_operand.hbm [shape: bf16[2,128,128], index: 6, kind: input, shape index: {}]   ;;  %s6100_s7 = inlined_call_operand.vmem [shape: f32[2,1,128], index: 7, kind: input, shape index: {}]   ;;  %s6101_s8 = inlined_call_operand.hbm [shape: bf16[2,128,128], index: 8, kind: input, shape index: {}]   ;;  %s6102_s9 = inlined_call_operand.vmem [shape: f32[2,1,128], index: 9, kind: input, shape index: {}]   ;;  %s6103_s10 = inlined_call_operand.hbm [shape: bf16[2,128,128], index: 10, kind: input, shape index: {}]   ;;  %s6104_s11 = inlined_call_operand.vmem [shape: f32[2,1,128], index: 11, kind: input, shape index: {}]   ;;  %s6105_s12 = inlined_call_operand.vmem [shape: f32[2,1,128], index: 12, kind: input, shape index: {}]   ;;  %s6106_s13 = inlined_call_operand.vmem [shape: f32[2,1,128], index: 13, kind: input, shape index: {}]   ;;  %s6107_s14 = inlined_call_operand.hbm [shape: bf16[2,128,256], index: 14, kind: input, shape index: {}]   ;;  %s6108_s15 = inlined_call_operand.vmem [shape: f32[2,1,256], index: 15, kind: input, shape index: {}]   ;;  %s6109_s16 = inlined_call_operand.hbm [shape: bf16[2,256,128], index: 16, kind: input, shape index: {}]   ;;  %s6110_s17 = inlined_call_operand.vmem [shape: f32[2,1,128], index: 17, kind: input, shape index: {}]   ;;  %s6111_s18 = inlined_call_operand.vmem [shape: f32[2,1,128], index: 18, kind: input, shape index: {}]   ;;  %s6112_s19 = inlined_call_operand.vmem [shape: f32[2,1,128], index: 19, kind: input, shape index: {}]   ;;  %s6113_s20 = inlined_call_operand.hbm [shape: bf16[128,128], index: 20, kind: input, shape index: {}]   ;;  %s6114_s21 = inlined_call_operand.vmem [shape: f32[1,128], index: 21, kind: input, shape index: {}]   ;;  %s6115_s22 = inlined_call_operand.hbm [shape: f32[2,128], index: 22, kind: output, shape index: {}]  }
   0x1   :  { %6117 = sst [smem:[#allocation29_spill]] %s6093_s0 }
   0x2   :  { %6118 = sst [smem:[#allocation30_spill]] %s6094_s1 }
   0x3   :  { %6119 = sst [smem:[#allocation31_spill]] %s6095_s2 }
   0x4   :  { %6120 = sst [smem:[#allocation32_spill]] %s6096_s3 }
   0x5   :  { %6121 = sst [smem:[#allocation33_spill]] %s6097_s4 }
   0x6   :  { %6122 = sst [smem:[#allocation34_spill]] %s6098_s5 }
   0x7   :  { %6123 = sst [smem:[#allocation35_spill]] %s6099_s6 }
   0x8   :  { %27 = vsyncpa [#allocation4], 0 }
   0x9   :  { %28 = vsyncpa [#allocation7], 0 }
   0xa   :  { %29 = vsyncpa [#allocation10], 0 }
   0xb   :  { %30 = vsyncpa [#allocation13], 0 }
   0xc   :  { %31 = vsyncpa [#allocation16], 0 }
   0xd   :  { %32 = vsyncpa [#allocation19], 0 }
   0xe   :  { %33 = vsyncpa [#allocation5], 0  ;;  %s5344_s3 = smov [#allocation6]   ;;  %s5345_s29 = smov [#allocation9]  }
   0xf   :  { %s52_s28 = sshll.u32 %s5344_s3, 4  ;;  %s72_s30 = sshll.u32 %s5345_s29, 4  ;;  %s53_s28 = int_to_ptr.vmem [resolvable:$true] %s52_s28  ;;  %s73_s30 = int_to_ptr.vmem [resolvable:$true] %s72_s30 }
  0x10   :  { %s5098_s4 = scalar_lea.vmem %s53_s28, 32  ;;  %p5103_p1 = scmp.lt.s32.totalorder %s53_s28, %s53_s28 }
  0x11   :  { %p5099_p0 = scmp.ne.s32.totalorder %s53_s28, %s5098_s4  ;;  %p5104_p2 = scmp.lt.s32.totalorder %s5098_s4, %s5098_s4 }
  0x13   :  { %p5105_p3 = por %p5104_p2, %p5103_p1 }
  0x15   :  { %p5106_p4 = pnand %p5105_p3, %p5099_p0 }
  0x17   :  { %5109 = shalt.err (!%p5106_p4)
}
  0x18   :  { %s6124_s1 = sld [smem:[#allocation30_spill]]  ;;  %s5118_s5 = scalar_lea.vmem %s73_s30, 16 }
  0x19   :  { %p5119_p5 = scmp.ne.s32.totalorder %s73_s30, %s5118_s5  ;;  %s5122_s24 = scalar_lea.vmem %s73_s30, 32 }
  0x1a   :  { %p5123_p6 = scmp.lt.s32.totalorder %s73_s30, %s73_s30  ;;  %p5124_p7 = scmp.lt.s32.totalorder %s5122_s24, %s5118_s5 }
  0x1c   :  { %p5125_p8 = por %p5124_p7, %p5123_p6 }
  0x1e   :  { %55 = dma.hbm_to_vmem [thread:$0]  %s6124_s1, 32, %s53_s28, [#allocation7]  }
  0x1f   :  { %p5126_p9 = pnand %p5125_p8, %p5119_p5 }
  0x21   :  { %5129 = shalt.err (!%p5126_p9)
}
  0x22   :  { %s6125_s26 = sld [smem:[#allocation32_spill]]  ;;  %s5346_s2 = smov [#allocation12]  }
  0x23   :  { %s95_s27 = sshll.u32 %s5346_s2, 4  ;;  %s5347_s3 = smov [#allocation15]   ;;  %s96_s27 = int_to_ptr.vmem [resolvable:$true] %s95_s27 }
  0x24   :  { %s123_s29 = sshll.u32 %s5347_s3, 4  ;;  %s5138_s4 = scalar_lea.vmem %s96_s27, 2048  ;;  %s124_s29 = int_to_ptr.vmem [resolvable:$true] %s123_s29 }
  0x25   :  { %p5139_p10 = scmp.ne.s32.totalorder %s96_s27, %s5138_s4  ;;  %p5143_p11 = scmp.lt.s32.totalorder %s96_s27, %s96_s27 }
  0x26   :  { %p5144_p12 = scmp.lt.s32.totalorder %s5138_s4, %s5138_s4 }
  0x28   :  { %75 = dma.hbm_to_vmem [thread:$0]  %s6125_s26, 16, %s73_s30, [#allocation10]  }
  0x29   :  { %p5145_p13 = por %p5144_p12, %p5143_p11 }
  0x2b   :  { %p5146_p0 = pnand %p5145_p13, %p5139_p10 }
  0x2d   :  { %5149 = shalt.err (!%p5146_p0)
}
  0x2e   :  { %s5348_s28 = smov 64   ;;  %s5349_s0 = smov 4  }
  0x2f   :  { %s6126_s1 = sld [smem:[#allocation35_spill]]  ;;  %s5158_s5 = scalar_lea.vmem %s124_s29, 2048 }
  0x30   :  { %p5159_p1 = scmp.ne.s32.totalorder %s124_s29, %s5158_s5  ;;  %p5163_p2 = scmp.lt.s32.totalorder %s124_s29, %s124_s29 }
  0x31   :  { %p5164_p3 = scmp.lt.s32.totalorder %s5158_s5, %s5158_s5 }
  0x33   :  { %p5165_p4 = por %p5164_p3, %p5163_p2 }
  0x35   :  { %101 = dma.hbm_to_vmem [thread:$0]  %s6126_s1, 2048, %s96_s27, [#allocation13], %s5348_s28, %s5348_s28, %s5349_s0  }
  0x36   :  { %p5166_p5 = pnand %p5165_p4, %p5159_p1 }
  0x38   :  { %5169 = shalt.err (!%p5166_p5)
}
  0x39   :  { %129 = dma.hbm_to_vmem [thread:$0]  %s6103_s10, 2048, %s124_s29, [#allocation16], %s5348_s28, %s5348_s28, %s5349_s0  }
  0x3a   :  { %s5350_s25 = smov [#allocation18]   ;;  %s5351_s2 = smov [#allocation3]  }
  0x3b   :  { %s155_s26 = sshll.u32 %s5350_s25, 4  ;;  %s39_s3 = sshll.u32 %s5351_s2, 4  ;;  %s156_s26 = int_to_ptr.vmem [resolvable:$true] %s155_s26  ;;  %s40_s3 = int_to_ptr.vmem [resolvable:$true] %s39_s3 }
  0x3c   :  { %s5178_s27 = scalar_lea.vmem %s156_s26, 4096  ;;  %p5183_p7 = scmp.lt.s32.totalorder %s156_s26, %s156_s26 }
  0x3d   :  { %p5179_p6 = scmp.ne.s32.totalorder %s156_s26, %s5178_s27  ;;  %p5184_p8 = scmp.lt.s32.totalorder %s5178_s27, %s5178_s27 }
  0x3f   :  { %p5185_p9 = por %p5184_p8, %p5183_p7 }
  0x41   :  { %p5186_p10 = pnand %p5185_p9, %p5179_p6 }
  0x43   :  { %5189 = shalt.err (!%p5186_p10)
}
  0x44   :  { %161 = dma.hbm_to_vmem [thread:$0]  %s6109_s16, 4096, %s156_s26, [#allocation19], %s5348_s28, %s5348_s28, %s5349_s0  }
  0x45   :  { %s5198_s10 = scalar_lea.vmem %s40_s3, 256  ;;  %p5203_p12 = scmp.lt.s32.totalorder %s40_s3, %s40_s3 }
  0x46   :  { %p5199_p11 = scmp.ne.s32.totalorder %s40_s3, %s5198_s10  ;;  %p5204_p13 = scmp.lt.s32.totalorder %s5198_s10, %s5198_s10 }
  0x48   :  { %p5205_p0 = por %p5204_p13, %p5203_p12 }
  0x4a   :  { %p5206_p1 = pnand %p5205_p0, %p5199_p11 }
  0x4c   :  { %5209 = shalt.err (!%p5206_p1)
}
  0x4d   :  { %s5352_s29 = smov 128   ;;  %s5353_s30 = smov 8  }
  0x4e   :  { %s6127_s24 = sld [smem:[#allocation29_spill]]  ;;  %s5354_s6 = smov [#allocation8]  }
  0x4f   :  { %s62_s25 = sshll.u32 %s5354_s6, 4  ;;  %s5355_s2 = smov [#allocation11]   ;;  %s63_s25 = int_to_ptr.vmem [resolvable:$true] %s62_s25 }
  0x50   :  { %s81_s16 = sshll.u32 %s5355_s2, 4  ;;  %s5218_s26 = scalar_lea.vmem %s63_s25, 16  ;;  %s82_s16 = int_to_ptr.vmem [resolvable:$true] %s81_s16 }
  0x51   :  { %p5219_p2 = scmp.ne.s32.totalorder %s63_s25, %s5218_s26  ;;  %s5222_s27 = scalar_lea.vmem %s63_s25, 32 }
  0x52   :  { %p5223_p3 = scmp.lt.s32.totalorder %s63_s25, %s63_s25  ;;  %p5224_p4 = scmp.lt.s32.totalorder %s5222_s27, %s5218_s26 }
  0x54   :  { %45 = dma.hbm_to_vmem [thread:$0]  %s6127_s24, 256, %s40_s3, [#allocation4], %s5352_s29, %s5352_s29, %s5353_s30  }
  0x55   :  { %p5225_p5 = por %p5224_p4, %p5223_p3 }
  0x57   :  { %p5226_p6 = pnand %p5225_p5, %p5219_p2 }
  0x59   :  { %5229 = shalt.err (!%p5226_p6)
}
  0x5a   :  { %s6128_s10 = sld [smem:[#allocation31_spill]]  ;;  %s5238_s1 = scalar_lea.vmem %s82_s16, 2048 }
  0x5b   :  { %p5239_p7 = scmp.ne.s32.totalorder %s82_s16, %s5238_s1  ;;  %p5243_p8 = scmp.lt.s32.totalorder %s82_s16, %s82_s16 }
  0x5c   :  { %p5244_p9 = scmp.lt.s32.totalorder %s5238_s1, %s5238_s1 }
  0x5e   :  { %p5245_p10 = por %p5244_p9, %p5243_p8 }
  0x60   :  { %65 = dma.hbm_to_vmem [thread:$0]  %s6128_s10, 16, %s63_s25, [#allocation7]  }
  0x61   :  { %p5246_p11 = pnand %p5245_p10, %p5239_p7 }
  0x63   :  { %5249 = shalt.err (!%p5246_p11)
}
  0x64   :  { %s6129_s24 = sld [smem:[#allocation33_spill]]  ;;  %s5356_s6 = smov [#allocation14]  }
  0x65   :  { %s109_s2 = sshll.u32 %s5356_s6, 4  ;;  %s5357_s26 = smov [#allocation17]   ;;  %s110_s2 = int_to_ptr.vmem [resolvable:$true] %s109_s2 }
  0x66   :  { %s141_s27 = sshll.u32 %s5357_s26, 4  ;;  %s5258_s25 = scalar_lea.vmem %s110_s2, 2048  ;;  %s142_s27 = int_to_ptr.vmem [resolvable:$true] %s141_s27 }
  0x67   :  { %p5259_p12 = scmp.ne.s32.totalorder %s110_s2, %s5258_s25  ;;  %p5263_p13 = scmp.lt.s32.totalorder %s110_s2, %s110_s2 }
  0x68   :  { %p5264_p0 = scmp.lt.s32.totalorder %s5258_s25, %s5258_s25 }
  0x6a   :  { %87 = dma.hbm_to_vmem [thread:$0]  %s6129_s24, 2048, %s82_s16, [#allocation10], %s5348_s28, %s5348_s28, %s5349_s0  }
  0x6b   :  { %p5265_p1 = por %p5264_p0, %p5263_p13 }
  0x6d   :  { %p5266_p2 = pnand %p5265_p1, %p5259_p12 }
  0x6f   :  { %5269 = shalt.err (!%p5266_p2)
}
  0x70   :  { %115 = dma.hbm_to_vmem [thread:$0]  %s6101_s8, 2048, %s110_s2, [#allocation13], %s5348_s28, %s5348_s28, %s5349_s0  }
  0x71   :  { %s5278_s16 = scalar_lea.vmem %s142_s27, 4096  ;;  %p5283_p4 = scmp.lt.s32.totalorder %s142_s27, %s142_s27 }
  0x72   :  { %p5279_p3 = scmp.ne.s32.totalorder %s142_s27, %s5278_s16  ;;  %p5284_p5 = scmp.lt.s32.totalorder %s5278_s16, %s5278_s16 }
  0x74   :  { %p5285_p6 = por %p5284_p5, %p5283_p4 }
  0x76   :  { %p5286_p7 = pnand %p5285_p6, %p5279_p3 }
  0x78   :  { %5289 = shalt.err (!%p5286_p7)
}
  0x79   :  { %147 = dma.hbm_to_vmem [thread:$0]  %s6107_s14, 4096, %s142_s27, [#allocation16], %s5352_s29, %s5352_s29, %s5353_s30  }
  0x7a   :  { %s5358_s3 = smov [#allocation20]  }
  0x7b   :  { %s173_s5 = sshll.u32 %s5358_s3, 4  ;;  %s174_s5 = int_to_ptr.vmem [resolvable:$true] %s173_s5 }
  0x7c   :  { %s5298_s24 = scalar_lea.vmem %s174_s5, 1024  ;;  %p5303_p9 = scmp.lt.s32.totalorder %s174_s5, %s174_s5 }
  0x7d   :  { %p5299_p8 = scmp.ne.s32.totalorder %s174_s5, %s5298_s24  ;;  %p5304_p10 = scmp.lt.s32.totalorder %s5298_s24, %s5298_s24 }
  0x7f   :  { %p5305_p11 = por %p5304_p10, %p5303_p9 }
  0x81   :  { %p5306_p12 = pnand %p5305_p11, %p5299_p8 }
  0x83   :  { %5309 = shalt.err (!%p5306_p12)
}
  0x84   :  { %179 = dma.hbm_to_vmem [thread:$0]  %s6113_s20, 1024, %s174_s5, [#allocation19], %s5348_s28, %s5348_s28, %s5349_s0  }
  0x85   :  { %5330 = dma.done.wait [#allocation4], 256  }
  0x86   :  { %5331 = vsyncadd [#allocation4], 4294967040 }
  0x87   :  { %5332 = dma.done.wait [#allocation7], 48  }
  0x88   :  { %5333 = vsyncadd [#allocation7], 4294967248 }
  0x89   :  { %5334 = dma.done.wait [#allocation10], 2064  }
  0x8a   :  { %5335 = vsyncadd [#allocation10], 4294965232 }
  0x8b   :  { %5336 = dma.done.wait [#allocation13], 4096  }
  0x8c   :  { %5337 = vsyncadd [#allocation13], 4294963200 }
  0x8d   :  { %5338 = dma.done.wait [#allocation16], 6144  }
  0x8e   :  { %5339 = vsyncadd [#allocation16], 4294961152 }
  0x8f   :  { %5340 = dma.done.wait [#allocation19], 5120  }
  0x90   :  { %5341 = vsyncadd [#allocation19], 4294962176  ;;  %v216_v0 = vld [vmem:[#allocation3] sm:$0xff]  ;;  %v217_v1 = vld [vmem:[#allocation3 + $0x8] sm:$0xff]  ;;  %v5359_v4 = vmov 0.0   ;;  %vm5360_vm0 = vmmov 0  }
  0x91   :  { %220 = vadd.xlane.f32.xlu0 %v216_v0  ;;  %v4836_v2 = vld [vmem:[#allocation11 + $0x38] sm:$0xff]   ;;  %4443 = vmatprep.subr.bf16.mxu0 %v5359_v4  ;;  %v4838_v13 = vld [vmem:[#allocation11 + $0x30] sm:$0xff]   ;;  %v4840_v15 = vld [vmem:[#allocation11 + $0x28] sm:$0xff]   ;;  %s6130_s30 = sld [smem:[#allocation34_spill]]  ;;  %vm606_vm1 = vcmask 261120   ;;  %vm669_vm2 = vcmask 1043456  }
  0x92   :  { %v4837_v3 = vld [vmem:[#allocation12 + $0x38] sm:$0xff]   ;;  %4463 = vmatprep.subr.bf16.mxu1 %v5359_v4  ;;  %4444 = vmatpush3.bf16.msra.mxu0 %v4836_v2  ;;  %v4839_v14 = vld [vmem:[#allocation12 + $0x30] sm:$0xff]   ;;  %v4841_v16 = vld [vmem:[#allocation12 + $0x28] sm:$0xff]   ;;  %vm653_vm3 = vcmask 64512   ;;  %s5361_s27 = smov 96   ;;  %s5362_s25 = smov 32  }
  0x93   :  { %4464 = vmatpush3.bf16.msra.mxu1 %v4837_v3  ;;  %4445 = vmatprep.subr.bf16.mxu0 %v5359_v4  ;;  %v4842_v17 = vld [vmem:[#allocation11 + $0x20] sm:$0xff]   ;;  %v4844_v19 = vld [vmem:[#allocation11 + $0x18] sm:$0xff]   ;;  %v4846_v21 = vld [vmem:[#allocation11 + $0x10] sm:$0xff]   ;;  %vm831_vm4 = vcmask 523520   ;;  %vm947_vm5 = vcmask 785920   ;;  %vm1063_vm6 = vcmask 1048320  }
  0x94   :  { %4465 = vmatprep.subr.bf16.mxu1 %v5359_v4  ;;  %v4843_v18 = vld [vmem:[#allocation12 + $0x20] sm:$0xff]   ;;  %4459 = vmatprep.mubr.msk.bf16.mxu0 %vm5360_vm0, %v5359_v4  ;;  %v4845_v20 = vld [vmem:[#allocation12 + $0x18] sm:$0xff]   ;;  %v4847_v22 = vld [vmem:[#allocation12 + $0x10] sm:$0xff]   ;;  %vm3919_vm7 = vcmask 1040384  }
  0x95   :  { %222 = vadd.xlane.f32.xlu0 %v217_v1  ;;  %4479 = vmatprep.mubr.msk.bf16.mxu1 %vm5360_vm0, %v5359_v4  ;;  %v4848_v23 = vld [vmem:[#allocation11 + $0x8] sm:$0xff]   ;;  %v4850_v25 = vld [vmem:[#allocation11] sm:$0xff]   ;;  %v4055_v35 = vld [vmem:[#allocation8] ss:$0 sm:$0xff] }
  0x96   :  { %4446 = vmatpush3.bf16.msra.mxu0 %v4838_v13  ;;  %v4849_v24 = vld [vmem:[#allocation12 + $0x8] sm:$0xff]   ;;  %v4851_v26 = vld [vmem:[#allocation12] sm:$0xff]   ;;  %v4056_v39 = vld [vmem:[#allocation9] ss:$0 sm:$0xff] }
  0x97   :  { %4466 = vmatpush3.bf16.msra.mxu1 %v4839_v14  ;;  %4447 = vmatprep.subr.bf16.mxu0 %v5359_v4  ;;  %v4852_v43 = vld [vmem:[#allocation14 + $0x38] sm:$0xff]   ;;  %v4853_v45 = vld [vmem:[#allocation14 + $0x30] sm:$0xff]   ;;  %v4854_v46 = vld [vmem:[#allocation14 + $0x28] sm:$0xff]  }
  0x98   :  { %4467 = vmatprep.subr.bf16.mxu1 %v5359_v4  ;;  %v4855_v47 = vld [vmem:[#allocation14 + $0x20] sm:$0xff]   ;;  %v4856_v48 = vld [vmem:[#allocation14 + $0x18] sm:$0xff]   ;;  %v4857_v49 = vld [vmem:[#allocation14 + $0x10] sm:$0xff]  }
  0x99   :  { %v4858_v50 = vld [vmem:[#allocation14 + $0x8] sm:$0xff]   ;;  %v4859_v51 = vld [vmem:[#allocation14] sm:$0xff]   ;;  %v4066_v54 = vld [vmem:[%s6100_s7] ss:$0 sm:$0xff] }
  0x9a   :  { %4448 = vmatpush3.bf16.msra.mxu0 %v4840_v15  ;;  %v4057_v61 = vld [vmem:[%s6130_s30] ss:$0 sm:$0xff] }
  0x9b   :  { %4468 = vmatpush3.bf16.msra.mxu1 %v4841_v16  ;;  %4449 = vmatprep.subr.bf16.mxu0 %v5359_v4 }
  0x9c   :  { %4469 = vmatprep.subr.bf16.mxu1 %v5359_v4 }
  0x9e   :  { %4450 = vmatpush3.bf16.msra.mxu0 %v4842_v17  ;;  %v602_v17 = vlaneseq }
  0x9f   :  { %4470 = vmatpush3.bf16.msra.mxu1 %v4843_v18  ;;  %4451 = vmatprep.subr.bf16.mxu0 %v5359_v4 }
  0xa0   :  { %4471 = vmatprep.subr.bf16.mxu1 %v5359_v4  ;;  %v5598_v18 = vshrl.u32 %v602_v17, 7 }
  0xa2   :  { %4452 = vmatpush3.bf16.msra.mxu0 %v4844_v19  ;;  %v5601_v19 = vsub.s32 0, %v5598_v18 }
  0xa3   :  { %4472 = vmatpush3.bf16.msra.mxu1 %v4845_v20  ;;  %4453 = vmatprep.subr.bf16.mxu0 %v5359_v4  ;;  %v5603_v20 = vld [vmem:[#allocation6] sm:$0x3] }
  0xa4   :  { %4473 = vmatprep.subr.bf16.mxu1 %v5359_v4 }
  0xa6   :  { %4454 = vmatpush3.bf16.msra.mxu0 %v4846_v21  ;;  %v5607_v21 = vrot.slane %v5603_v20, %v5601_v19 }
  0xa7   :  { %4474 = vmatpush3.bf16.msra.mxu1 %v4847_v22  ;;  %4455 = vmatprep.subr.bf16.mxu0 %v5359_v4 }
  0xa8   :  { %4475 = vmatprep.subr.bf16.mxu1 %v5359_v4 }
  0xaa   :  { %4456 = vmatpush3.bf16.msra.mxu0 %v4848_v23 }
  0xab   :  { %4476 = vmatpush3.bf16.msra.mxu1 %v4849_v24  ;;  %4457 = vmatprep.subr.bf16.mxu0 %v5359_v4 }
  0xac   :  { %4477 = vmatprep.subr.bf16.mxu1 %v5359_v4 }
  0xae   :  { %4458 = vmatpush3.bf16.msra.mxu0 %v4850_v25 }
  0xaf   :  { %4478 = vmatpush3.bf16.msra.mxu1 %v4851_v26  ;;  %4483 = vmatprep.subr.bf16.mxu0 %v5359_v4 }
  0xb0   :  { %4503 = vmatprep.subr.bf16.mxu1 %v5359_v4 }
 0x11a   :  { %v221_v5 = vpop.xlane.xlu0 %220 }
 0x11b   :  { %v225_v6 = vmul.f32 0.0078125, %v221_v5 }
 0x11d   :  { %v227_v7 = vsub.f32 %v216_v0, %v225_v6 }
 0x11e   :  { %v223_v8 = vpop.xlane.xlu0 %222 }
 0x11f   :  { %v226_v9 = vmul.f32 0.0078125, %v223_v8  ;;  %v229_v10 = vmul.f32 %v227_v7, %v227_v7 }
 0x121   :  { %v228_v11 = vsub.f32 %v217_v1, %v226_v9  ;;  %231 = vadd.xlane.f32.xlu1 %v229_v10  ;;  %v4075_v9 = vld [vmem:[%s6102_s9] ss:$0 sm:$0xff] }
 0x123   :  { %v230_v12 = vmul.f32 %v228_v11, %v228_v11 }
 0x125   :  { %233 = vadd.xlane.f32.xlu1 %v230_v12 }
 0x1aa   :  { %v232_v27 = vpop.xlane.xlu1 %231 }
 0x1ab   :  { %v235_v28 = vmul.f32 0.0078125, %v232_v27 }
 0x1ad   :  { %v237_v29 = vadd.f32 1e-12, %v235_v28 }
 0x1ae   :  { %v234_v30 = vpop.xlane.xlu1 %233 }
 0x1af   :  { %4988 = vrsqrt.f32 %v237_v29  ;;  %v236_v31 = vmul.f32 0.0078125, %v234_v30 }
 0x1b1   :  { %v238_v32 = vadd.f32 1e-12, %v236_v31 }
 0x1b3   :  { %4990 = vrsqrt.f32 %v238_v32 }
 0x1bc   :  { %v4989_v33 = vpop.eup %4988 }
 0x1bd   :  { %v241_v34 = vmul.f32 %v4989_v33, %v227_v7 }
 0x1bf   :  { %v249_v38 = vmul.f32 %v4055_v35, %v241_v34 }
 0x1c0   :  { %v4991_v36 = vpop.eup %4990 }
 0x1c1   :  { %v242_v37 = vmul.f32 %v4991_v36, %v228_v11  ;;  %v5559_v41 = vadd.f32 %v4056_v39, %v249_v38 }
 0x1c3   :  { %v250_v40 = vmul.f32 %v4055_v35, %v242_v37 }
 0x1c5   :  { %v5561_v42 = vadd.f32 %v4056_v39, %v250_v40 }
 0x1c7   :  { %v260_v44 = vpack.c.bf16 %v5561_v42, %v5559_v41 }
 0x1c9   :  { %4460 = vmatmul.mubr.bf16.vlgmr.msra.gmra.mxu0 %v260_v44  ;;  %4480 = vmatmul.mubr.bf16.vlgmr.msra.gmra.mxu1 %v260_v44 }
 0x1ca   :  { %4484 = vmatpush3.bf16.msra.mxu0 %v4852_v43  ;;  %4499 = vmatprep.mubr.msk.bf16.mxu0 %vm5360_vm0, %v5359_v4 }
 0x1cb   :  { %4485 = vmatprep.subr.bf16.mxu0 %v5359_v4  ;;  %4505 = vmatprep.mubr.msk.bf16.mxu1 %vm5360_vm0, %v5359_v4 }
 0x1ce   :  { %4486 = vmatpush3.bf16.msra.mxu0 %v4853_v45 }
 0x1cf   :  { %4487 = vmatprep.subr.bf16.mxu0 %v5359_v4 }
 0x1d2   :  { %4488 = vmatpush3.bf16.msra.mxu0 %v4854_v46 }
 0x1d3   :  { %4489 = vmatprep.subr.bf16.mxu0 %v5359_v4 }
 0x1d6   :  { %4490 = vmatpush3.bf16.msra.mxu0 %v4855_v47 }
 0x1d7   :  { %4491 = vmatprep.subr.bf16.mxu0 %v5359_v4 }
 0x1da   :  { %4492 = vmatpush3.bf16.msra.mxu0 %v4856_v48 }
 0x1db   :  { %4493 = vmatprep.subr.bf16.mxu0 %v5359_v4 }
 0x1de   :  { %4494 = vmatpush3.bf16.msra.mxu0 %v4857_v49 }
 0x1df   :  { %4495 = vmatprep.subr.bf16.mxu0 %v5359_v4 }
 0x1e2   :  { %4496 = vmatpush3.bf16.msra.mxu0 %v4858_v50 }
 0x1e3   :  { %4497 = vmatprep.subr.bf16.mxu0 %v5359_v4 }
 0x1e6   :  { %4498 = vmatpush3.bf16.msra.mxu0 %v4859_v51 }
 0x1e7   :  { %4527 = vmatprep.subr.bf16.mxu0 %v5359_v4 }
 0x1e9   :  { %4500 = vmatmul.mubr.bf16.vlgmr.msra.gmra.mxu0 %v260_v44 }
 0x1ea   :  { %4529 = vmatprep.mubr.msk.bf16.mxu0 %vm5360_vm0, %v5359_v4 }
 0x289   :  { %v366_v52 = vpop.f32.mrf.mxu0  ;;  %v478_v53 = vpop.f32.mrf.mxu1 }
 0x28a   :  { %v479_v59 = vadd.f32 %v4066_v54, %v478_v53  ;;  %v367_v2 = vadd.f32 %v4057_v61, %v366_v52 }
 0x28b   :  { %v4461_v55 = vpop.f32.mrf.mxu0  ;;  %v4481_v56 = vpop.f32.mrf.mxu1 }
 0x28c   :  { %v597_v6 = vmul.f32 0.17677669, %v367_v2 }
 0x28d   :  { %v369_v57 = vpop.f32.mrf.mxu0  ;;  %v481_v58 = vpop.f32.mrf.mxu1 }
 0x28e   :  { %v482_v60 = vadd.f32 %v4066_v54, %v481_v58  ;;  %v370_v0 = vadd.f32 %v4057_v61, %v369_v57 }
 0x28f   :  { %v4462_v62 = vpop.f32.mrf.mxu0  ;;  %v4482_v63 = vpop.f32.mrf.mxu1 }
 0x290   :  { %v600_v1 = vpack.c.bf16 %v482_v60, %v479_v59  ;;  %v598_v5 = vmul.f32 0.17677669, %v370_v0 }
 0x292   :  { %v611_v3 = vsel %vm606_vm1, %v600_v1, 0  ;;  %v599_v7 = vpack.c.bf16 %v598_v5, %v597_v6  ;;  %v1070_v28 = vrot.slane %v600_v1, 4 }
 0x293   :  { %4504 = vmatpush3.bf16.xpose.msra.mxu1 %v611_v3 }
 0x294   :  { %4509 = vmatprep.subr.bf16.mxu1 %v5359_v4  ;;  %v1069_v34 = vrot.slane %v599_v7, 4  ;;  %v1075_v50 = vsel %vm606_vm1, %v1070_v28, 0 }
 0x29a   :  { %4506 = vmatmul.mubr.msk.bf16.vlgmr.msra.gmra.mxu1 %vm606_vm1, %v599_v7 }
 0x29b   :  { %4511 = vmatprep.mubr.msk.bf16.mxu1 %vm5360_vm0, %v5359_v4 }
 0x2a9   :  { %v590_v8 = vpop.f32.mrf.mxu0 }
 0x2aa   :  { %v591_v12 = vadd.f32 %v4075_v9, %v590_v8  ;;  %v5666_v8 = vsub.s32 1, %v5598_v18 }
 0x2ab   :  { %v4501_v10 = vpop.f32.mrf.mxu0 }
 0x2ac   :  { %v5673_v17 = vrot.slane %v5603_v20, %v5666_v8 }
 0x2ad   :  { %v593_v11 = vpop.f32.mrf.mxu0 }
 0x2ae   :  { %v594_v13 = vadd.f32 %v4075_v9, %v593_v11 }
 0x2af   :  { %v4502_v14 = vpop.f32.mrf.mxu0 }
 0x2b0   :  { %v5593_v15 = vpack.c.bf16 %v594_v13, %v591_v12 }
 0x2b2   :  { %v671_v16 = vsel %vm669_vm2, %v5593_v15, 0 }
 0x2b3   :  { %4510 = vmatpush3.bf16.msra.mxu1 %v671_v16 }
 0x2b4   :  { %4515 = vmatprep.subr.bf16.mxu1 %v5359_v4 }
 0x35a   :  { %v647_v22 = vpop.f32.mrf.mxu1 }
 0x35b   :  { %v648_v23 = vadd.f32 %v647_v22, %v5607_v21 }
 0x35c   :  { %v4507_v24 = vpop.f32.mrf.mxu1 }
 0x35d   :  { %v654_v25 = vsel %vm653_vm3, %v648_v23, -inf }
 0x35e   :  { %655 = vmax.xlane.f32.xlu0 %v654_v25  ;;  %v650_v26 = vpop.f32.mrf.mxu1 }
 0x360   :  { %v4508_v27 = vpop.f32.mrf.mxu1 }
 0x374   :  { %718 = vrot.lane.b32.xlu0 %v600_v1, %s5361_s27 }
 0x378   :  { %951 = vrot.lane.b32.xlu0 %v600_v1, %s5362_s25 }
 0x37c   :  { %1179 = vrot.lane.b32.xlu0 %v1070_v28, %s5361_s27 }
 0x380   :  { %1294 = vrot.lane.b32.xlu0 %v1070_v28, %s5348_s28 }
 0x384   :  { %1409 = vrot.lane.b32.xlu0 %v1070_v28, %s5362_s25 }
 0x3e7   :  { %v656_v29 = vpop.xlane.xlu0 %655 }
 0x3e8   :  { %v657_v30 = vsub.f32 %v648_v23, %v656_v29 }
 0x3ea   :  { %v658_v31 = vmul.f32 1.442695, %v657_v30 }
 0x3eb   :  { %v719_v37 = vpop.permute.xlu0 %718 }
 0x3ec   :  { %4992 = vpow2.f32 %v658_v31  ;;  %v724_v48 = vsel %vm606_vm1, %v719_v37, 0 }
 0x3ef   :  { %v952_v43 = vpop.permute.xlu0 %951 }
 0x3f0   :  { %v957_v46 = vsel %vm606_vm1, %v952_v43, 0 }
 0x3f3   :  { %v1180_v51 = vpop.permute.xlu0 %1179 }
 0x3f4   :  { %v1185_v52 = vsel %vm606_vm1, %v1180_v51, 0 }
 0x3f7   :  { %v1295_v53 = vpop.permute.xlu0 %1294 }
 0x3f8   :  { %v1300_v55 = vsel %vm606_vm1, %v1295_v53, 0 }
 0x3f9   :  { %v4993_v32 = vpop.eup %4992 }
 0x3fa   :  { %v660_v33 = vsel %vm653_vm3, %v4993_v32, 0.0 }
 0x3fb   :  { %661 = vadd.xlane.f32.xlu1 %v660_v33  ;;  %v1410_v56 = vpop.permute.xlu0 %1409 }
 0x3fc   :  { %v1415_v58 = vsel %vm606_vm1, %v1410_v56, 0 }
 0x40c   :  { %715 = vrot.lane.b32.xlu1 %v599_v7, %s5361_s27 }
 0x410   :  { %835 = vrot.lane.b32.xlu1 %v600_v1, %s5348_s28 }
 0x414   :  { %833 = vrot.lane.b32.xlu1 %v599_v7, %s5348_s28 }
 0x418   :  { %949 = vrot.lane.b32.xlu1 %v599_v7, %s5362_s25 }
 0x41c   :  { %1177 = vrot.lane.b32.xlu1 %v1069_v34, %s5361_s27 }
 0x420   :  { %1292 = vrot.lane.b32.xlu1 %v1069_v34, %s5348_s28 }
 0x424   :  { %1407 = vrot.lane.b32.xlu1 %v1069_v34, %s5362_s25 }
 0x484   :  { %v662_v35 = vpop.xlane.xlu1 %661 }
 0x485   :  { %4994 = vrcp.f32 %v662_v35 }
 0x488   :  { %v716_v36 = vpop.permute.xlu1 %715 }
 0x48c   :  { %v836_v38 = vpop.permute.xlu1 %835 }
 0x48d   :  { %v841_v39 = vsel %vm606_vm1, %v836_v38, 0 }
 0x48e   :  { %4528 = vmatpush3.bf16.xpose.msra.mxu0 %v841_v39 }
 0x48f   :  { %4539 = vmatprep.subr.bf16.mxu0 %v5359_v4 }
 0x490   :  { %v834_v45 = vpop.permute.xlu1 %833 }
 0x492   :  { %v4995_v40 = vpop.eup %4994 }
 0x493   :  { %v664_v44 = vmul.f32 %v4995_v40, %v4993_v32 }
 0x494   :  { %v950_v49 = vpop.permute.xlu1 %949 }
 0x495   :  { %4530 = vmatmul.mubr.msk.bf16.vlgmr.msra.gmra.mxu0 %vm606_vm1, %v834_v45  ;;  %v665_v47 = vpack.c.bf16 %v664_v44, %v664_v44 }
 0x496   :  { %4540 = vmatpush3.bf16.xpose.msra.mxu0 %v957_v46  ;;  %4541 = vmatprep.mubr.msk.bf16.mxu0 %vm5360_vm0, %v5359_v4 }
 0x497   :  { %4512 = vmatmul.mubr.msk.bf16.vlgmr.msra.gmra.mxu1 %vm653_vm3, %v665_v47  ;;  %4551 = vmatprep.subr.bf16.mxu0 %v5359_v4 }
 0x498   :  { %4516 = vmatpush3.bf16.xpose.msra.mxu1 %v724_v48  ;;  %4517 = vmatprep.mubr.msk.bf16.mxu1 %vm5360_vm0, %v5359_v4  ;;  %v1178_v54 = vpop.permute.xlu1 %1177 }
 0x499   :  { %4521 = vmatprep.subr.bf16.mxu1 %v5359_v4 }
 0x49c   :  { %v1293_v57 = vpop.permute.xlu1 %1292 }
 0x49d   :  { %4542 = vmatmul.mubr.msk.bf16.vlgmr.msra.gmra.mxu0 %vm606_vm1, %v950_v49 }
 0x49e   :  { %4552 = vmatpush3.bf16.xpose.msra.mxu0 %v1075_v50  ;;  %4553 = vmatprep.mubr.msk.bf16.mxu0 %vm5360_vm0, %v5359_v4 }
 0x49f   :  { %4518 = vmatmul.mubr.msk.bf16.vlgmr.msra.gmra.mxu1 %vm606_vm1, %v716_v36  ;;  %4563 = vmatprep.subr.bf16.mxu0 %v5359_v4 }
 0x4a0   :  { %4523 = vmatprep.mubr.msk.bf16.mxu1 %vm5360_vm0, %v5359_v4  ;;  %v1408_v59 = vpop.permute.xlu1 %1407 }
 0x4a5   :  { %4554 = vmatmul.mubr.msk.bf16.vlgmr.msra.gmra.mxu0 %vm606_vm1, %v1069_v34 }
 0x4a6   :  { %4564 = vmatpush3.bf16.xpose.msra.mxu0 %v1185_v52  ;;  %4565 = vmatprep.mubr.msk.bf16.mxu0 %vm5360_vm0, %v5359_v4 }
 0x4a7   :  { %4575 = vmatprep.subr.bf16.mxu0 %v5359_v4 }
 0x4ad   :  { %4566 = vmatmul.mubr.msk.bf16.vlgmr.msra.gmra.mxu0 %vm606_vm1, %v1178_v54 }
 0x4ae   :  { %4576 = vmatpush3.bf16.xpose.msra.mxu0 %v1300_v55  ;;  %4577 = vmatprep.mubr.msk.bf16.mxu0 %vm5360_vm0, %v5359_v4 }
 0x4af   :  { %4587 = vmatprep.subr.bf16.mxu0 %v5359_v4 }
 0x4b5   :  { %4578 = vmatmul.mubr.msk.bf16.vlgmr.msra.gmra.mxu0 %vm606_vm1, %v1293_v57 }
 0x4b6   :  { %4588 = vmatpush3.bf16.xpose.msra.mxu0 %v1415_v58  ;;  %4589 = vmatprep.mubr.msk.bf16.mxu0 %vm5360_vm0, %v5359_v4 }
 0x4b7   :  { %4599 = vmatprep.subr.bf16.mxu0 %v5359_v4 }
 0x4bd   :  { %4590 = vmatmul.mubr.msk.bf16.vlgmr.msra.gmra.mxu0 %vm606_vm1, %v1408_v59 }
 0x4be   :  { %4615 = vmatprep.mubr.msk.bf16.mxu0 %vm5360_vm0, %v5359_v4 }
 0x555   :  { %v877_v60 = vpop.f32.mrf.mxu0 }
 0x556   :  { %v878_v61 = vadd.f32 %v877_v60, %v5607_v21 }
 0x557   :  { %v707_v62 = vpop.f32.mrf.mxu1  ;;  %v4531_v63 = vpop.f32.mrf.mxu0 }
 0x558   :  { %713 = vst.msk [vmem:[#allocation2] sm:$0xff] %vm606_vm1, %v707_v62  ;;  %v883_v0 = vsel %vm653_vm3, %v878_v61, -inf }
 0x559   :  { %v4513_v1 = vpop.f32.mrf.mxu1  ;;  %884 = vmax.xlane.f32.xlu1 %v883_v0  ;;  %v880_v2 = vpop.f32.mrf.mxu0 }
 0x55b   :  { %v710_v3 = vpop.f32.mrf.mxu1  ;;  %v4532_v5 = vpop.f32.mrf.mxu0 }
 0x55d   :  { %v4514_v6 = vpop.f32.mrf.mxu1  ;;  %v993_v7 = vpop.f32.mrf.mxu0 }
 0x55e   :  { %v994_v14 = vadd.f32 %v993_v7, %v5607_v21 }
 0x55f   :  { %v760_v9 = vpop.f32.mrf.mxu1  ;;  %v4543_v10 = vpop.f32.mrf.mxu0 }
 0x560   :  { %v761_v11 = vadd.f32 %v760_v9, %v5607_v21  ;;  %v999_v26 = vsel %vm653_vm3, %v994_v14, -inf }
 0x561   :  { %v4519_v12 = vpop.f32.mrf.mxu1  ;;  %v996_v13 = vpop.f32.mrf.mxu0 }
 0x562   :  { %v766_v16 = vsel %vm653_vm3, %v761_v11, -inf }
 0x563   :  { %767 = vmax.xlane.f32.xlu0 %v766_v16  ;;  %v763_v22 = vpop.f32.mrf.mxu1  ;;  %v4544_v23 = vpop.f32.mrf.mxu0 }
 0x565   :  { %v4520_v24 = vpop.f32.mrf.mxu1  ;;  %v1111_v18 = vpop.f32.mrf.mxu0 }
 0x566   :  { %v1112_v25 = vadd.f32 %v1111_v18, %v5673_v17 }
 0x567   :  { %1000 = vmax.xlane.f32.xlu0 %v999_v26  ;;  %v4555_v27 = vpop.f32.mrf.mxu0 }
 0x568   :  { %v1117_v29 = vsel %vm653_vm3, %v1112_v25, -inf }
 0x569   :  { %v1114_v28 = vpop.f32.mrf.mxu0 }
 0x56a   :  { %v1129_v28 = vrot.slane %v5593_v15, 4 }
 0x56b   :  { %1118 = vmax.xlane.f32.xlu0 %v1117_v29  ;;  %v4556_v30 = vpop.f32.mrf.mxu0 }
 0x56d   :  { %v1221_v31 = vpop.f32.mrf.mxu0 }
 0x56e   :  { %v1222_v20 = vadd.f32 %v1221_v31, %v5673_v17 }
 0x56f   :  { %v4567_v32 = vpop.f32.mrf.mxu0 }
 0x570   :  { %v1227_v33 = vsel %vm653_vm3, %v1222_v20, -inf }
 0x571   :  { %1228 = vmax.xlane.f32.xlu0 %v1227_v33  ;;  %v1224_v34 = vpop.f32.mrf.mxu0 }
 0x573   :  { %v4568_v35 = vpop.f32.mrf.mxu0 }
 0x575   :  { %v1336_v36 = vpop.f32.mrf.mxu0 }
 0x576   :  { %v1337_v37 = vadd.f32 %v1336_v36, %v5673_v17 }
 0x577   :  { %v4579_v38 = vpop.f32.mrf.mxu0 }
 0x578   :  { %v1342_v39 = vsel %vm653_vm3, %v1337_v37, -inf }
 0x579   :  { %1343 = vmax.xlane.f32.xlu1 %v1342_v39  ;;  %v1339_v40 = vpop.f32.mrf.mxu0 }
 0x57b   :  { %v4580_v43 = vpop.f32.mrf.mxu0 }
 0x57d   :  { %v1451_v44 = vpop.f32.mrf.mxu0 }
 0x57e   :  { %v1452_v45 = vadd.f32 %v1451_v44, %v5673_v17 }
 0x57f   :  { %v4591_v46 = vpop.f32.mrf.mxu0 }
 0x580   :  { %v1457_v47 = vsel %vm653_vm3, %v1452_v45, -inf }
 0x581   :  { %1458 = vmax.xlane.f32.xlu0 %v1457_v47  ;;  %v1454_v48 = vpop.f32.mrf.mxu0 }
 0x583   :  { %v4592_v49 = vpop.f32.mrf.mxu0 }
 0x5e2   :  { %v885_v50 = vpop.xlane.xlu1 %884 }
 0x5e3   :  { %v886_v51 = vsub.f32 %v878_v61, %v885_v50  ;;  %v1134_v50 = vsel %vm669_vm2, %v1129_v28, 0 }
 0x5e5   :  { %v887_v52 = vmul.f32 1.442695, %v886_v51 }
 0x5e7   :  { %4996 = vpow2.f32 %v887_v52 }
 0x5ec   :  { %v768_v53 = vpop.xlane.xlu0 %767 }
 0x5ed   :  { %v769_v54 = vsub.f32 %v761_v11, %v768_v53 }
 0x5ef   :  { %v770_v57 = vmul.f32 1.442695, %v769_v54 }
 0x5f0   :  { %v1001_v55 = vpop.xlane.xlu0 %1000 }
 0x5f1   :  { %v1002_v56 = vsub.f32 %v994_v14, %v1001_v55 }
 0x5f3   :  { %v1003_v58 = vmul.f32 1.442695, %v1002_v56 }
 0x5f4   :  { %v5684_v59 = vpop.eup %4996  ;;  %v1119_v60 = vpop.xlane.xlu0 %1118 }
 0x5f5   :  { %4998 = vpow2.f32 %v1003_v58  ;;  %v1120_v62 = vsub.f32 %v1112_v25, %v1119_v60  ;;  %v889_v63 = vsel %vm653_vm3, %v5684_v59, 0.0 }
 0x5f6   :  { %890 = vadd.xlane.f32.xlu0 %v889_v63  ;;  %5000 = vpow2.f32 %v770_v57 }
 0x5f7   :  { %v1121_v0 = vmul.f32 1.442695, %v1120_v62 }
 0x5f9   :  { %5002 = vpow2.f32 %v1121_v0 }
 0x5fa   :  { %v1229_v61 = vpop.xlane.xlu0 %1228 }
 0x5fb   :  { %v1230_v1 = vsub.f32 %v1222_v20, %v1229_v61 }
 0x5fd   :  { %v1231_v2 = vmul.f32 1.442695, %v1230_v1 }
 0x5ff   :  { %5004 = vpow2.f32 %v1231_v2 }
 0x602   :  { %v5688_v3 = vpop.eup %4998  ;;  %v1344_v13 = vpop.xlane.xlu1 %1343 }
 0x603   :  { %v1005_v5 = vsel %vm653_vm3, %v5688_v3, 0.0  ;;  %v5001_v6 = vpop.eup %5000  ;;  %v1345_v14 = vsub.f32 %v1337_v37, %v1344_v13 }
 0x604   :  { %1006 = vadd.xlane.f32.xlu1 %v1005_v5  ;;  %v772_v9 = vsel %vm653_vm3, %v5001_v6, 0.0 }
 0x605   :  { %v1346_v16 = vmul.f32 1.442695, %v1345_v14 }
 0x606   :  { %v5692_v7 = vpop.eup %5002 }
 0x607   :  { %v1123_v10 = vsel %vm653_vm3, %v5692_v7, 0.0  ;;  %5006 = vpow2.f32 %v1346_v16 }
 0x608   :  { %773 = vadd.xlane.f32.xlu1 %v772_v9  ;;  %1124 = vadd.xlane.f32.xlu0 %v1123_v10 }
 0x60a   :  { %v1459_v22 = vpop.xlane.xlu0 %1458 }
 0x60b   :  { %v1460_v23 = vsub.f32 %v1452_v45, %v1459_v22 }
 0x60c   :  { %v5697_v11 = vpop.eup %5004 }
 0x60d   :  { %v1233_v12 = vsel %vm653_vm3, %v5697_v11, 0.0  ;;  %v1461_v24 = vmul.f32 1.442695, %v1460_v23 }
 0x60e   :  { %1234 = vadd.xlane.f32.xlu0 %v1233_v12 }
 0x60f   :  { %5008 = vpow2.f32 %v1461_v24 }
 0x614   :  { %v5707_v18 = vpop.eup %5006 }
 0x615   :  { %v1348_v25 = vsel %vm653_vm3, %v5707_v18, 0.0 }
 0x619   :  { %779 = vrot.lane.b32.xlu1 %v5593_v15, %s5361_s27 }
 0x61c   :  { %v5711_v26 = vpop.eup %5008 }
 0x61d   :  { %v1463_v27 = vsel %vm653_vm3, %v5711_v26, 0.0 }
 0x624   :  { %895 = vrot.lane.b32.xlu0 %v5593_v15, %s5348_s28 }
 0x628   :  { %1011 = vrot.lane.b32.xlu0 %v5593_v15, %s5362_s25 }
 0x63d   :  { %1349 = vadd.xlane.f32.xlu1 %v1348_v25 }
 0x647   :  { %1464 = vadd.xlane.f32.xlu0 %v1463_v27 }
 0x64e   :  { %1239 = vrot.lane.b32.xlu1 %v1129_v28, %s5361_s27 }
 0x652   :  { %1469 = vrot.lane.b32.xlu1 %v1129_v28, %s5362_s25 }
 0x65d   :  { %1354 = vrot.lane.b32.xlu0 %v1129_v28, %s5348_s28 }
 0x67f   :  { %v891_v31 = vpop.xlane.xlu0 %890 }
 0x68d   :  { %v1007_v29 = vpop.xlane.xlu1 %1006 }
 0x691   :  { %v774_v30 = vpop.xlane.xlu1 %773  ;;  %v1125_v33 = vpop.xlane.xlu0 %1124 }
 0x692   :  { %5010 = vrcp.f32 %v774_v30  ;;  %v4861_v30 = vld [vmem:[#allocation15 + $0x30] sm:$0xff]  }
 0x693   :  { %5012 = vrcp.f32 %v891_v31  ;;  %v4862_v31 = vld [vmem:[#allocation15 + $0x28] sm:$0xff]  }
 0x694   :  { %5014 = vrcp.f32 %v1007_v29 }
 0x695   :  { %v780_v20 = vpop.permute.xlu1 %779  ;;  %5016 = vrcp.f32 %v1125_v33  ;;  %v4864_v33 = vld [vmem:[#allocation15 + $0x18] sm:$0xff]  }
 0x696   :  { %v785_v32 = vsel %vm669_vm2, %v780_v20, 0  ;;  %v4863_v20 = vld [vmem:[#allocation15 + $0x20] sm:$0xff]  }
 0x697   :  { %4522 = vmatpush3.bf16.msra.mxu1 %v785_v32  ;;  %v1235_v34 = vpop.xlane.xlu0 %1234 }
 0x698   :  { %4533 = vmatprep.subr.bf16.mxu1 %v5359_v4  ;;  %5018 = vrcp.f32 %v1235_v34 }
 0x69b   :  { %v896_v36 = vpop.permute.xlu0 %895 }
 0x69c   :  { %v901_v39 = vsel %vm669_vm2, %v896_v36, 0 }
 0x69f   :  { %v5011_v15 = vpop.eup %5010  ;;  %v1012_v43 = vpop.permute.xlu0 %1011 }
 0x6a0   :  { %v776_v35 = vmul.f32 %v5011_v15, %v5001_v6  ;;  %v5013_v38 = vpop.eup %5012  ;;  %v1017_v46 = vsel %vm669_vm2, %v1012_v43, 0 }
 0x6a1   :  { %v893_v40 = vmul.f32 %v5013_v38, %v5684_v59  ;;  %v5015_v45 = vpop.eup %5014 }
 0x6a2   :  { %v777_v37 = vpack.c.bf16 %v776_v35, %v776_v35  ;;  %v1009_v47 = vmul.f32 %v5015_v45, %v5688_v3  ;;  %v5017_v49 = vpop.eup %5016  ;;  %v4865_v35 = vld [vmem:[#allocation15 + $0x10] sm:$0xff]  }
 0x6a3   :  { %v894_v44 = vpack.c.bf16 %v893_v40, %v893_v40  ;;  %v1127_v51 = vmul.f32 %v5017_v49, %v5692_v7  ;;  %v4867_v40 = vld [vmem:[#allocation15] sm:$0xff]  }
 0x6a4   :  { %4524 = vmatmul.mubr.msk.bf16.vlgmr.msra.gmra.mxu1 %vm653_vm3, %v777_v37  ;;  %v1010_v48 = vpack.c.bf16 %v1009_v47, %v1009_v47  ;;  %v4866_v37 = vld [vmem:[#allocation15 + $0x8] sm:$0xff]  }
 0x6a5   :  { %4534 = vmatpush3.bf16.msra.mxu1 %v901_v39  ;;  %4535 = vmatprep.mubr.msk.bf16.mxu1 %vm5360_vm0, %v5359_v4  ;;  %v1128_v52 = vpack.c.bf16 %v1127_v51, %v1127_v51  ;;  %v5019_v53 = vpop.eup %5018 }
 0x6a6   :  { %4545 = vmatprep.subr.bf16.mxu1 %v5359_v4  ;;  %v1237_v55 = vmul.f32 %v5019_v53, %v5697_v11  ;;  %v4860_v11 = vld [vmem:[#allocation15 + $0x38] sm:$0xff]  }
 0x6a7   :  { %4600 = vmatpush3.bf16.msra.mxu0 %v4860_v11 }
 0x6a8   :  { %v1238_v58 = vpack.c.bf16 %v1237_v55, %v1237_v55  ;;  %4601 = vmatprep.subr.bf16.mxu0 %v5359_v4 }
 0x6ab   :  { %4602 = vmatpush3.bf16.msra.mxu0 %v4861_v30  ;;  %v4886_v30 = vld [vmem:[#allocation17 + $0x10] ss:$8 sps:$4 sm:$0xff]  }
 0x6ac   :  { %4536 = vmatmul.mubr.msk.bf16.vlgmr.msra.gmra.mxu1 %vm653_vm3, %v894_v44  ;;  %4603 = vmatprep.subr.bf16.mxu0 %v5359_v4 }
 0x6ad   :  { %4546 = vmatpush3.bf16.msra.mxu1 %v1017_v46  ;;  %4547 = vmatprep.mubr.msk.bf16.mxu1 %vm5360_vm0, %v5359_v4 }
 0x6ae   :  { %4557 = vmatprep.subr.bf16.mxu1 %v5359_v4 }
 0x6af   :  { %4604 = vmatpush3.bf16.msra.mxu0 %v4862_v31  ;;  %v4891_v31 = vld [vmem:[#allocation17 + $0x4] ss:$8 sps:$4 sm:$0xff]  }
 0x6b0   :  { %4605 = vmatprep.subr.bf16.mxu0 %v5359_v4 }
 0x6b3   :  { %4606 = vmatpush3.bf16.msra.mxu0 %v4863_v20  ;;  %v4889_v20 = vld [vmem:[#allocation17] ss:$8 sps:$4 sm:$0xff]  }
 0x6b4   :  { %4548 = vmatmul.mubr.msk.bf16.vlgmr.msra.gmra.mxu1 %vm653_vm3, %v1010_v48  ;;  %4607 = vmatprep.subr.bf16.mxu0 %v5359_v4 }
 0x6b5   :  { %4558 = vmatpush3.bf16.msra.mxu1 %v1134_v50  ;;  %4559 = vmatprep.mubr.msk.bf16.mxu1 %vm5360_vm0, %v5359_v4 }
 0x6b6   :  { %4569 = vmatprep.subr.bf16.mxu1 %v5359_v4 }
 0x6b7   :  { %4608 = vmatpush3.bf16.msra.mxu0 %v4864_v33 }
 0x6b8   :  { %4609 = vmatprep.subr.bf16.mxu0 %v5359_v4 }
 0x6bb   :  { %4610 = vmatpush3.bf16.msra.mxu0 %v4865_v35 }
 0x6bc   :  { %4560 = vmatmul.mubr.msk.bf16.vlgmr.msra.gmra.mxu1 %vm653_vm3, %v1128_v52  ;;  %4611 = vmatprep.subr.bf16.mxu0 %v5359_v4 }
 0x6bd   :  { %4571 = vmatprep.mubr.msk.bf16.mxu1 %vm5360_vm0, %v5359_v4 }
 0x6bf   :  { %4612 = vmatpush3.bf16.msra.mxu0 %v4866_v37 }
 0x6c0   :  { %4613 = vmatprep.subr.bf16.mxu0 %v5359_v4 }
 0x6c3   :  { %4614 = vmatpush3.bf16.msra.mxu0 %v4867_v40 }
 0x6c6   :  { %v1350_v54 = vpop.xlane.xlu1 %1349 }
 0x6c7   :  { %5020 = vrcp.f32 %v1350_v54 }
 0x6ca   :  { %v1240_v56 = vpop.permute.xlu1 %1239 }
 0x6cb   :  { %v1245_v57 = vsel %vm669_vm2, %v1240_v56, 0 }
 0x6cc   :  { %4570 = vmatpush3.bf16.msra.mxu1 %v1245_v57 }
 0x6cd   :  { %4581 = vmatprep.subr.bf16.mxu1 %v5359_v4 }
 0x6ce   :  { %v1470_v61 = vpop.permute.xlu1 %1469 }
 0x6cf   :  { %4572 = vmatmul.mubr.msk.bf16.vlgmr.msra.gmra.mxu1 %vm653_vm3, %v1238_v58  ;;  %v1475_v2 = vsel %vm669_vm2, %v1470_v61, 0  ;;  %v4100_v58 = vld [vmem:[%s6104_s11] ss:$0 sm:$0xff] }
 0x6d0   :  { %v1465_v59 = vpop.xlane.xlu0 %1464  ;;  %4583 = vmatprep.mubr.msk.bf16.mxu1 %vm5360_vm0, %v5359_v4 }
 0x6d1   :  { %5022 = vrcp.f32 %v1465_v59 }
 0x6d4   :  { %v5021_v60 = vpop.eup %5020  ;;  %v1355_v62 = vpop.permute.xlu0 %1354 }
 0x6d5   :  { %v1360_v63 = vsel %vm669_vm2, %v1355_v62, 0  ;;  %v1352_v0 = vmul.f32 %v5021_v60, %v5707_v18 }
 0x6d6   :  { %4582 = vmatpush3.bf16.msra.mxu1 %v1360_v63 }
 0x6d7   :  { %v1353_v1 = vpack.c.bf16 %v1352_v0, %v1352_v0  ;;  %4593 = vmatprep.subr.bf16.mxu1 %v5359_v4 }
 0x6d9   :  { %4584 = vmatmul.mubr.msk.bf16.vlgmr.msra.gmra.mxu1 %vm653_vm3, %v1353_v1 }
 0x6da   :  { %4594 = vmatpush3.bf16.msra.mxu1 %v1475_v2  ;;  %4595 = vmatprep.mubr.msk.bf16.mxu1 %vm5360_vm0, %v5359_v4 }
 0x6de   :  { %v5023_v3 = vpop.eup %5022 }
 0x6df   :  { %v1467_v5 = vmul.f32 %v5023_v3, %v5711_v26  ;;  %v4868_v3 = vld [vmem:[#allocation17 + $0x70] ss:$8 sps:$4 sm:$0xff]  }
 0x6e1   :  { %v1468_v6 = vpack.c.bf16 %v1467_v5, %v1467_v5  ;;  %v4870_v5 = vld [vmem:[#allocation17 + $0x74] ss:$8 sps:$4 sm:$0xff]  }
 0x6e2   :  { %1788 = vmatprep.subr.bf16.mxu1 %v4870_v5 }
 0x6e3   :  { %4596 = vmatmul.mubr.msk.bf16.vlgmr.msra.gmra.mxu1 %vm653_vm3, %v1468_v6 }
 0x6e4   :  { %1789 = vmatpush1.bf16.msra.mxu1 %v4868_v3 }
 0x764   :  { %v821_v7 = vpop.f32.mrf.mxu1 }
 0x765   :  { %828 = vrot.lane.b32.xlu1 %v821_v7, %s5362_s25 }
 0x766   :  { %v4525_v9 = vpop.f32.mrf.mxu1 }
 0x768   :  { %v824_v10 = vpop.f32.mrf.mxu1 }
 0x76a   :  { %v4526_v12 = vpop.f32.mrf.mxu1 }
 0x76c   :  { %v937_v13 = vpop.f32.mrf.mxu1 }
 0x76d   :  { %944 = vrot.lane.b32.xlu1 %v937_v13, %s5348_s28 }
 0x76e   :  { %v4537_v14 = vpop.f32.mrf.mxu1 }
 0x76f   :  { %v4873_v14 = vld [vmem:[#allocation17 + $0x64] ss:$8 sps:$4 sm:$0xff]  }
 0x770   :  { %v940_v16 = vpop.f32.mrf.mxu1  ;;  %1790 = vmatprep.subr.bf16.mxu1 %v4873_v14 }
 0x771   :  { %v4871_v16 = vld [vmem:[#allocation17 + $0x60] ss:$8 sps:$4 sm:$0xff]  }
 0x772   :  { %v4538_v22 = vpop.f32.mrf.mxu1  ;;  %1791 = vmatpush1.bf16.msra.mxu1 %v4871_v16 }
 0x773   :  { %v4874_v22 = vld [vmem:[#allocation17 + $0x50] ss:$8 sps:$4 sm:$0xff]  }
 0x774   :  { %v1053_v23 = vpop.f32.mrf.mxu1 }
 0x775   :  { %1060 = vrot.lane.b32.xlu0 %v1053_v23, %s5361_s27  ;;  %v4877_v23 = vld [vmem:[#allocation17 + $0x40] ss:$8 sps:$4 sm:$0xff]  }
 0x776   :  { %v4549_v24 = vpop.f32.mrf.mxu1 }
 0x777   :  { %v4879_v24 = vld [vmem:[#allocation17 + $0x44] ss:$8 sps:$4 sm:$0xff]  }
 0x778   :  { %v1056_v18 = vpop.f32.mrf.mxu1 }
 0x779   :  { %v4882_v18 = vld [vmem:[#allocation17 + $0x34] ss:$8 sps:$4 sm:$0xff]  }
 0x77a   :  { %v4550_v25 = vpop.f32.mrf.mxu1 }
 0x77b   :  { %v4880_v25 = vld [vmem:[#allocation17 + $0x30] ss:$8 sps:$4 sm:$0xff]  }
 0x77c   :  { %v1170_v26 = vpop.f32.mrf.mxu1 }
 0x77d   :  { %1176 = vst.msk [vmem:[#allocation2 + $0x8] sm:$0xff] %vm606_vm1, %v1170_v26  ;;  %v5363_v26 = vmov 0  }
 0x77e   :  { %v4561_v27 = vpop.f32.mrf.mxu1  ;;  %1820 = vmatprep.mubr.bf16.mxu1 %v5363_v26 }
 0x77f   :  { %v4885_v27 = vld [vmem:[#allocation17 + $0x24] ss:$8 sps:$4 sm:$0xff]  }
 0x780   :  { %v1173_v28 = vpop.f32.mrf.mxu1 }
 0x781   :  { %v4883_v28 = vld [vmem:[#allocation17 + $0x20] ss:$8 sps:$4 sm:$0xff]  }
 0x782   :  { %v4562_v29 = vpop.f32.mrf.mxu1 }
 0x783   :  { %v4888_v29 = vld [vmem:[#allocation17 + $0x14] ss:$8 sps:$4 sm:$0xff]  }
 0x78f   :  { %v1281_v32 = vpop.f32.mrf.mxu1 }
 0x790   :  { %1288 = vrot.lane.b32.xlu1 %v1281_v32, %s5362_s25 }
 0x791   :  { %v4573_v34 = vpop.f32.mrf.mxu1 }
 0x793   :  { %v1284_v15 = vpop.f32.mrf.mxu1 }
 0x795   :  { %v4574_v36 = vpop.f32.mrf.mxu1 }
 0x799   :  { %v1396_v38 = vpop.f32.mrf.mxu1 }
 0x79a   :  { %1403 = vrot.lane.b32.xlu1 %v1396_v38, %s5348_s28 }
 0x79b   :  { %v4585_v39 = vpop.f32.mrf.mxu1 }
 0x79c   :  { %v4109_v39 = vld [vmem:[%s6105_s12] ss:$0 sm:$0xff] }
 0x79d   :  { %v1399_v43 = vpop.f32.mrf.mxu1 }
 0x79f   :  { %v4586_v44 = vpop.f32.mrf.mxu1 }
 0x7a3   :  { %v1511_v45 = vpop.f32.mrf.mxu1 }
 0x7a4   :  { %1518 = vrot.lane.b32.xlu1 %v1511_v45, %s5361_s27  ;;  %v4110_v45 = vld [vmem:[%s6106_s13] ss:$0 sm:$0xff] }
 0x7a5   :  { %v4597_v46 = vpop.f32.mrf.mxu1 }
 0x7a7   :  { %v1514_v47 = vpop.f32.mrf.mxu1 }
 0x7a9   :  { %v4598_v48 = vpop.f32.mrf.mxu1 }
 0x7d7   :  { %v829_v49 = vpop.permute.xlu1 %828 }
 0x7d8   :  { %832 = vst.msk [vmem:[#allocation2] sm:$0xff] %vm831_vm4, %v829_v49 }
 0x7df   :  { %v945_v50 = vpop.permute.xlu1 %944 }
 0x7e0   :  { %948 = vst.msk [vmem:[#allocation2] sm:$0xff] %vm947_vm5, %v945_v50  ;;  %v4892_v50 = vld [vmem:[#allocation18 + $0x78] sm:$0xff]  }
 0x7e1   :  { %4322 = vmatprep.subr.bf16.mxu0 %v4892_v50 }
 0x7e7   :  { %v1061_v51 = vpop.permute.xlu0 %1060 }
 0x7e8   :  { %1064 = vst.msk [vmem:[#allocation2] sm:$0xff] %vm1063_vm6, %v1061_v51  ;;  %v4893_v51 = vld [vmem:[#allocation18 + $0x38] sm:$0xff]  }
 0x7ef   :  { %v1522_v55 = vld [vmem:[#allocation2] sm:$0xff] }
 0x802   :  { %v1289_v52 = vpop.permute.xlu1 %1288 }
 0x803   :  { %1291 = vst.msk [vmem:[#allocation2 + $0x8] sm:$0xff] %vm831_vm4, %v1289_v52  ;;  %v4894_v52 = vld [vmem:[#allocation18 + $0x70] sm:$0xff]  }
 0x80c   :  { %v1404_v53 = vpop.permute.xlu1 %1403 }
 0x80d   :  { %1406 = vst.msk [vmem:[#allocation2 + $0x8] sm:$0xff] %vm947_vm5, %v1404_v53  ;;  %v4895_v53 = vld [vmem:[#allocation18 + $0x30] sm:$0xff]  }
 0x816   :  { %v1519_v54 = vpop.permute.xlu1 %1518 }
 0x817   :  { %1521 = vst.msk [vmem:[#allocation2 + $0x8] sm:$0xff] %vm1063_vm6, %v1519_v54  ;;  %v4896_v54 = vld [vmem:[#allocation18 + $0x68] sm:$0xff]  }
 0x81e   :  { %v1523_v56 = vld [vmem:[#allocation2 + $0x8] sm:$0xff] }
 0x81f   :  { %v1524_v57 = vpack.c.bf16 %v1523_v56, %v1522_v55  ;;  %v4897_v55 = vld [vmem:[#allocation18 + $0x28] sm:$0xff]   ;;  %v4898_v56 = vld [vmem:[#allocation18 + $0x60] sm:$0xff]  }
 0x821   :  { %4616 = vmatmul.mubr.bf16.vlgmr.msra.gmra.mxu0 %v1524_v57  ;;  %v4899_v57 = vld [vmem:[#allocation18 + $0x20] sm:$0xff]  }
 0x822   :  { %4323 = vmatpush3.bf16.msra.mxu0 %v4893_v51 }
 0x823   :  { %4324 = vmatprep.subr.bf16.mxu0 %v4894_v52 }
 0x826   :  { %4325 = vmatpush3.bf16.msra.mxu0 %v4895_v53 }
 0x827   :  { %4326 = vmatprep.subr.bf16.mxu0 %v4896_v54 }
 0x82a   :  { %4327 = vmatpush3.bf16.msra.mxu0 %v4897_v55 }
 0x82b   :  { %4328 = vmatprep.subr.bf16.mxu0 %v4898_v56 }
 0x82e   :  { %4329 = vmatpush3.bf16.msra.mxu0 %v4899_v57 }
 0x8e1   :  { %v1630_v59 = vpop.f32.mrf.mxu0 }
 0x8e2   :  { %v1631_v60 = vadd.f32 %v4100_v58, %v1630_v59  ;;  %v4901_v59 = vld [vmem:[#allocation18 + $0x18] sm:$0xff]  }
 0x8e3   :  { %v4617_v62 = vpop.f32.mrf.mxu0 }
 0x8e4   :  { %v1637_v63 = vadd.f32 %v1631_v60, %v5559_v41  ;;  %v4902_v60 = vld [vmem:[#allocation18 + $0x50] sm:$0xff]  }
 0x8e5   :  { %v1633_v0 = vpop.f32.mrf.mxu0  ;;  %v4903_v62 = vld [vmem:[#allocation18 + $0x10] sm:$0xff]  }
 0x8e6   :  { %v1634_v61 = vadd.f32 %v4100_v58, %v1633_v0  ;;  %1641 = vadd.xlane.f32.xlu0 %v1637_v63  ;;  %v4900_v58 = vld [vmem:[#allocation18 + $0x58] sm:$0xff]   ;;  %v4905_v0 = vld [vmem:[#allocation18 + $0x8] sm:$0xff]  }
 0x8e7   :  { %v4618_v1 = vpop.f32.mrf.mxu0  ;;  %4330 = vmatprep.subr.bf16.mxu0 %v4900_v58 }
 0x8e8   :  { %v1638_v2 = vadd.f32 %v1634_v61, %v5561_v42  ;;  %v4876_v42 = vld [vmem:[#allocation17 + $0x54] ss:$8 sps:$4 sm:$0xff]   ;;  %4331 = vmatpush3.bf16.msra.mxu0 %v4901_v59  ;;  %v4906_v61 = vld [vmem:[#allocation18 + $0x40] sm:$0xff]  }
 0x8e9   :  { %1792 = vmatprep.subr.bf16.mxu1 %v4876_v42  ;;  %4332 = vmatprep.subr.bf16.mxu0 %v4902_v60  ;;  %v4907_v1 = vld [vmem:[#allocation18] sm:$0xff]   ;;  %v4127_v60 = vld [vmem:[%s6110_s17] ss:$0 sm:$0xff] }
 0x8ea   :  { %1643 = vadd.xlane.f32.xlu1 %v1638_v2  ;;  %1793 = vmatpush1.bf16.msra.mxu1 %v4874_v22 }
 0x8eb   :  { %1794 = vmatprep.subr.bf16.mxu1 %v4879_v24 }
 0x8ec   :  { %4333 = vmatpush3.bf16.msra.mxu0 %v4903_v62 }
 0x8ee   :  { %1795 = vmatpush1.bf16.msra.mxu1 %v4877_v23 }
 0x8ef   :  { %1796 = vmatprep.subr.bf16.mxu1 %v4882_v18 }
 0x8f2   :  { %1797 = vmatpush1.bf16.msra.mxu1 %v4880_v25 }
 0x8f3   :  { %1798 = vmatprep.subr.bf16.mxu1 %v4885_v27 }
 0x8f6   :  { %1799 = vmatpush1.bf16.msra.mxu1 %v4883_v28 }
 0x8f7   :  { %1800 = vmatprep.subr.bf16.mxu1 %v4888_v29 }
 0x8fa   :  { %1801 = vmatpush1.bf16.msra.mxu1 %v4886_v30 }
 0x8fb   :  { %1802 = vmatprep.subr.bf16.mxu1 %v4891_v31 }
 0x8fe   :  { %1803 = vmatpush1.bf16.msra.mxu1 %v4889_v20 }
 0x8ff   :  { %4619 = vmatprep.subr.bf16.mxu1 %v5359_v4 }
 0x96f   :  { %v1642_v6 = vpop.xlane.xlu0 %1641 }
 0x970   :  { %v1645_v7 = vmul.f32 0.0078125, %v1642_v6 }
 0x972   :  { %v1647_v9 = vsub.f32 %v1637_v63, %v1645_v7  ;;  %v4904_v63 = vld [vmem:[#allocation18 + $0x48] sm:$0xff]  }
 0x973   :  { %v1644_v10 = vpop.xlane.xlu1 %1643  ;;  %4334 = vmatprep.subr.bf16.mxu0 %v4904_v63 }
 0x974   :  { %v1646_v11 = vmul.f32 0.0078125, %v1644_v10  ;;  %v1649_v12 = vmul.f32 %v1647_v9, %v1647_v9  ;;  %4335 = vmatpush3.bf16.msra.mxu0 %v4905_v0 }
 0x975   :  { %4336 = vmatprep.subr.bf16.mxu0 %v4906_v61 }
 0x976   :  { %v1648_v13 = vsub.f32 %v1638_v2, %v1646_v11  ;;  %1651 = vadd.xlane.f32.xlu0 %v1649_v12  ;;  %v1696_v2 = vld [vmem:[%s6108_s15] sm:$0x3] }
 0x977   :  { %v1701_v3 = vrot.slane %v1696_v2, %v5601_v19  ;;  %v1705_v5 = vrot.slane %v1696_v2, %v5666_v8 }
 0x978   :  { %v1650_v41 = vmul.f32 %v1648_v13, %v1648_v13  ;;  %4337 = vmatpush3.bf16.msra.mxu0 %v4907_v1 }
 0x979   :  { %4639 = vmatprep.subr.bf16.mxu0 %v5359_v4 }
 0x97a   :  { %1653 = vadd.xlane.f32.xlu0 %v1650_v41 }
 0x9ff   :  { %v1652_v32 = vpop.xlane.xlu0 %1651 }
 0xa00   :  { %v1655_v33 = vmul.f32 0.0078125, %v1652_v32 }
 0xa02   :  { %v1657_v34 = vadd.f32 1e-12, %v1655_v33 }
 0xa03   :  { %v1654_v15 = vpop.xlane.xlu0 %1653 }
 0xa04   :  { %5024 = vrsqrt.f32 %v1657_v34  ;;  %v1656_v35 = vmul.f32 0.0078125, %v1654_v15 }
 0xa06   :  { %v1658_v36 = vadd.f32 1e-12, %v1656_v35 }
 0xa08   :  { %5026 = vrsqrt.f32 %v1658_v36 }
 0xa11   :  { %v5025_v37 = vpop.eup %5024 }
 0xa12   :  { %v1661_v38 = vmul.f32 %v5025_v37, %v1647_v9 }
 0xa14   :  { %v1669_v44 = vmul.f32 %v4109_v39, %v1661_v38 }
 0xa15   :  { %v5027_v40 = vpop.eup %5026 }
 0xa16   :  { %v1662_v43 = vmul.f32 %v5027_v40, %v1648_v13  ;;  %v5790_v47 = vadd.f32 %v4110_v45, %v1669_v44 }
 0xa18   :  { %v1670_v46 = vmul.f32 %v4109_v39, %v1662_v43 }
 0xa1a   :  { %v5792_v48 = vadd.f32 %v4110_v45, %v1670_v46 }
 0xa1c   :  { %v1679_v49 = vpack.c.bf16 %v5792_v48, %v5790_v47 }
 0xa1e   :  { %1821 = vmatmul.mubr.bf16.vlgmr.msra.gmra.mxu1 %v1679_v49 }
 0xa1f   :  { %4635 = vmatprep.mubr.msk.bf16.mxu1 %vm5360_vm0, %v5359_v4 }
 0xade   :  { %v1822_v6 = vpop.f32.mrf.mxu1 }
 0xadf   :  { %v1823_v7 = vadd.f32 %v1822_v6, %v1701_v3 }
 0xae0   :  { %v1824_v9 = vpop.f32.mrf.mxu1 }
 0xae1   :  { %v1831_v10 = vmul.f32 %v1823_v7, %v1823_v7  ;;  %v1825_v11 = vadd.f32 %v1824_v9, %v1705_v5  ;;  %v4909_v9 = vld [vmem:[#allocation12 + $0x78] sm:$0xff]  }
 0xae2   :  { %v1826_v12 = vpop.f32.mrf.mxu1 }
 0xae3   :  { %v1835_v13 = vmul.f32 %v1831_v10, %v1823_v7  ;;  %v1832_v41 = vmul.f32 %v1825_v11, %v1825_v11  ;;  %v1827_v14 = vadd.f32 %v1826_v12, %v1701_v3 }
 0xae4   :  { %v1828_v16 = vpop.f32.mrf.mxu1 }
 0xae5   :  { %v1839_v42 = vmul.f32 0.044715, %v1835_v13  ;;  %v1836_v22 = vmul.f32 %v1832_v41, %v1825_v11  ;;  %v1833_v23 = vmul.f32 %v1827_v14, %v1827_v14  ;;  %v1829_v24 = vadd.f32 %v1828_v16, %v1705_v5 }
 0xae7   :  { %v1843_v18 = vadd.f32 %v1839_v42, %v1823_v7  ;;  %v1840_v25 = vmul.f32 0.044715, %v1836_v22  ;;  %v1837_v27 = vmul.f32 %v1833_v23, %v1827_v14  ;;  %v1834_v28 = vmul.f32 %v1829_v24, %v1829_v24  ;;  %v4911_v42 = vld [vmem:[#allocation12 + $0x70] sm:$0xff]   ;;  %v4912_v22 = vld [vmem:[#allocation11 + $0x68] sm:$0xff]  }
 0xae8   :  { %v4913_v23 = vld [vmem:[#allocation12 + $0x68] sm:$0xff]  }
 0xae9   :  { %v1847_v29 = vmul.f32 0.7978846, %v1843_v18  ;;  %v1844_v30 = vadd.f32 %v1840_v25, %v1825_v11  ;;  %v1841_v31 = vmul.f32 0.044715, %v1837_v27  ;;  %v1838_v20 = vmul.f32 %v1834_v28, %v1829_v24  ;;  %v4915_v18 = vld [vmem:[#allocation12 + $0x60] sm:$0xff]   ;;  %v4916_v25 = vld [vmem:[#allocation11 + $0x58] sm:$0xff]  }
 0xaea   :  { %v4917_v27 = vld [vmem:[#allocation12 + $0x58] sm:$0xff]   ;;  %v4918_v28 = vld [vmem:[#allocation11 + $0x50] sm:$0xff]  }
 0xaeb   :  { %v1848_v32 = vmul.f32 0.7978846, %v1844_v30  ;;  %v1845_v33 = vadd.f32 %v1841_v31, %v1827_v14  ;;  %v1842_v34 = vmul.f32 0.044715, %v1838_v20  ;;  %5028 = vtanh.f32 %v1847_v29  ;;  %v4919_v29 = vld [vmem:[#allocation12 + $0x50] sm:$0xff]   ;;  %v4920_v30 = vld [vmem:[#allocation11 + $0x48] sm:$0xff]  }
 0xaec   :  { %v4921_v31 = vld [vmem:[#allocation12 + $0x48] sm:$0xff]   ;;  %v4922_v20 = vld [vmem:[#allocation11 + $0x40] sm:$0xff]  }
 0xaed   :  { %5030 = vtanh.f32 %v1848_v32  ;;  %v1849_v15 = vmul.f32 0.7978846, %v1845_v33  ;;  %v1846_v35 = vadd.f32 %v1842_v34, %v1829_v24  ;;  %v4923_v32 = vld [vmem:[#allocation12 + $0x40] sm:$0xff]  }
 0xaef   :  { %5032 = vtanh.f32 %v1849_v15  ;;  %v1850_v36 = vmul.f32 0.7978846, %v1846_v35 }
 0xaf1   :  { %5034 = vtanh.f32 %v1850_v36 }
 0xaf8   :  { %v5029_v37 = vpop.eup %5028 }
 0xaf9   :  { %v1855_v43 = vadd.f32 1.0, %v5029_v37 }
 0xafa   :  { %v5031_v38 = vpop.eup %5030 }
 0xafb   :  { %v1856_v39 = vadd.f32 1.0, %v5031_v38  ;;  %v1859_v51 = vmul.f32 0.5, %v1855_v43 }
 0xafc   :  { %v5033_v40 = vpop.eup %5032 }
 0xafd   :  { %v1857_v44 = vadd.f32 1.0, %v5033_v40  ;;  %v1860_v50 = vmul.f32 0.5, %v1856_v39  ;;  %v1863_v56 = vmul.f32 %v1859_v51, %v1823_v7  ;;  %v4908_v7 = vld [vmem:[#allocation11 + $0x78] sm:$0xff]  }
 0xafe   :  { %v5035_v45 = vpop.eup %5034  ;;  %4620 = vmatpush3.bf16.msra.mxu1 %v4908_v7  ;;  %v4144_v40 = vld [vmem:[%s6111_s18] ss:$0 sm:$0xff] }
 0xaff   :  { %v1861_v46 = vmul.f32 0.5, %v1857_v44  ;;  %v1858_v49 = vadd.f32 1.0, %v5035_v45  ;;  %v1864_v54 = vmul.f32 %v1860_v50, %v1825_v11  ;;  %4621 = vmatprep.subr.bf16.mxu1 %v5359_v4 }
 0xb01   :  { %v1862_v52 = vmul.f32 0.5, %v1858_v49  ;;  %v1865_v53 = vmul.f32 %v1861_v46, %v1827_v14  ;;  %v4145_v46 = vld [vmem:[%s6112_s19] ss:$0 sm:$0xff] }
 0xb03   :  { %v1866_v55 = vmul.f32 %v1862_v52, %v1829_v24  ;;  %v1867_v58 = vpack.c.bf16 %v1865_v53, %v1863_v56  ;;  %v4914_v24 = vld [vmem:[#allocation11 + $0x60] sm:$0xff]   ;;  %v4924_v52 = vld [vmem:[#allocation14 + $0x78] sm:$0xff]  }
 0xb04   :  { %v4927_v56 = vld [vmem:[#allocation14 + $0x60] sm:$0xff]  }
 0xb05   :  { %v1868_v57 = vpack.c.bf16 %v1866_v55, %v1864_v54  ;;  %v4925_v54 = vld [vmem:[#allocation14 + $0x70] sm:$0xff]   ;;  %v4926_v55 = vld [vmem:[#allocation14 + $0x68] sm:$0xff]  }
 0xb07   :  { %2036 = vmatprep.mubr.bf16.mxu0 %v1868_v57  ;;  %v4928_v57 = vld [vmem:[#allocation14 + $0x58] sm:$0xff]  }
 0xb08   :  { %2037 = vmatmul.mubr.bf16.vlgmr.msra.gmra.mxu0 %v1867_v58  ;;  %v4929_v58 = vld [vmem:[#allocation14 + $0x50] sm:$0xff]  }
 0xb09   :  { %4655 = vmatprep.mubr.msk.bf16.mxu0 %vm5360_vm0, %v5359_v4  ;;  %4640 = vmatpush3.bf16.msra.mxu0 %v4909_v9 }
 0xb0a   :  { %4641 = vmatprep.subr.bf16.mxu0 %v5359_v4 }
 0xb0d   :  { %4642 = vmatpush3.bf16.msra.mxu0 %v4911_v42 }
 0xb0e   :  { %4643 = vmatprep.subr.bf16.mxu0 %v5359_v4 }
 0xb11   :  { %4644 = vmatpush3.bf16.msra.mxu0 %v4913_v23  ;;  %v4167_v23 = vld [vmem:[%s6102_s9 + $0x1] ss:$0 sm:$0xff] }
 0xb12   :  { %4645 = vmatprep.subr.bf16.mxu0 %v5359_v4 }
 0xb15   :  { %4646 = vmatpush3.bf16.msra.mxu0 %v4915_v18 }
 0xb16   :  { %4647 = vmatprep.subr.bf16.mxu0 %v5359_v4 }
 0xb19   :  { %4648 = vmatpush3.bf16.msra.mxu0 %v4917_v27 }
 0xb1a   :  { %4649 = vmatprep.subr.bf16.mxu0 %v5359_v4 }
 0xb1d   :  { %4650 = vmatpush3.bf16.msra.mxu0 %v4919_v29 }
 0xb1e   :  { %4651 = vmatprep.subr.bf16.mxu0 %v5359_v4 }
 0xb21   :  { %4652 = vmatpush3.bf16.msra.mxu0 %v4921_v31 }
 0xb22   :  { %4653 = vmatprep.subr.bf16.mxu0 %v5359_v4 }
 0xb25   :  { %4654 = vmatpush3.bf16.msra.mxu0 %v4923_v32 }
 0xb26   :  { %4679 = vmatprep.subr.bf16.mxu0 %v5359_v4 }
 0xbc8   :  { %v4338_v59 = vpop.f32.mrf.mxu0 }
 0xbca   :  { %v4339_v62 = vpop.f32.mrf.mxu0 }
 0xbcb   :  { %v4340_v63 = vadd.f32 %v4339_v62, %v4338_v59  ;;  %v4930_v59 = vld [vmem:[#allocation14 + $0x48] sm:$0xff]   ;;  %v4147_v62 = vld [vmem:[%s6130_s30 + $0x1] ss:$0 sm:$0xff] }
 0xbcc   :  { %v4341_v0 = vpop.f32.mrf.mxu0 }
 0xbcd   :  { %v2039_v61 = vadd.f32 %v4340_v63, %v4127_v60 }
 0xbce   :  { %v4342_v1 = vpop.f32.mrf.mxu0 }
 0xbcf   :  { %v4343_v2 = vadd.f32 %v4342_v1, %v4341_v0  ;;  %v2045_v3 = vadd.f32 %v2039_v61, %v5790_v47  ;;  %v4157_v61 = vld [vmem:[%s6100_s7 + $0x1] ss:$0 sm:$0xff] }
 0xbd1   :  { %v2042_v5 = vadd.f32 %v4343_v2, %v4127_v60  ;;  %2049 = vadd.xlane.f32.xlu0 %v2045_v3  ;;  %v4931_v60 = vld [vmem:[#allocation14 + $0x40] sm:$0xff]  }
 0xbd3   :  { %v2046_v6 = vadd.f32 %v2042_v5, %v5792_v48  ;;  %v4910_v48 = vld [vmem:[#allocation11 + $0x70] sm:$0xff]  }
 0xbd4   :  { %4622 = vmatpush3.bf16.msra.mxu1 %v4910_v48 }
 0xbd5   :  { %2051 = vadd.xlane.f32.xlu1 %v2046_v6  ;;  %4623 = vmatprep.subr.bf16.mxu1 %v5359_v4 }
 0xbd8   :  { %4624 = vmatpush3.bf16.msra.mxu1 %v4912_v22 }
 0xbd9   :  { %4625 = vmatprep.subr.bf16.mxu1 %v5359_v4 }
 0xbdc   :  { %4626 = vmatpush3.bf16.msra.mxu1 %v4914_v24 }
 0xbdd   :  { %4627 = vmatprep.subr.bf16.mxu1 %v5359_v4 }
 0xbe0   :  { %4628 = vmatpush3.bf16.msra.mxu1 %v4916_v25 }
 0xbe1   :  { %4629 = vmatprep.subr.bf16.mxu1 %v5359_v4 }
 0xbe4   :  { %4630 = vmatpush3.bf16.msra.mxu1 %v4918_v28 }
 0xbe5   :  { %4631 = vmatprep.subr.bf16.mxu1 %v5359_v4 }
 0xbe8   :  { %4632 = vmatpush3.bf16.msra.mxu1 %v4920_v30 }
 0xbe9   :  { %4633 = vmatprep.subr.bf16.mxu1 %v5359_v4 }
 0xbec   :  { %4634 = vmatpush3.bf16.msra.mxu1 %v4922_v20 }
 0xbed   :  { %4659 = vmatprep.subr.bf16.mxu1 %v5359_v4 }
 0xc5a   :  { %v2050_v10 = vpop.xlane.xlu0 %2049 }
 0xc5b   :  { %v2053_v11 = vmul.f32 0.0078125, %v2050_v10 }
 0xc5d   :  { %v2055_v12 = vsub.f32 %v2045_v3, %v2053_v11 }
 0xc5e   :  { %v2052_v13 = vpop.xlane.xlu1 %2051 }
 0xc5f   :  { %v2054_v41 = vmul.f32 0.0078125, %v2052_v13  ;;  %v2057_v14 = vmul.f32 %v2055_v12, %v2055_v12 }
 0xc61   :  { %v2056_v47 = vsub.f32 %v2046_v6, %v2054_v41  ;;  %2059 = vadd.xlane.f32.xlu0 %v2057_v14 }
 0xc63   :  { %v2058_v16 = vmul.f32 %v2056_v47, %v2056_v47 }
 0xc65   :  { %2061 = vadd.xlane.f32.xlu1 %v2058_v16 }
 0xcea   :  { %v2060_v33 = vpop.xlane.xlu0 %2059 }
 0xceb   :  { %v2063_v34 = vmul.f32 0.0078125, %v2060_v33 }
 0xced   :  { %v2065_v15 = vadd.f32 1e-12, %v2063_v34 }
 0xcee   :  { %v2062_v35 = vpop.xlane.xlu1 %2061 }
 0xcef   :  { %5036 = vrsqrt.f32 %v2065_v15  ;;  %v2064_v36 = vmul.f32 0.0078125, %v2062_v35 }
 0xcf1   :  { %v2066_v37 = vadd.f32 1e-12, %v2064_v36 }
 0xcf3   :  { %5038 = vrsqrt.f32 %v2066_v37 }
 0xcfc   :  { %v5037_v38 = vpop.eup %5036 }
 0xcfd   :  { %v2069_v39 = vmul.f32 %v5037_v38, %v2055_v12 }
 0xcff   :  { %v2077_v45 = vmul.f32 %v4144_v40, %v2069_v39 }
 0xd00   :  { %v5039_v43 = vpop.eup %5038 }
 0xd01   :  { %v2070_v44 = vmul.f32 %v5039_v43, %v2056_v47  ;;  %v5833_v50 = vadd.f32 %v4145_v46, %v2077_v45 }
 0xd03   :  { %v2078_v49 = vmul.f32 %v4144_v40, %v2070_v44 }
 0xd05   :  { %v5835_v51 = vadd.f32 %v4145_v46, %v2078_v49 }
 0xd07   :  { %v2087_v53 = vpack.c.bf16 %v5835_v51, %v5833_v50 }
 0xd09   :  { %4636 = vmatmul.mubr.bf16.vlgmr.msra.gmra.mxu1 %v2087_v53  ;;  %4656 = vmatmul.mubr.bf16.vlgmr.msra.gmra.mxu0 %v2087_v53 }
 0xd0a   :  { %4660 = vmatpush3.bf16.msra.mxu1 %v4924_v52  ;;  %4675 = vmatprep.mubr.msk.bf16.mxu1 %vm5360_vm0, %v5359_v4 }
 0xd0b   :  { %4661 = vmatprep.subr.bf16.mxu1 %v5359_v4  ;;  %4681 = vmatprep.mubr.msk.bf16.mxu0 %vm5360_vm0, %v5359_v4 }
 0xd0e   :  { %4662 = vmatpush3.bf16.msra.mxu1 %v4925_v54 }
 0xd0f   :  { %4663 = vmatprep.subr.bf16.mxu1 %v5359_v4 }
 0xd12   :  { %4664 = vmatpush3.bf16.msra.mxu1 %v4926_v55 }
 0xd13   :  { %4665 = vmatprep.subr.bf16.mxu1 %v5359_v4 }
 0xd16   :  { %4666 = vmatpush3.bf16.msra.mxu1 %v4927_v56 }
 0xd17   :  { %4667 = vmatprep.subr.bf16.mxu1 %v5359_v4 }
 0xd1a   :  { %4668 = vmatpush3.bf16.msra.mxu1 %v4928_v57 }
 0xd1b   :  { %4669 = vmatprep.subr.bf16.mxu1 %v5359_v4 }
 0xd1e   :  { %4670 = vmatpush3.bf16.msra.mxu1 %v4929_v58 }
 0xd1f   :  { %4671 = vmatprep.subr.bf16.mxu1 %v5359_v4 }
 0xd22   :  { %4672 = vmatpush3.bf16.msra.mxu1 %v4930_v59 }
 0xd23   :  { %4673 = vmatprep.subr.bf16.mxu1 %v5359_v4 }
 0xd26   :  { %4674 = vmatpush3.bf16.msra.mxu1 %v4931_v60 }
 0xd27   :  { %4685 = vmatprep.subr.bf16.mxu1 %v5359_v4 }
 0xd29   :  { %4676 = vmatmul.mubr.bf16.vlgmr.msra.gmra.mxu1 %v2087_v53 }
 0xd2a   :  { %4687 = vmatprep.mubr.msk.bf16.mxu1 %vm5360_vm0, %v5359_v4 }
 0xdc9   :  { %v2195_v63 = vpop.f32.mrf.mxu1  ;;  %v2309_v0 = vpop.f32.mrf.mxu0 }
 0xdca   :  { %v2196_v3 = vadd.f32 %v4147_v62, %v2195_v63  ;;  %v2310_v7 = vadd.f32 %v4157_v61, %v2309_v0 }
 0xdcb   :  { %v4637_v1 = vpop.f32.mrf.mxu1  ;;  %v4657_v2 = vpop.f32.mrf.mxu0 }
 0xdcc   :  { %v2430_v13 = vmul.f32 0.17677669, %v2196_v3 }
 0xdcd   :  { %v2198_v5 = vpop.f32.mrf.mxu1  ;;  %v2312_v6 = vpop.f32.mrf.mxu0 }
 0xdce   :  { %v2199_v9 = vadd.f32 %v4147_v62, %v2198_v5  ;;  %v2313_v10 = vadd.f32 %v4157_v61, %v2312_v6 }
 0xdcf   :  { %v4638_v11 = vpop.f32.mrf.mxu1  ;;  %v4658_v12 = vpop.f32.mrf.mxu0 }
 0xdd0   :  { %v2431_v41 = vmul.f32 0.17677669, %v2199_v9  ;;  %v2433_v14 = vpack.c.bf16 %v2313_v10, %v2310_v7 }
 0xdd2   :  { %v2432_v47 = vpack.c.bf16 %v2431_v41, %v2430_v13  ;;  %2544 = vrot.lane.b32.xlu0 %v2433_v14, %s5361_s27  ;;  %v2439_v16 = vsel %vm606_vm1, %v2433_v14, 0  ;;  %v2889_v48 = vrot.slane %v2433_v14, 4 }
 0xdd3   :  { %4680 = vmatpush3.bf16.xpose.msra.mxu0 %v2439_v16 }
 0xdd4   :  { %2541 = vrot.lane.b32.xlu1 %v2432_v47, %s5361_s27  ;;  %4691 = vmatprep.subr.bf16.mxu0 %v5359_v4  ;;  %v2888_v42 = vrot.slane %v2432_v47, 4  ;;  %v2894_v38 = vsel %vm606_vm1, %v2889_v48, 0 }
 0xdd6   :  { %2775 = vrot.lane.b32.xlu0 %v2433_v14, %s5362_s25 }
 0xdd8   :  { %2660 = vrot.lane.b32.xlu1 %v2433_v14, %s5348_s28 }
 0xdda   :  { %2998 = vrot.lane.b32.xlu0 %v2889_v48, %s5361_s27  ;;  %4682 = vmatmul.mubr.msk.bf16.vlgmr.msra.gmra.mxu0 %vm606_vm1, %v2432_v47 }
 0xddb   :  { %4693 = vmatprep.mubr.msk.bf16.mxu0 %vm5360_vm0, %v5359_v4 }
 0xddc   :  { %2658 = vrot.lane.b32.xlu1 %v2432_v47, %s5348_s28 }
 0xdde   :  { %3113 = vrot.lane.b32.xlu0 %v2889_v48, %s5348_s28 }
 0xde0   :  { %2773 = vrot.lane.b32.xlu1 %v2432_v47, %s5362_s25 }
 0xde2   :  { %3228 = vrot.lane.b32.xlu0 %v2889_v48, %s5362_s25 }
 0xde4   :  { %2996 = vrot.lane.b32.xlu1 %v2888_v42, %s5361_s27 }
 0xde8   :  { %3111 = vrot.lane.b32.xlu1 %v2888_v42, %s5348_s28 }
 0xde9   :  { %v2423_v22 = vpop.f32.mrf.mxu1 }
 0xdea   :  { %v2424_v25 = vadd.f32 %v4167_v23, %v2423_v22 }
 0xdeb   :  { %v4677_v24 = vpop.f32.mrf.mxu1 }
 0xdec   :  { %3226 = vrot.lane.b32.xlu1 %v2888_v42, %s5362_s25 }
 0xded   :  { %v2426_v18 = vpop.f32.mrf.mxu1 }
 0xdee   :  { %v2427_v27 = vadd.f32 %v4167_v23, %v2426_v18 }
 0xdef   :  { %v4678_v28 = vpop.f32.mrf.mxu1 }
 0xdf0   :  { %v5879_v29 = vpack.c.bf16 %v2427_v27, %v2424_v25 }
 0xdf2   :  { %v2497_v30 = vsel %vm669_vm2, %v5879_v29, 0 }
 0xdf3   :  { %4686 = vmatpush3.bf16.msra.mxu1 %v2497_v30 }
 0xdf4   :  { %4697 = vmatprep.subr.bf16.mxu1 %v5359_v4 }
 0xe44   :  { %v2545_v31 = vpop.permute.xlu0 %2544 }
 0xe45   :  { %v2550_v20 = vsel %vm606_vm1, %v2545_v31, 0 }
 0xe46   :  { %v2542_v32 = vpop.permute.xlu1 %2541  ;;  %4692 = vmatpush3.bf16.xpose.msra.mxu0 %v2550_v20 }
 0xe47   :  { %4703 = vmatprep.subr.bf16.mxu0 %v5359_v4 }
 0xe48   :  { %v2776_v15 = vpop.permute.xlu0 %2775 }
 0xe49   :  { %v2781_v36 = vsel %vm606_vm1, %v2776_v15, 0 }
 0xe4a   :  { %v2661_v33 = vpop.permute.xlu1 %2660 }
 0xe4b   :  { %v2666_v34 = vsel %vm606_vm1, %v2661_v33, 0 }
 0xe4c   :  { %v2999_v39 = vpop.permute.xlu0 %2998 }
 0xe4d   :  { %4694 = vmatmul.mubr.msk.bf16.vlgmr.msra.gmra.mxu0 %vm606_vm1, %v2542_v32  ;;  %v3004_v40 = vsel %vm606_vm1, %v2999_v39, 0 }
 0xe4e   :  { %4704 = vmatpush3.bf16.xpose.msra.mxu0 %v2666_v34  ;;  %4705 = vmatprep.mubr.msk.bf16.mxu0 %vm5360_vm0, %v5359_v4  ;;  %v2659_v35 = vpop.permute.xlu1 %2658 }
 0xe4f   :  { %4715 = vmatprep.subr.bf16.mxu0 %v5359_v4 }
 0xe50   :  { %v3114_v43 = vpop.permute.xlu0 %3113 }
 0xe51   :  { %v3119_v45 = vsel %vm606_vm1, %v3114_v43, 0 }
 0xe52   :  { %v2774_v37 = vpop.permute.xlu1 %2773 }
 0xe54   :  { %v3229_v46 = vpop.permute.xlu0 %3228 }
 0xe55   :  { %4706 = vmatmul.mubr.msk.bf16.vlgmr.msra.gmra.mxu0 %vm606_vm1, %v2659_v35  ;;  %v3234_v52 = vsel %vm606_vm1, %v3229_v46, 0 }
 0xe56   :  { %4716 = vmatpush3.bf16.xpose.msra.mxu0 %v2781_v36  ;;  %4717 = vmatprep.mubr.msk.bf16.mxu0 %vm5360_vm0, %v5359_v4  ;;  %v2997_v44 = vpop.permute.xlu1 %2996 }
 0xe57   :  { %4727 = vmatprep.subr.bf16.mxu0 %v5359_v4 }
 0xe5a   :  { %v3112_v49 = vpop.permute.xlu1 %3111 }
 0xe5d   :  { %4718 = vmatmul.mubr.msk.bf16.vlgmr.msra.gmra.mxu0 %vm606_vm1, %v2774_v37 }
 0xe5e   :  { %4728 = vmatpush3.bf16.xpose.msra.mxu0 %v2894_v38  ;;  %4729 = vmatprep.mubr.msk.bf16.mxu0 %vm5360_vm0, %v5359_v4  ;;  %v3227_v53 = vpop.permute.xlu1 %3226 }
 0xe5f   :  { %4739 = vmatprep.subr.bf16.mxu0 %v5359_v4 }
 0xe65   :  { %4730 = vmatmul.mubr.msk.bf16.vlgmr.msra.gmra.mxu0 %vm606_vm1, %v2888_v42 }
 0xe66   :  { %4740 = vmatpush3.bf16.xpose.msra.mxu0 %v3004_v40  ;;  %4741 = vmatprep.mubr.msk.bf16.mxu0 %vm5360_vm0, %v5359_v4 }
 0xe67   :  { %4751 = vmatprep.subr.bf16.mxu0 %v5359_v4 }
 0xe6d   :  { %4742 = vmatmul.mubr.msk.bf16.vlgmr.msra.gmra.mxu0 %vm606_vm1, %v2997_v44 }
 0xe6e   :  { %4752 = vmatpush3.bf16.xpose.msra.mxu0 %v3119_v45  ;;  %4753 = vmatprep.mubr.msk.bf16.mxu0 %vm5360_vm0, %v5359_v4 }
 0xe6f   :  { %4763 = vmatprep.subr.bf16.mxu0 %v5359_v4 }
 0xe75   :  { %4754 = vmatmul.mubr.msk.bf16.vlgmr.msra.gmra.mxu0 %vm606_vm1, %v3112_v49 }
 0xe76   :  { %4764 = vmatpush3.bf16.xpose.msra.mxu0 %v3234_v52  ;;  %4765 = vmatprep.mubr.msk.bf16.mxu0 %vm5360_vm0, %v5359_v4 }
 0xe77   :  { %4775 = vmatprep.subr.bf16.mxu0 %v5359_v4 }
 0xe7d   :  { %4766 = vmatmul.mubr.msk.bf16.vlgmr.msra.gmra.mxu0 %vm606_vm1, %v3227_v53 }
 0xe7e   :  { %4791 = vmatprep.mubr.msk.bf16.mxu0 %vm5360_vm0, %v5359_v4 }
 0xe9a   :  { %v2475_v54 = vpop.f32.mrf.mxu0 }
 0xe9b   :  { %v2476_v55 = vadd.f32 %v2475_v54, %v5607_v21 }
 0xe9c   :  { %v4683_v56 = vpop.f32.mrf.mxu0 }
 0xe9d   :  { %v2481_v57 = vsel %vm653_vm3, %v2476_v55, -inf }
 0xe9e   :  { %2482 = vmax.xlane.f32.xlu0 %v2481_v57  ;;  %v2478_v58 = vpop.f32.mrf.mxu0 }
 0xea0   :  { %v4684_v59 = vpop.f32.mrf.mxu0 }
 0xf0d   :  { %v2586_v60 = vpop.f32.mrf.mxu0 }
 0xf0e   :  { %v2587_v62 = vadd.f32 %v2586_v60, %v5607_v21 }
 0xf0f   :  { %v4695_v63 = vpop.f32.mrf.mxu0 }
 0xf10   :  { %v2592_v0 = vsel %vm653_vm3, %v2587_v62, -inf }
 0xf11   :  { %2593 = vmax.xlane.f32.xlu1 %v2592_v0  ;;  %v2589_v61 = vpop.f32.mrf.mxu0 }
 0xf13   :  { %v4696_v1 = vpop.f32.mrf.mxu0 }
 0xf15   :  { %v2702_v2 = vpop.f32.mrf.mxu0 }
 0xf16   :  { %v2703_v3 = vadd.f32 %v2702_v2, %v5607_v21 }
 0xf17   :  { %v4707_v5 = vpop.f32.mrf.mxu0 }
 0xf18   :  { %v2708_v6 = vsel %vm653_vm3, %v2703_v3, -inf }
 0xf19   :  { %2709 = vmax.xlane.f32.xlu0 %v2708_v6  ;;  %v2705_v7 = vpop.f32.mrf.mxu0 }
 0xf1b   :  { %v4708_v9 = vpop.f32.mrf.mxu0 }
 0xf1d   :  { %v2817_v10 = vpop.f32.mrf.mxu0 }
 0xf1e   :  { %v2818_v11 = vadd.f32 %v2817_v10, %v5607_v21 }
 0xf1f   :  { %v4719_v12 = vpop.f32.mrf.mxu0 }
 0xf20   :  { %v2823_v13 = vsel %vm653_vm3, %v2818_v11, -inf }
 0xf21   :  { %2824 = vmax.xlane.f32.xlu0 %v2823_v13  ;;  %v2820_v41 = vpop.f32.mrf.mxu0 }
 0xf23   :  { %v4720_v14 = vpop.f32.mrf.mxu0 }
 0xf25   :  { %v2930_v47 = vpop.f32.mrf.mxu0 }
 0xf26   :  { %v2931_v16 = vadd.f32 %v2930_v47, %v5673_v17 }
 0xf27   :  { %v2483_v48 = vpop.xlane.xlu0 %2482  ;;  %v4731_v42 = vpop.f32.mrf.mxu0 }
 0xf28   :  { %v2484_v22 = vsub.f32 %v2476_v55, %v2483_v48  ;;  %v2936_v23 = vsel %vm653_vm3, %v2931_v16, -inf }
 0xf29   :  { %2937 = vmax.xlane.f32.xlu0 %v2936_v23  ;;  %v2933_v24 = vpop.f32.mrf.mxu0 }
 0xf2a   :  { %v2485_v18 = vmul.f32 1.442695, %v2484_v22 }
 0xf2b   :  { %v4732_v25 = vpop.f32.mrf.mxu0 }
 0xf2c   :  { %5040 = vpow2.f32 %v2485_v18 }
 0xf2d   :  { %v3040_v21 = vpop.f32.mrf.mxu0 }
 0xf2e   :  { %v5930_v27 = vadd.f32 %v3040_v21, %v5673_v17 }
 0xf2f   :  { %v4743_v28 = vpop.f32.mrf.mxu0 }
 0xf30   :  { %v3046_v30 = vsel %vm653_vm3, %v5930_v27, -inf }
 0xf31   :  { %3047 = vmax.xlane.f32.xlu1 %v3046_v30  ;;  %v3043_v31 = vpop.f32.mrf.mxu0 }
 0xf33   :  { %v4744_v20 = vpop.f32.mrf.mxu0 }
 0xf35   :  { %v3155_v32 = vpop.f32.mrf.mxu0 }
 0xf36   :  { %v5935_v33 = vadd.f32 %v3155_v32, %v5673_v17 }
 0xf37   :  { %v4755_v34 = vpop.f32.mrf.mxu0 }
 0xf38   :  { %v3161_v15 = vsel %vm653_vm3, %v5935_v33, -inf }
 0xf39   :  { %v5041_v35 = vpop.eup %5040  ;;  %3162 = vmax.xlane.f32.xlu0 %v3161_v15  ;;  %v3158_v36 = vpop.f32.mrf.mxu0 }
 0xf3a   :  { %v2487_v38 = vsel %vm653_vm3, %v5041_v35, 0.0 }
 0xf3b   :  { %v4756_v37 = vpop.f32.mrf.mxu0 }
 0xf3d   :  { %2488 = vadd.xlane.f32.xlu0 %v2487_v38  ;;  %v3270_v39 = vpop.f32.mrf.mxu0 }
 0xf3e   :  { %v3271_v40 = vadd.f32 %v3270_v39, %v5673_v17 }
 0xf3f   :  { %v4767_v43 = vpop.f32.mrf.mxu0 }
 0xf40   :  { %v3276_v44 = vsel %vm653_vm3, %v3271_v40, -inf }
 0xf41   :  { %3277 = vmax.xlane.f32.xlu1 %v3276_v44  ;;  %v3273_v45 = vpop.f32.mrf.mxu0 }
 0xf43   :  { %v4768_v46 = vpop.f32.mrf.mxu0 }
 0xf52   :  { %2605 = vrot.lane.b32.xlu1 %v5879_v29, %s5361_s27 }
 0xf53   :  { %2720 = vrot.lane.b32.xlu0 %v5879_v29, %s5348_s28 }
 0xf9a   :  { %v2594_v49 = vpop.xlane.xlu1 %2593 }
 0xf9b   :  { %v2595_v52 = vsub.f32 %v2587_v62, %v2594_v49 }
 0xf9d   :  { %v2596_v53 = vmul.f32 1.442695, %v2595_v52 }
 0xf9f   :  { %5042 = vpow2.f32 %v2596_v53 }
 0xfa2   :  { %v2710_v54 = vpop.xlane.xlu0 %2709 }
 0xfa3   :  { %v2711_v55 = vsub.f32 %v2703_v3, %v2710_v54 }
 0xfa5   :  { %v2712_v56 = vmul.f32 1.442695, %v2711_v55 }
 0xfa7   :  { %5044 = vpow2.f32 %v2712_v56 }
 0xfaa   :  { %v2825_v17 = vpop.xlane.xlu0 %2824 }
 0xfab   :  { %v2826_v57 = vsub.f32 %v2818_v11, %v2825_v17  ;;  %v5960_v11 = vrot.slane %v5879_v29, 4 }
 0xfac   :  { %v5043_v58 = vpop.eup %5042 }
 0xfad   :  { %v2827_v59 = vmul.f32 1.442695, %v2826_v57  ;;  %v2598_v60 = vsel %vm653_vm3, %v5043_v58, 0.0  ;;  %v2953_v52 = vsel %vm669_vm2, %v5960_v11, 0 }
 0xfae   :  { %2599 = vadd.xlane.f32.xlu1 %v2598_v60 }
 0xfaf   :  { %5046 = vpow2.f32 %v2827_v59 }
 0xfb2   :  { %v2938_v63 = vpop.xlane.xlu0 %2937 }
 0xfb3   :  { %v2939_v0 = vsub.f32 %v2931_v16, %v2938_v63 }
 0xfb4   :  { %v5947_v61 = vpop.eup %5044 }
 0xfb5   :  { %v2940_v1 = vmul.f32 1.442695, %v2939_v0  ;;  %v2714_v62 = vsel %vm653_vm3, %v5947_v61, 0.0 }
 0xfb6   :  { %2715 = vadd.xlane.f32.xlu0 %v2714_v62 }
 0xfb7   :  { %5048 = vpow2.f32 %v2940_v1 }
 0xfba   :  { %v3048_v10 = vpop.xlane.xlu1 %3047 }
 0xfbb   :  { %v3049_v22 = vsub.f32 %v5930_v27, %v3048_v10 }
 0xfbc   :  { %v5951_v2 = vpop.eup %5046 }
 0xfbd   :  { %v2829_v3 = vsel %vm653_vm3, %v5951_v2, 0.0  ;;  %v3050_v23 = vmul.f32 1.442695, %v3049_v22  ;;  %v4933_v22 = vld [vmem:[#allocation15 + $0x70] sm:$0xff]  }
 0xfbe   :  { %2830 = vadd.xlane.f32.xlu1 %v2829_v3 }
 0xfc2   :  { %v3163_v5 = vpop.xlane.xlu0 %3162 }
 0xfc3   :  { %v3164_v16 = vsub.f32 %v5935_v33, %v3163_v5 }
 0xfc4   :  { %v5955_v6 = vpop.eup %5048 }
 0xfc5   :  { %v2942_v7 = vsel %vm653_vm3, %v5955_v6, 0.0  ;;  %v3165_v42 = vmul.f32 1.442695, %v3164_v16 }
 0xfc6   :  { %v2489_v9 = vpop.xlane.xlu0 %2488  ;;  %2943 = vadd.xlane.f32.xlu0 %v2942_v7 }
 0xfc7   :  { %5050 = vrcp.f32 %v2489_v9 }
 0xfc8   :  { %5052 = vpow2.f32 %v3165_v42 }
 0xfc9   :  { %5054 = vpow2.f32 %v3050_v23 }
 0xfca   :  { %v3278_v12 = vpop.xlane.xlu1 %3277  ;;  %v2721_v20 = vpop.permute.xlu0 %2720 }
 0xfcb   :  { %v3279_v24 = vsub.f32 %v3271_v40, %v3278_v12  ;;  %v2726_v36 = vsel %vm669_vm2, %v2721_v20, 0 }
 0xfcd   :  { %v3280_v18 = vmul.f32 1.442695, %v3279_v24 }
 0xfce   :  { %v2606_v14 = vpop.permute.xlu1 %2605 }
 0xfcf   :  { %3058 = vrot.lane.b32.xlu1 %v5960_v11, %s5361_s27  ;;  %v2611_v48 = vsel %vm669_vm2, %v2606_v14, 0  ;;  %5056 = vpow2.f32 %v3280_v18 }
 0xfd4   :  { %v5051_v13 = vpop.eup %5050 }
 0xfd5   :  { %v2491_v41 = vmul.f32 %v5051_v13, %v5041_v35  ;;  %v5973_v25 = vpop.eup %5052 }
 0xfd6   :  { %v3167_v21 = vsel %vm653_vm3, %v5973_v25, 0.0  ;;  %v5055_v28 = vpop.eup %5054 }
 0xfd7   :  { %v2492_v47 = vpack.c.bf16 %v2491_v41, %v2491_v41 }
 0xfd9   :  { %4688 = vmatmul.mubr.msk.bf16.vlgmr.msra.gmra.mxu1 %vm653_vm3, %v2492_v47 }
 0xfda   :  { %4698 = vmatpush3.bf16.msra.mxu1 %v2611_v48  ;;  %4699 = vmatprep.mubr.msk.bf16.mxu1 %vm5360_vm0, %v5359_v4  ;;  %v4932_v48 = vld [vmem:[#allocation15 + $0x78] sm:$0xff]  }
 0xfdb   :  { %4709 = vmatprep.subr.bf16.mxu1 %v5359_v4  ;;  %4776 = vmatpush3.bf16.msra.mxu0 %v4932_v48 }
 0xfdc   :  { %2835 = vrot.lane.b32.xlu0 %v5879_v29, %s5362_s25  ;;  %v3052_v29 = vsel %vm653_vm3, %v5055_v28, 0.0  ;;  %v5978_v30 = vpop.eup %5056  ;;  %4777 = vmatprep.subr.bf16.mxu0 %v5359_v4 }
 0xfdd   :  { %v3282_v27 = vsel %vm653_vm3, %v5978_v30, 0.0 }
 0xfdf   :  { %4778 = vmatpush3.bf16.msra.mxu0 %v4933_v22  ;;  %v4943_v22 = vld [vmem:[#allocation17 + $0xe0] ss:$8 sps:$4 sm:$0xff]  }
 0xfe0   :  { %4779 = vmatprep.subr.bf16.mxu0 %v5359_v4 }
 0xff3   :  { %3168 = vadd.xlane.f32.xlu1 %v3167_v21 }
 0xffb   :  { %3053 = vadd.xlane.f32.xlu0 %v3052_v29 }
 0xfff   :  { %3283 = vadd.xlane.f32.xlu0 %v3282_v27 }
0x1004   :  { %3288 = vrot.lane.b32.xlu1 %v5960_v11, %s5362_s25 }
0x1015   :  { %3173 = vrot.lane.b32.xlu0 %v5960_v11, %s5348_s28 }
0x1037   :  { %v2600_v31 = vpop.xlane.xlu1 %2599 }
0x1038   :  { %5058 = vrcp.f32 %v2600_v31 }
0x103f   :  { %v2716_v32 = vpop.xlane.xlu0 %2715 }
0x1040   :  { %5060 = vrcp.f32 %v2716_v32  ;;  %v4934_v32 = vld [vmem:[#allocation15 + $0x68] sm:$0xff]  }
0x1041   :  { %4780 = vmatpush3.bf16.msra.mxu0 %v4934_v32 }
0x1042   :  { %4781 = vmatprep.subr.bf16.mxu0 %v5359_v4 }
0x1045   :  { %v5059_v33 = vpop.eup %5058 }
0x1046   :  { %v2602_v34 = vmul.f32 %v5059_v33, %v5043_v58  ;;  %v4935_v33 = vld [vmem:[#allocation15 + $0x60] sm:$0xff]  }
0x1047   :  { %v2831_v15 = vpop.xlane.xlu1 %2830  ;;  %4782 = vmatpush3.bf16.msra.mxu0 %v4935_v33 }
0x1048   :  { %5062 = vrcp.f32 %v2831_v15  ;;  %v2603_v35 = vpack.c.bf16 %v2602_v34, %v2602_v34  ;;  %4783 = vmatprep.subr.bf16.mxu0 %v5359_v4  ;;  %v4936_v34 = vld [vmem:[#allocation15 + $0x58] sm:$0xff]   ;;  %v4937_v15 = vld [vmem:[#allocation15 + $0x50] sm:$0xff]  }
0x104a   :  { %4700 = vmatmul.mubr.msk.bf16.vlgmr.msra.gmra.mxu1 %vm653_vm3, %v2603_v35 }
0x104b   :  { %4710 = vmatpush3.bf16.msra.mxu1 %v2726_v36  ;;  %4711 = vmatprep.mubr.msk.bf16.mxu1 %vm5360_vm0, %v5359_v4  ;;  %v3059_v55 = vpop.permute.xlu1 %3058 }
0x104c   :  { %4721 = vmatprep.subr.bf16.mxu1 %v5359_v4  ;;  %v3064_v17 = vsel %vm669_vm2, %v3059_v55, 0  ;;  %4784 = vmatpush3.bf16.msra.mxu0 %v4936_v34 }
0x104d   :  { %v5061_v37 = vpop.eup %5060  ;;  %4785 = vmatprep.subr.bf16.mxu0 %v5359_v4 }
0x104e   :  { %v2718_v38 = vmul.f32 %v5061_v37, %v5947_v61 }
0x104f   :  { %v2944_v39 = vpop.xlane.xlu0 %2943 }
0x1050   :  { %5064 = vrcp.f32 %v2944_v39  ;;  %v2719_v40 = vpack.c.bf16 %v2718_v38, %v2718_v38  ;;  %4786 = vmatpush3.bf16.msra.mxu0 %v4937_v15  ;;  %v4938_v38 = vld [vmem:[#allocation15 + $0x48] sm:$0xff]  }
0x1051   :  { %4787 = vmatprep.subr.bf16.mxu0 %v5359_v4 }
0x1052   :  { %4712 = vmatmul.mubr.msk.bf16.vlgmr.msra.gmra.mxu1 %vm653_vm3, %v2719_v40  ;;  %v4939_v40 = vld [vmem:[#allocation15 + $0x40] sm:$0xff]  }
0x1053   :  { %v2836_v43 = vpop.permute.xlu0 %2835  ;;  %4723 = vmatprep.mubr.msk.bf16.mxu1 %vm5360_vm0, %v5359_v4 }
0x1054   :  { %v2841_v44 = vsel %vm669_vm2, %v2836_v43, 0  ;;  %4788 = vmatpush3.bf16.msra.mxu0 %v4938_v38  ;;  %v4204_v38 = vld [vmem:[%s6105_s12 + $0x1] ss:$0 sm:$0xff] }
0x1055   :  { %v5063_v45 = vpop.eup %5062  ;;  %4722 = vmatpush3.bf16.msra.mxu1 %v2841_v44  ;;  %4789 = vmatprep.subr.bf16.mxu0 %v5359_v4 }
0x1056   :  { %4733 = vmatprep.subr.bf16.mxu1 %v5359_v4  ;;  %v2833_v46 = vmul.f32 %v5063_v45, %v5951_v2 }
0x1058   :  { %v2834_v49 = vpack.c.bf16 %v2833_v46, %v2833_v46  ;;  %4790 = vmatpush3.bf16.msra.mxu0 %v4939_v40 }
0x105a   :  { %4724 = vmatmul.mubr.msk.bf16.vlgmr.msra.gmra.mxu1 %vm653_vm3, %v2834_v49 }
0x105b   :  { %4734 = vmatpush3.bf16.msra.mxu1 %v2953_v52  ;;  %4735 = vmatprep.mubr.msk.bf16.mxu1 %vm5360_vm0, %v5359_v4 }
0x105c   :  { %4745 = vmatprep.subr.bf16.mxu1 %v5359_v4 }
0x105d   :  { %v5065_v53 = vpop.eup %5064 }
0x105e   :  { %v2946_v54 = vmul.f32 %v5065_v53, %v5955_v6 }
0x1060   :  { %v2947_v56 = vpack.c.bf16 %v2946_v54, %v2946_v54 }
0x1062   :  { %4736 = vmatmul.mubr.msk.bf16.vlgmr.msra.gmra.mxu1 %vm653_vm3, %v2947_v56 }
0x1063   :  { %4746 = vmatpush3.bf16.msra.mxu1 %v3064_v17  ;;  %4747 = vmatprep.mubr.msk.bf16.mxu1 %vm5360_vm0, %v5359_v4 }
0x1064   :  { %4757 = vmatprep.subr.bf16.mxu1 %v5359_v4 }
0x107c   :  { %v3169_v58 = vpop.xlane.xlu1 %3168 }
0x1080   :  { %v3289_v5 = vpop.permute.xlu1 %3288 }
0x1081   :  { %v3294_v11 = vsel %vm669_vm2, %v3289_v5, 0 }
0x1084   :  { %v3054_v57 = vpop.xlane.xlu0 %3053 }
0x1085   :  { %5066 = vrcp.f32 %v3054_v57 }
0x1086   :  { %5068 = vrcp.f32 %v3169_v58 }
0x1088   :  { %v3284_v59 = vpop.xlane.xlu0 %3283 }
0x1089   :  { %5070 = vrcp.f32 %v3284_v59 }
0x108c   :  { %v3174_v0 = vpop.permute.xlu0 %3173 }
0x108d   :  { %v3179_v62 = vsel %vm669_vm2, %v3174_v0, 0 }
0x1092   :  { %v5067_v60 = vpop.eup %5066 }
0x1093   :  { %v3056_v63 = vmul.f32 %v5067_v60, %v5055_v28  ;;  %v5069_v1 = vpop.eup %5068 }
0x1094   :  { %v3171_v2 = vmul.f32 %v5069_v1, %v5973_v25 }
0x1095   :  { %v3057_v61 = vpack.c.bf16 %v3056_v63, %v3056_v63 }
0x1096   :  { %v3172_v7 = vpack.c.bf16 %v3171_v2, %v3171_v2  ;;  %v5071_v9 = vpop.eup %5070 }
0x1097   :  { %4748 = vmatmul.mubr.msk.bf16.vlgmr.msra.gmra.mxu1 %vm653_vm3, %v3057_v61  ;;  %v3286_v13 = vmul.f32 %v5071_v9, %v5978_v30  ;;  %v4193_v61 = vld [vmem:[%s6104_s11 + $0x1] ss:$0 sm:$0xff] }
0x1098   :  { %4758 = vmatpush3.bf16.msra.mxu1 %v3179_v62  ;;  %4759 = vmatprep.mubr.msk.bf16.mxu1 %vm5360_vm0, %v5359_v4 }
0x1099   :  { %4769 = vmatprep.subr.bf16.mxu1 %v5359_v4  ;;  %v2533_v3 = vpop.f32.mrf.mxu1  ;;  %v3287_v41 = vpack.c.bf16 %v3286_v13, %v3286_v13 }
0x109a   :  { %2539 = vst.msk [vmem:[#allocation2] sm:$0xff] %vm606_vm1, %v2533_v3 }
0x109b   :  { %v4689_v6 = vpop.f32.mrf.mxu1 }
0x109d   :  { %v2536_v10 = vpop.f32.mrf.mxu1 }
0x109e   :  { %v4940_v10 = vld [vmem:[#allocation17 + $0xf0] ss:$8 sps:$4 sm:$0xff]  }
0x109f   :  { %4760 = vmatmul.mubr.msk.bf16.vlgmr.msra.gmra.mxu1 %vm653_vm3, %v3172_v7  ;;  %v4690_v12 = vpop.f32.mrf.mxu1 }
0x10a0   :  { %4770 = vmatpush3.bf16.msra.mxu1 %v3294_v11  ;;  %4771 = vmatprep.mubr.msk.bf16.mxu1 %vm5360_vm0, %v5359_v4  ;;  %v4942_v11 = vld [vmem:[#allocation17 + $0xf4] ss:$8 sps:$4 sm:$0xff]  }
0x10a1   :  { %3613 = vmatprep.subr.bf16.mxu1 %v4942_v11 }
0x10a7   :  { %4772 = vmatmul.mubr.msk.bf16.vlgmr.msra.gmra.mxu1 %vm653_vm3, %v3287_v41 }
0x10a8   :  { %3645 = vmatprep.mubr.bf16.mxu1 %v5363_v26  ;;  %3614 = vmatpush1.bf16.msra.mxu1 %v4940_v10 }
0x110a   :  { %v2647_v14 = vpop.f32.mrf.mxu1 }
0x110b   :  { %2654 = vrot.lane.b32.xlu1 %v2647_v14, %s5362_s25 }
0x110c   :  { %v4701_v47 = vpop.f32.mrf.mxu1 }
0x110e   :  { %v2650_v16 = vpop.f32.mrf.mxu1 }
0x1110   :  { %v4702_v42 = vpop.f32.mrf.mxu1 }
0x1111   :  { %v4945_v42 = vld [vmem:[#allocation17 + $0xe4] ss:$8 sps:$4 sm:$0xff]  }
0x1112   :  { %v2762_v23 = vpop.f32.mrf.mxu1  ;;  %3615 = vmatprep.subr.bf16.mxu1 %v4945_v42 }
0x1113   :  { %2769 = vrot.lane.b32.xlu1 %v2762_v23, %s5348_s28  ;;  %3616 = vmatpush1.bf16.msra.mxu1 %v4943_v22  ;;  %v4946_v23 = vld [vmem:[#allocation17 + $0xd0] ss:$8 sps:$4 sm:$0xff]  }
0x1114   :  { %v4713_v24 = vpop.f32.mrf.mxu1 }
0x1115   :  { %v4951_v24 = vld [vmem:[#allocation17 + $0xc4] ss:$8 sps:$4 sm:$0xff]  }
0x1116   :  { %v2765_v18 = vpop.f32.mrf.mxu1 }
0x1117   :  { %v4949_v18 = vld [vmem:[#allocation17 + $0xc0] ss:$8 sps:$4 sm:$0xff]  }
0x1118   :  { %v4714_v26 = vpop.f32.mrf.mxu1 }
0x1119   :  { %v4954_v26 = vld [vmem:[#allocation17 + $0xb4] ss:$8 sps:$4 sm:$0xff]  }
0x111a   :  { %v2877_v25 = vpop.f32.mrf.mxu1 }
0x111b   :  { %2884 = vrot.lane.b32.xlu0 %v2877_v25, %s5361_s27  ;;  %v4952_v25 = vld [vmem:[#allocation17 + $0xb0] ss:$8 sps:$4 sm:$0xff]  }
0x111c   :  { %v4725_v21 = vpop.f32.mrf.mxu1 }
0x111d   :  { %v4957_v21 = vld [vmem:[#allocation17 + $0xa4] ss:$8 sps:$4 sm:$0xff]  }
0x111e   :  { %v2880_v28 = vpop.f32.mrf.mxu1 }
0x111f   :  { %v4955_v28 = vld [vmem:[#allocation17 + $0xa0] ss:$8 sps:$4 sm:$0xff]  }
0x1120   :  { %v4726_v29 = vpop.f32.mrf.mxu1 }
0x1121   :  { %v4960_v29 = vld [vmem:[#allocation17 + $0x94] ss:$8 sps:$4 sm:$0xff]  }
0x1122   :  { %v2989_v30 = vpop.f32.mrf.mxu1 }
0x1123   :  { %2995 = vst.msk [vmem:[#allocation2 + $0x8] sm:$0xff] %vm606_vm1, %v2989_v30  ;;  %v4958_v30 = vld [vmem:[#allocation17 + $0x90] ss:$8 sps:$4 sm:$0xff]  }
0x1124   :  { %v4737_v27 = vpop.f32.mrf.mxu1 }
0x1125   :  { %v4963_v27 = vld [vmem:[#allocation17 + $0x84] ss:$8 sps:$4 sm:$0xff]  }
0x1126   :  { %v2992_v31 = vpop.f32.mrf.mxu1 }
0x1127   :  { %v4961_v31 = vld [vmem:[#allocation17 + $0x80] ss:$8 sps:$4 sm:$0xff]  }
0x1128   :  { %v4738_v20 = vpop.f32.mrf.mxu1 }
0x1157   :  { %v3100_v35 = vpop.f32.mrf.mxu1 }
0x1158   :  { %3107 = vrot.lane.b32.xlu1 %v3100_v35, %s5362_s25 }
0x1159   :  { %v4749_v36 = vpop.f32.mrf.mxu1 }
0x115b   :  { %v3103_v37 = vpop.f32.mrf.mxu1 }
0x115d   :  { %v4750_v39 = vpop.f32.mrf.mxu1 }
0x115f   :  { %v3215_v43 = vpop.f32.mrf.mxu1 }
0x1160   :  { %3222 = vrot.lane.b32.xlu1 %v3215_v43, %s5348_s28 }
0x1161   :  { %v4761_v44 = vpop.f32.mrf.mxu1 }
0x1162   :  { %v4205_v44 = vld [vmem:[%s6106_s13 + $0x1] ss:$0 sm:$0xff] }
0x1163   :  { %v3218_v45 = vpop.f32.mrf.mxu1 }
0x1165   :  { %v4762_v46 = vpop.f32.mrf.mxu1 }
0x1167   :  { %v3330_v49 = vpop.f32.mrf.mxu1 }
0x1168   :  { %3337 = vrot.lane.b32.xlu1 %v3330_v49, %s5361_s27 }
0x1169   :  { %v4773_v52 = vpop.f32.mrf.mxu1 }
0x116b   :  { %v3333_v53 = vpop.f32.mrf.mxu1 }
0x116c   :  { %v4964_v53 = vld [vmem:[#allocation18 + $0xf8] sm:$0xff]  }
0x116d   :  { %v4774_v54 = vpop.f32.mrf.mxu1  ;;  %4412 = vmatprep.subr.bf16.mxu0 %v4964_v53 }
0x116e   :  { %v4965_v54 = vld [vmem:[#allocation18 + $0xb8] sm:$0xff]  }
0x117d   :  { %v2655_v55 = vpop.permute.xlu1 %2654 }
0x117e   :  { %2657 = vst.msk [vmem:[#allocation2] sm:$0xff] %vm831_vm4, %v2655_v55  ;;  %v4966_v55 = vld [vmem:[#allocation18 + $0xf0] sm:$0xff]  }
0x1185   :  { %v2770_v56 = vpop.permute.xlu1 %2769 }
0x1186   :  { %2772 = vst.msk [vmem:[#allocation2] sm:$0xff] %vm947_vm5, %v2770_v56  ;;  %v4967_v56 = vld [vmem:[#allocation18 + $0xb0] sm:$0xff]  }
0x118d   :  { %v2885_v17 = vpop.permute.xlu0 %2884 }
0x118e   :  { %2887 = vst.msk [vmem:[#allocation2] sm:$0xff] %vm1063_vm6, %v2885_v17  ;;  %v4968_v17 = vld [vmem:[#allocation18 + $0xe8] sm:$0xff]  }
0x1195   :  { %v3341_v60 = vld [vmem:[#allocation2] sm:$0xff] }
0x11ca   :  { %v3108_v57 = vpop.permute.xlu1 %3107 }
0x11cb   :  { %3110 = vst.msk [vmem:[#allocation2 + $0x8] sm:$0xff] %vm831_vm4, %v3108_v57  ;;  %v4969_v57 = vld [vmem:[#allocation18 + $0xa8] sm:$0xff]  }
0x11d2   :  { %v3223_v58 = vpop.permute.xlu1 %3222 }
0x11d3   :  { %3225 = vst.msk [vmem:[#allocation2 + $0x8] sm:$0xff] %vm947_vm5, %v3223_v58  ;;  %v4970_v58 = vld [vmem:[#allocation18 + $0xe0] sm:$0xff]  }
0x11da   :  { %v3338_v59 = vpop.permute.xlu1 %3337 }
0x11db   :  { %3340 = vst.msk [vmem:[#allocation2 + $0x8] sm:$0xff] %vm1063_vm6, %v3338_v59  ;;  %v4971_v59 = vld [vmem:[#allocation18 + $0xa0] sm:$0xff]  }
0x11e2   :  { %v3342_v63 = vld [vmem:[#allocation2 + $0x8] sm:$0xff] }
0x11e3   :  { %v3343_v0 = vpack.c.bf16 %v3342_v63, %v3341_v60  ;;  %v4972_v60 = vld [vmem:[#allocation18 + $0xd8] sm:$0xff]  }
0x11e4   :  { %v4973_v63 = vld [vmem:[#allocation18 + $0x98] sm:$0xff]  }
0x11e5   :  { %4792 = vmatmul.mubr.bf16.vlgmr.msra.gmra.mxu0 %v3343_v0  ;;  %v4974_v0 = vld [vmem:[#allocation18 + $0xd0] sm:$0xff]  }
0x11e6   :  { %4413 = vmatpush3.bf16.msra.mxu0 %v4965_v54 }
0x11e7   :  { %4414 = vmatprep.subr.bf16.mxu0 %v4966_v55 }
0x11ea   :  { %4415 = vmatpush3.bf16.msra.mxu0 %v4967_v56 }
0x11eb   :  { %4416 = vmatprep.subr.bf16.mxu0 %v4968_v17 }
0x11ee   :  { %4417 = vmatpush3.bf16.msra.mxu0 %v4969_v57  ;;  %v4224_v57 = vld [vmem:[%s6110_s17 + $0x1] ss:$0 sm:$0xff] }
0x11ef   :  { %4418 = vmatprep.subr.bf16.mxu0 %v4970_v58 }
0x11f2   :  { %4419 = vmatpush3.bf16.msra.mxu0 %v4971_v59 }
0x11f3   :  { %4420 = vmatprep.subr.bf16.mxu0 %v4972_v60 }
0x11f6   :  { %4421 = vmatpush3.bf16.msra.mxu0 %v4973_v63 }
0x11f7   :  { %4422 = vmatprep.subr.bf16.mxu0 %v4974_v0 }
0x12a5   :  { %v3451_v1 = vpop.f32.mrf.mxu0 }
0x12a6   :  { %v3452_v62 = vadd.f32 %v4193_v61, %v3451_v1  ;;  %v4976_v1 = vld [vmem:[#allocation18 + $0xc8] sm:$0xff]  }
0x12a7   :  { %v4793_v2 = vpop.f32.mrf.mxu0 }
0x12a8   :  { %v3458_v3 = vadd.f32 %v3452_v62, %v5833_v50  ;;  %v4977_v62 = vld [vmem:[#allocation18 + $0x88] sm:$0xff]   ;;  %v4978_v2 = vld [vmem:[#allocation18 + $0xc0] sm:$0xff]  }
0x12a9   :  { %v3454_v5 = vpop.f32.mrf.mxu0 }
0x12aa   :  { %v3455_v6 = vadd.f32 %v4193_v61, %v3454_v5  ;;  %3464 = vadd.xlane.f32.xlu0 %v3458_v3  ;;  %v4975_v61 = vld [vmem:[#allocation18 + $0x90] sm:$0xff]   ;;  %v4206_v5 = vld [vmem:[%s6108_s15 + $0x2] sm:$0x3] }
0x12ab   :  { %v4794_v7 = vpop.f32.mrf.mxu0  ;;  %4423 = vmatpush3.bf16.msra.mxu0 %v4975_v61 }
0x12ac   :  { %v3459_v9 = vadd.f32 %v3455_v6, %v5835_v51  ;;  %v4948_v51 = vld [vmem:[#allocation17 + $0xd4] ss:$8 sps:$4 sm:$0xff]   ;;  %4424 = vmatprep.subr.bf16.mxu0 %v4976_v1  ;;  %v3526_v6 = vrot.slane %v4206_v5, %v5601_v19  ;;  %v3530_v7 = vrot.slane %v4206_v5, %v5666_v8 }
0x12ad   :  { %3617 = vmatprep.subr.bf16.mxu1 %v4948_v51 }
0x12ae   :  { %3466 = vadd.xlane.f32.xlu1 %v3459_v9  ;;  %3618 = vmatpush1.bf16.msra.mxu1 %v4946_v23 }
0x12af   :  { %3619 = vmatprep.subr.bf16.mxu1 %v4951_v24  ;;  %4425 = vmatpush3.bf16.msra.mxu0 %v4977_v62 }
0x12b0   :  { %4426 = vmatprep.subr.bf16.mxu0 %v4978_v2 }
0x12b2   :  { %3620 = vmatpush1.bf16.msra.mxu1 %v4949_v18 }
0x12b3   :  { %3621 = vmatprep.subr.bf16.mxu1 %v4954_v26 }
0x12b6   :  { %3622 = vmatpush1.bf16.msra.mxu1 %v4952_v25 }
0x12b7   :  { %3623 = vmatprep.subr.bf16.mxu1 %v4957_v21 }
0x12ba   :  { %3624 = vmatpush1.bf16.msra.mxu1 %v4955_v28 }
0x12bb   :  { %3625 = vmatprep.subr.bf16.mxu1 %v4960_v29 }
0x12be   :  { %3626 = vmatpush1.bf16.msra.mxu1 %v4958_v30 }
0x12bf   :  { %3627 = vmatprep.subr.bf16.mxu1 %v4963_v27 }
0x12c2   :  { %3628 = vmatpush1.bf16.msra.mxu1 %v4961_v31 }
0x12c3   :  { %4795 = vmatprep.subr.bf16.mxu1 %v5359_v4 }
0x1333   :  { %v3465_v12 = vpop.xlane.xlu0 %3464 }
0x1334   :  { %v3468_v13 = vmul.f32 0.0078125, %v3465_v12 }
0x1336   :  { %v3470_v41 = vsub.f32 %v3458_v3, %v3468_v13  ;;  %v4979_v3 = vld [vmem:[#allocation18 + $0x80] sm:$0xff]  }
0x1337   :  { %v3467_v14 = vpop.xlane.xlu1 %3466  ;;  %4427 = vmatpush3.bf16.msra.mxu0 %v4979_v3 }
0x1338   :  { %v3469_v47 = vmul.f32 0.0078125, %v3467_v14  ;;  %v3472_v16 = vmul.f32 %v3470_v41, %v3470_v41 }
0x133a   :  { %v3471_v48 = vsub.f32 %v3459_v9, %v3469_v47  ;;  %3474 = vadd.xlane.f32.xlu0 %v3472_v16 }
0x133c   :  { %v3473_v50 = vmul.f32 %v3471_v48, %v3471_v48 }
0x133e   :  { %3476 = vadd.xlane.f32.xlu0 %v3473_v50 }
0x13c3   :  { %v3475_v20 = vpop.xlane.xlu0 %3474 }
0x13c4   :  { %v3478_v32 = vmul.f32 0.0078125, %v3475_v20 }
0x13c6   :  { %v3480_v33 = vadd.f32 1e-12, %v3478_v32 }
0x13c7   :  { %v3477_v34 = vpop.xlane.xlu0 %3476 }
0x13c8   :  { %5072 = vrsqrt.f32 %v3480_v33  ;;  %v3479_v15 = vmul.f32 0.0078125, %v3477_v34 }
0x13ca   :  { %v3481_v35 = vadd.f32 1e-12, %v3479_v15 }
0x13cc   :  { %5074 = vrsqrt.f32 %v3481_v35 }
0x13d5   :  { %v5073_v36 = vpop.eup %5072 }
0x13d6   :  { %v3484_v37 = vmul.f32 %v5073_v36, %v3470_v41 }
0x13d8   :  { %v3492_v43 = vmul.f32 %v4204_v38, %v3484_v37 }
0x13d9   :  { %v5075_v39 = vpop.eup %5074 }
0x13da   :  { %v3485_v40 = vmul.f32 %v5075_v39, %v3471_v48  ;;  %v6056_v46 = vadd.f32 %v4205_v44, %v3492_v43 }
0x13dc   :  { %v3493_v45 = vmul.f32 %v4204_v38, %v3485_v40 }
0x13de   :  { %v6058_v49 = vadd.f32 %v4205_v44, %v3493_v45 }
0x13e0   :  { %v3502_v52 = vpack.c.bf16 %v6058_v49, %v6056_v46 }
0x13e2   :  { %3646 = vmatmul.mubr.bf16.vlgmr.msra.gmra.mxu1 %v3502_v52 }
0x13e3   :  { %4811 = vmatprep.mubr.msk.bf16.mxu1 %vm5360_vm0, %v5359_v4 }
0x14a2   :  { %v3647_v9 = vpop.f32.mrf.mxu1 }
0x14a3   :  { %v3648_v10 = vadd.f32 %v3647_v9, %v3526_v6 }
0x14a4   :  { %v3649_v11 = vpop.f32.mrf.mxu1 }
0x14a5   :  { %v3656_v12 = vmul.f32 %v3648_v10, %v3648_v10  ;;  %v3650_v13 = vadd.f32 %v3649_v11, %v3530_v7 }
0x14a6   :  { %v3651_v41 = vpop.f32.mrf.mxu1 }
0x14a7   :  { %v3660_v14 = vmul.f32 %v3656_v12, %v3648_v10  ;;  %v3657_v47 = vmul.f32 %v3650_v13, %v3650_v13  ;;  %v3652_v16 = vadd.f32 %v3651_v41, %v3526_v6  ;;  %v4983_v41 = vld [vmem:[#allocation20 + $0x20] sm:$0xff]  }
0x14a8   :  { %v3653_v48 = vpop.f32.mrf.mxu1 }
0x14a9   :  { %v3664_v50 = vmul.f32 0.044715, %v3660_v14  ;;  %v3661_v42 = vmul.f32 %v3657_v47, %v3650_v13  ;;  %v3658_v22 = vmul.f32 %v3652_v16, %v3652_v16  ;;  %v3654_v51 = vadd.f32 %v3653_v48, %v3530_v7  ;;  %v4984_v14 = vld [vmem:[#allocation20 + $0x18] sm:$0xff]   ;;  %v4985_v47 = vld [vmem:[#allocation20 + $0x10] sm:$0xff]   ;;  %v4987_v48 = vld [vmem:[#allocation20] sm:$0xff]  }
0x14ab   :  { %v3668_v23 = vadd.f32 %v3664_v50, %v3648_v10  ;;  %v3665_v24 = vmul.f32 0.044715, %v3661_v42  ;;  %v3662_v18 = vmul.f32 %v3658_v22, %v3652_v16  ;;  %v3659_v19 = vmul.f32 %v3654_v51, %v3654_v51 }
0x14ad   :  { %v3672_v26 = vmul.f32 0.7978846, %v3668_v23  ;;  %v3669_v8 = vadd.f32 %v3665_v24, %v3650_v13  ;;  %v3666_v25 = vmul.f32 0.044715, %v3662_v18  ;;  %v3663_v21 = vmul.f32 %v3659_v19, %v3654_v51 }
0x14af   :  { %v3673_v28 = vmul.f32 0.7978846, %v3669_v8  ;;  %v3670_v29 = vadd.f32 %v3666_v25, %v3652_v16  ;;  %v3667_v30 = vmul.f32 0.044715, %v3663_v21  ;;  %5076 = vtanh.f32 %v3672_v26  ;;  %v4243_v8 = vld [vmem:[%s6111_s18 + $0x1] ss:$0 sm:$0xff] }
0x14b0   :  { %s5364_s18 = smov [#allocation21]  }
0x14b1   :  { %5078 = vtanh.f32 %v3673_v28  ;;  %v3674_v27 = vmul.f32 0.7978846, %v3670_v29  ;;  %v3671_v31 = vadd.f32 %v3667_v30, %v3654_v51  ;;  %s4041_s6 = sshll.u32 %s5364_s18, 4  ;;  %s4042_s6 = int_to_ptr.vmem [resolvable:$true] %s4041_s6 }
0x14b2   :  { %p5315_p0 = scmp.lt.s32.totalorder %s4042_s6, %s4042_s6 }
0x14b3   :  { %5080 = vtanh.f32 %v3674_v27  ;;  %v3675_v20 = vmul.f32 0.7978846, %v3671_v31 }
0x14b5   :  { %5082 = vtanh.f32 %v3675_v20 }
0x14bc   :  { %v5077_v32 = vpop.eup %5076 }
0x14bd   :  { %v3680_v35 = vadd.f32 1.0, %v5077_v32  ;;  %v4245_v32 = vld [vmem:[%s6114_s21] ss:$0 sm:$0xff] }
0x14be   :  { %v5079_v33 = vpop.eup %5078 }
0x14bf   :  { %v3681_v34 = vadd.f32 1.0, %v5079_v33  ;;  %v3684_v43 = vmul.f32 0.5, %v3680_v35 }
0x14c0   :  { %v5081_v15 = vpop.eup %5080 }
0x14c1   :  { %v3682_v36 = vadd.f32 1.0, %v5081_v15  ;;  %v3685_v40 = vmul.f32 0.5, %v3681_v34  ;;  %v3688_v54 = vmul.f32 %v3684_v43, %v3648_v10 }
0x14c2   :  { %v5083_v37 = vpop.eup %5082 }
0x14c3   :  { %v3686_v38 = vmul.f32 0.5, %v3682_v36  ;;  %v3683_v39 = vadd.f32 1.0, %v5083_v37  ;;  %v3689_v52 = vmul.f32 %v3685_v40, %v3650_v13  ;;  %v4980_v13 = vld [vmem:[#allocation20 + $0x38] sm:$0xff]  }
0x14c4   :  { %4796 = vmatpush3.bf16.msra.mxu1 %v4980_v13 }
0x14c5   :  { %v3687_v44 = vmul.f32 0.5, %v3683_v39  ;;  %v3690_v45 = vmul.f32 %v3686_v38, %v3652_v16  ;;  %4797 = vmatprep.subr.bf16.mxu1 %v5359_v4  ;;  %v4986_v16 = vld [vmem:[#allocation20 + $0x8] sm:$0xff]  }
0x14c7   :  { %v3691_v53 = vmul.f32 %v3687_v44, %v3654_v51  ;;  %v3692_v56 = vpack.c.bf16 %v3690_v45, %v3688_v54 }
0x14c9   :  { %v3693_v55 = vpack.c.bf16 %v3691_v53, %v3689_v52 }
0x14cb   :  { %3863 = vmatprep.mubr.bf16.mxu0 %v3693_v55 }
0x14cc   :  { %3864 = vmatmul.mubr.bf16.vlgmr.msra.gmra.mxu0 %v3692_v56 }
0x158c   :  { %v4428_v17 = vpop.f32.mrf.mxu0 }
0x158e   :  { %v4429_v58 = vpop.f32.mrf.mxu0 }
0x158f   :  { %v4430_v59 = vadd.f32 %v4429_v58, %v4428_v17 }
0x1590   :  { %v4431_v60 = vpop.f32.mrf.mxu0 }
0x1591   :  { %v3866_v63 = vadd.f32 %v4430_v59, %v4224_v57 }
0x1592   :  { %v4432_v0 = vpop.f32.mrf.mxu0 }
0x1593   :  { %v4433_v61 = vadd.f32 %v4432_v0, %v4431_v60  ;;  %v3872_v1 = vadd.f32 %v3866_v63, %v6056_v46  ;;  %v4981_v46 = vld [vmem:[#allocation20 + $0x30] sm:$0xff]  }
0x1594   :  { %4798 = vmatpush3.bf16.msra.mxu1 %v4981_v46 }
0x1595   :  { %v3869_v62 = vadd.f32 %v4433_v61, %v4224_v57  ;;  %3878 = vadd.xlane.f32.xlu1 %v3872_v1  ;;  %4799 = vmatprep.subr.bf16.mxu1 %v5359_v4 }
0x1597   :  { %v3873_v2 = vadd.f32 %v3869_v62, %v6058_v49  ;;  %v4982_v49 = vld [vmem:[#allocation20 + $0x28] sm:$0xff]  }
0x1598   :  { %4800 = vmatpush3.bf16.msra.mxu1 %v4982_v49 }
0x1599   :  { %3880 = vadd.xlane.f32.xlu0 %v3873_v2  ;;  %4801 = vmatprep.subr.bf16.mxu1 %v5359_v4 }
0x159c   :  { %4802 = vmatpush3.bf16.msra.mxu1 %v4983_v41 }
0x159d   :  { %4803 = vmatprep.subr.bf16.mxu1 %v5359_v4 }
0x15a0   :  { %4804 = vmatpush3.bf16.msra.mxu1 %v4984_v14 }
0x15a1   :  { %4805 = vmatprep.subr.bf16.mxu1 %v5359_v4 }
0x15a4   :  { %4806 = vmatpush3.bf16.msra.mxu1 %v4985_v47 }
0x15a5   :  { %4807 = vmatprep.subr.bf16.mxu1 %v5359_v4 }
0x15a8   :  { %4808 = vmatpush3.bf16.msra.mxu1 %v4986_v16 }
0x15a9   :  { %4809 = vmatprep.subr.bf16.mxu1 %v5359_v4  ;;  %v4244_v4 = vld [vmem:[%s6112_s19 + $0x1] ss:$0 sm:$0xff]  ;;  %s5310_s19 = scalar_lea.vmem %s4042_s6, 32 }
0x15aa   :  { %p5311_p13 = scmp.ne.s32.totalorder %s4042_s6, %s5310_s19  ;;  %p5316_p1 = scmp.lt.s32.totalorder %s5310_s19, %s5310_s19 }
0x15ac   :  { %4810 = vmatpush3.bf16.msra.mxu1 %v4987_v48  ;;  %p5317_p2 = por %p5316_p1, %p5315_p0 }
0x15ae   :  { %p5318_p3 = pnand %p5317_p2, %p5311_p13 }
0x161e   :  { %v3879_v3 = vpop.xlane.xlu1 %3878 }
0x161f   :  { %v3882_v5 = vmul.f32 0.0078125, %v3879_v3 }
0x1621   :  { %v3884_v6 = vsub.f32 %v3872_v1, %v3882_v5 }
0x1622   :  { %v3881_v7 = vpop.xlane.xlu0 %3880 }
0x1623   :  { %v3883_v9 = vmul.f32 0.0078125, %v3881_v7  ;;  %v3886_v10 = vmul.f32 %v3884_v6, %v3884_v6 }
0x1625   :  { %v3885_v11 = vsub.f32 %v3873_v2, %v3883_v9  ;;  %3888 = vadd.xlane.f32.xlu1 %v3886_v10 }
0x1627   :  { %v3887_v12 = vmul.f32 %v3885_v11, %v3885_v11 }
0x1629   :  { %3890 = vadd.xlane.f32.xlu0 %v3887_v12 }
0x16ae   :  { %v3889_v50 = vpop.xlane.xlu1 %3888 }
0x16af   :  { %v3892_v42 = vmul.f32 0.0078125, %v3889_v50 }
0x16b1   :  { %v3894_v22 = vadd.f32 1e-12, %v3892_v42 }
0x16b2   :  { %v3891_v51 = vpop.xlane.xlu0 %3890 }
0x16b3   :  { %5084 = vrsqrt.f32 %v3894_v22  ;;  %v3893_v23 = vmul.f32 0.0078125, %v3891_v51 }
0x16b5   :  { %v3895_v24 = vadd.f32 1e-12, %v3893_v23 }
0x16b7   :  { %5086 = vrsqrt.f32 %v3895_v24 }
0x16c0   :  { %v5085_v18 = vpop.eup %5084 }
0x16c1   :  { %v3898_v19 = vmul.f32 %v5085_v18, %v3884_v6 }
0x16c3   :  { %v3906_v21 = vmul.f32 %v4243_v8, %v3898_v19 }
0x16c4   :  { %v5087_v26 = vpop.eup %5086 }
0x16c5   :  { %v3899_v25 = vmul.f32 %v5087_v26, %v3885_v11  ;;  %v3914_v30 = vadd.f32 %v4244_v4, %v3906_v21 }
0x16c7   :  { %v3907_v28 = vmul.f32 %v4243_v8, %v3899_v25 }
0x16c9   :  { %v3915_v29 = vadd.f32 %v4244_v4, %v3907_v28 }
0x16cb   :  { %v3917_v27 = vrot.slane %v3915_v29, 7 }
0x16cd   :  { %v3920_v31 = vsel %vm3919_vm7, %v3914_v30, %v3917_v27 }
0x16ce   :  { %v3921_v20 = vpack.c.bf16 %v3920_v31, %v3920_v31 }
0x16d0   :  { %4812 = vmatmul.mubr.bf16.vlgmr.msra.gmra.mxu1 %v3921_v20 }
0x1790   :  { %v4027_v33 = vpop.f32.mrf.mxu1 }
0x1791   :  { %v4028_v34 = vadd.f32 %v4245_v32, %v4027_v33 }
0x1792   :  { %v4813_v15 = vpop.f32.mrf.mxu1 }
0x1793   :  { %5088 = vtanh.f32 %v4028_v34 }
0x1794   :  { %v4030_v35 = vpop.f32.mrf.mxu1 }
0x1796   :  { %v4814_v36 = vpop.f32.mrf.mxu1 }
0x17a0   :  { %v5089_v37 = vpop.eup %5088 }
0x17a1   :  { %4034 = vst [vmem:[#allocation21] sm:$0x3] %v5089_v37 }
0x17a2   :  { %5321 = shalt.err (!%p5318_p3)
}
0x17a3   :  { %4044 = dma.vmem_to_hbm [thread:$0]  %s4042_s6, 32, %s6115_s22, [#allocation5]  }
0x17a4   :  { %5342 = dma.done.wait [#allocation5], 32  }
0x17a5   :  { %5343 = vsyncadd [#allocation5], 4294967264 }
0x17a6   :  { %4048 = vsyncpa [#allocation4], 1 }
0x17a7   :  { %4049 = vsyncpa [#allocation7], 1 }
0x17a8   :  { %4050 = vsyncpa [#allocation10], 1 }
0x17a9   :  { %4051 = vsyncpa [#allocation13], 1 }
0x17aa   :  { %4052 = vsyncpa [#allocation16], 1 }
0x17ab   :  { %4053 = vsyncpa [#allocation19], 1 }
0x17ac   :  { %4054 = vsyncpa [#allocation5], 1 }

</bundles_post_ra>
